<compile_context>
chip_gen: v6e
topology: v6e:2x2x1
jax: 0.10.0
libtpu: 0.0.40
codegen_flags: <defaults>
</compile_context>

<pallas_src>
import jax
import jax.numpy as jnp
import numpy as np
from jax.experimental import pallas as pl
from jax.experimental.pallas import tpu as pltpu

# ------------------------- module-consistent hyperparameters -----------------
SPECTRUM = 64          # spectrum_size
ACTION = 4             # action_size
HIDDEN = 32            # hidden_size
OUTPUT = 4             # output_size
NUM_LAYERS_LSTM = 2
NUM_LAYERS_CNN = 2
FILTERS = 8            # filters_conv
STRIDE = 2
KERNEL = 5             # kernel_size
BATCH = 2
PAST_OBS = 4
LN_EPS = 1e-5


def _conv_out_len(L):
    # == int((L - KERNEL) / STRIDE + 1) for L >= KERNEL (module's formula)
    return (L - KERNEL) // STRIDE + 1


L1 = _conv_out_len(SPECTRUM)       # 30
L2 = _conv_out_len(L1)             # 13
FEAT = L2 * FILTERS                # 104  (feature_shape * filters)
LSTM_IN = FEAT + ACTION            # 108
G4 = 4 * HIDDEN                    # 128

C1N = FILTERS * L1                 # 240  conv1 Toeplitz output columns
C1NP = 256                         # padded to a multiple of 128 (v5e MXU width)
FEATP = 128                        # FEAT padded to 128
PW = 256                           # packed parameter buffer lane width

_VMEM = pl.BlockSpec(memory_space=pltpu.MemorySpace.VMEM)


# ------------------- packed-parameter layout (static constants) ---------------
def _build_layout():
    layout = {}
    off = 0

    def add(name, nrows, ncols):
        nonlocal off
        layout[name] = (off, nrows, ncols)
        off += -(-nrows // 8) * 8          # 8-align each matrix (sublane tile)

    add('cw1',   SPECTRUM, C1NP)           # conv1 Toeplitz weights
    add('cw2',   C1NP,     FEATP)          # conv2 Toeplitz weights
    add('wih0a', FEATP,    G4)             # layer-0 W_ih^T, feature rows (padded)
    add('wih0b', ACTION,   G4)             # layer-0 W_ih^T, action rows
    add('whh0',  HIDDEN,   G4)
    add('wih1',  HIDDEN,   G4)
    add('whh1',  HIDDEN,   G4)
    add('w1',    HIDDEN,   HIDDEN)         # fc1 weights (transposed)
    add('w2',    HIDDEN,   OUTPUT)         # fc2 weights (transposed)
    # single-row vectors, packed contiguously in one trailing block
    for name, w in (('cb1', C1NP), ('cb2', FEATP), ('gf', FEATP), ('bf', FEATP),
                    ('ga', ACTION), ('ba', ACTION), ('bias0', G4), ('bias1', G4),
                    ('go', HIDDEN), ('bo', HIDDEN), ('fb1', HIDDEN), ('fb2', OUTPUT)):
        layout[name] = (off, 1, w)
        off += 1
    off = -(-off // 8) * 8
    return layout, off


_LAYOUT, _PACK_ROWS = _build_layout()


def _param_view(p_ref, name):
    """Static slice view into the packed parameter buffer (zero-cost indexing)."""
    r0, nr, nc = _LAYOUT[name]
    return p_ref[r0:r0 + nr, 0:nc]


# --------------------------------- fused kernel -------------------------------
def fused_convlstm_kernel(x_ref, p_ref, h0_ref, c0_ref, y_ref, hn_ref, cn_ref):
    B = h0_ref.shape[1]
    TB = x_ref.shape[0]
    T = TB // B
    H = HIDDEN

    x = x_ref[...]                                 # (B*T, SPECTRUM+ACTION), row = b*T + t
    conv_in = x[:, :SPECTRUM]                      # (TB, 64)
    act_in = x[:, SPECTRUM:]                       # (TB, 4)

    # ---- conv stack: two lane-dense matmuls (Toeplitz-folded, lane-padded) ----
    c1 = jnp.maximum(
        jnp.dot(conv_in, _param_view(p_ref, 'cw1'), preferred_element_type=jnp.float32)
        + _param_view(p_ref, 'cb1'), 0.0)          # (TB, 256); cols >= 240 are exactly 0
    feats = jnp.maximum(
        jnp.dot(c1, _param_view(p_ref, 'cw2'), preferred_element_type=jnp.float32)
        + _param_view(p_ref, 'cb2'), 0.0)          # (TB, 128); cols >= 104 are exactly 0

    # ---- feature LayerNorm over the virtual concat [feats | action] ----------
    # E[x^2] - mu^2 form: the zero-padded feature lanes drop out of the stats exactly.
    n = float(LSTM_IN)
    s1 = (jnp.sum(feats, axis=-1, keepdims=True)
          + jnp.sum(act_in, axis=-1, keepdims=True))
    s2 = (jnp.sum(feats * feats, axis=-1, keepdims=True)
          + jnp.sum(act_in * act_in, axis=-1, keepdims=True))
    mu = s1 / n
    var = s2 / n - mu * mu
    inv = jax.lax.rsqrt(var + LN_EPS)
    # gamma/beta of the padded lanes are zero, so padded features stay exactly 0.
    fn = (feats - mu) * inv * _param_view(p_ref, 'gf') + _param_view(p_ref, 'bf')
    an = (act_in - mu) * inv * _param_view(p_ref, 'ga') + _param_view(p_ref, 'ba')

    # ---- layer-0 input projection batched over all timesteps ------------------
    xp0 = (jnp.dot(fn, _param_view(p_ref, 'wih0a'), preferred_element_type=jnp.float32)
           + jnp.dot(an, _param_view(p_ref, 'wih0b'), preferred_element_type=jnp.float32)
           + _param_view(p_ref, 'bias0'))          # (TB, 4H), batch-major rows

    # one-time reorder to time-major rows (t*B + b); replaces the wrapper transpose
    xp0 = jnp.concatenate(
        [xp0[b * T + t: b * T + t + 1, :] for t in range(T) for b in range(B)], axis=0)
    # one-time per-gate split (lane-offset slices stay off the recurrent path)
    xp0_g = [xp0[:, g * H:(g + 1) * H] for g in range(4)]        # i, f, g, o

    # loop-invariant weights, split per gate once so every per-step operand is lane-0
    whh0 = _param_view(p_ref, 'whh0')
    wih1 = _param_view(p_ref, 'wih1')
    whh1 = _param_view(p_ref, 'whh1')
    b1 = _param_view(p_ref, 'bias1')
    whh0_g = [whh0[:, g * H:(g + 1) * H] for g in range(4)]
    wih1_g = [wih1[:, g * H:(g + 1) * H] for g in range(4)]
    whh1_g = [whh1[:, g * H:(g + 1) * H] for g in range(4)]
    b1_g = [b1[:, g * H:(g + 1) * H] for g in range(4)]

    def dot(a, b):
        return jnp.dot(a, b, preferred_element_type=jnp.float32)

    # ---- interleaved 2-layer LSTM recurrence (T statically unrolled) ----------
    h_l0, c_l0 = h0_ref[0], c0_ref[0]
    h_l1, c_l1 = h0_ref[1], c0_ref[1]
    hs1 = []
    for t in range(T):
        r0, r1 = t * B, (t + 1) * B
        # layer 0 (gates i, f, g, o — PyTorch order), all operands at lane offset 0
        i0 = jax.nn.sigmoid(xp0_g[0][r0:r1] + dot(h_l0, whh0_g[0]))
        f0 = jax.nn.sigmoid(xp0_g[1][r0:r1] + dot(h_l0, whh0_g[1]))
        g0 = jnp.tanh(      xp0_g[2][r0:r1] + dot(h_l0, whh0_g[2]))
        o0 = jax.nn.sigmoid(xp0_g[3][r0:r1] + dot(h_l0, whh0_g[3]))
        c_l0 = f0 * c_l0 + i0 * g0
        h_l0 = o0 * jnp.tanh(c_l0)
        # layer 1 consumes this step's fresh h_l0 immediately
        i1 = jax.nn.sigmoid(b1_g[0] + dot(h_l0, wih1_g[0]) + dot(h_l1, whh1_g[0]))
        f1 = jax.nn.sigmoid(b1_g[1] + dot(h_l0, wih1_g[1]) + dot(h_l1, whh1_g[1]))
        g1 = jnp.tanh(      b1_g[2] + dot(h_l0, wih1_g[2]) + dot(h_l1, whh1_g[2]))
        o1 = jax.nn.sigmoid(b1_g[3] + dot(h_l0, wih1_g[3]) + dot(h_l1, whh1_g[3]))
        c_l1 = f1 * c_l1 + i1 * g1
        h_l1 = o1 * jnp.tanh(c_l1)
        hs1.append(h_l1)

    hn_ref[0] = h_l0
    cn_ref[0] = c_l0
    hn_ref[1] = h_l1
    cn_ref[1] = c_l1

    # ---- collect layer-1 outputs directly in batch-major row order (b*T + t) ---
    out = jnp.concatenate(
        [hs1[t][b:b + 1, :] for b in range(B) for t in range(T)], axis=0)   # (B*T, H)

    # -------------- output LayerNorm + MLP head --------------
    mu2 = jnp.mean(out, axis=-1, keepdims=True)
    d2 = out - mu2
    var2 = jnp.mean(d2 * d2, axis=-1, keepdims=True)
    outn = (d2 * jax.lax.rsqrt(var2 + LN_EPS) * _param_view(p_ref, 'go')
            + _param_view(p_ref, 'bo'))
    hid = jnp.maximum(dot(outn, _param_view(p_ref, 'w1')) + _param_view(p_ref, 'fb1'), 0.0)
    y_ref[...] = jnp.tanh(dot(hid, _param_view(p_ref, 'w2')) + _param_view(p_ref, 'fb2'))


# ------------------------ parameter preprocessing (one-time) ------------------
def _conv_to_dense(w, b, L_in, rows_pad, cols_pad):
    """Expand Conv1d weights (Cout, Cin, K), bias (Cout,) into a zero-padded dense
    matmul on channel-major flattened activations: row = ci*L_in + p,
    column = co*L_out + l (exactly torch's .view(B, -1) flatten order)."""
    w = np.asarray(w, np.float32)
    b = np.asarray(b, np.float32)
    Cout, Cin, K = w.shape
    L_out = _conv_out_len(L_in)
    dense = np.zeros((rows_pad, cols_pad), np.float32)
    for co in range(Cout):
        for ci in range(Cin):
            for l in range(L_out):
                r0 = ci * L_in + STRIDE * l
                dense[r0:r0 + K, co * L_out + l] = w[co, ci]
    bias = np.zeros((1, cols_pad), np.float32)
    bias[0, :Cout * L_out] = np.repeat(b, L_out)
    return dense, bias


def prepare_kernel_params(params):
    """Fold convs to Toeplitz matmuls, lane-pad, and pack everything into ONE
    (632, 256) f32 buffer -> a single HBM->VMEM DMA at kernel launch."""
    pieces = {}
    (w1c, b1c), (w2c, b2c) = params['convs']
    pieces['cw1'], pieces['cb1'] = _conv_to_dense(w1c, b1c, SPECTRUM, SPECTRUM, C1NP)
    pieces['cw2'], pieces['cb2'] = _conv_to_dense(w2c, b2c, L1, C1NP, FEATP)

    g_ln = np.asarray(params['ln_features'][0], np.float32)
    b_ln = np.asarray(params['ln_features'][1], np.float32)
    gf = np.zeros((1, FEATP), np.float32); gf[0, :FEAT] = g_ln[:FEAT]
    bf = np.zeros((1, FEATP), np.float32); bf[0, :FEAT] = b_ln[:FEAT]
    pieces['gf'], pieces['bf'] = gf, bf
    pieces['ga'] = g_ln[FEAT:].reshape(1, ACTION)
    pieces['ba'] = b_ln[FEAT:].reshape(1, ACTION)

    (wih0T, whh0T, bsum0), (wih1T, whh1T, bsum1) = params['lstm']
    wih0T = np.asarray(wih0T, np.float32)
    wih0a = np.zeros((FEATP, G4), np.float32); wih0a[:FEAT] = wih0T[:FEAT]
    pieces['wih0a'] = wih0a
    pieces['wih0b'] = np.asarray(wih0T[FEAT:], np.float32)
    pieces['whh0'] = np.asarray(whh0T, np.float32)
    pieces['bias0'] = np.asarray(bsum0, np.float32).reshape(1, G4)
    pieces['wih1'] = np.asarray(wih1T, np.float32)
    pieces['whh1'] = np.asarray(whh1T, np.float32)
    pieces['bias1'] = np.asarray(bsum1, np.float32).reshape(1, G4)

    pieces['go'] = np.asarray(params['ln_lstm'][0], np.float32).reshape(1, HIDDEN)
    pieces['bo'] = np.asarray(params['ln_lstm'][1], np.float32).reshape(1, HIDDEN)

    w1t, fb1, w2t, fb2 = params['head']
    pieces['w1'] = np.asarray(w1t, np.float32)
    pieces['fb1'] = np.asarray(fb1, np.float32).reshape(1, HIDDEN)
    pieces['w2'] = np.asarray(w2t, np.float32)
    pieces['fb2'] = np.asarray(fb2, np.float32).reshape(1, OUTPUT)

    buf = np.zeros((_PACK_ROWS, PW), np.float32)
    for name, arr in pieces.items():
        r0, nr, nc = _LAYOUT[name]
        buf[r0:r0 + nr, :nc] = np.asarray(arr, np.float32).reshape(nr, nc)
    return jnp.asarray(buf)


# -------------------------------- forward ------------------------------------
@jax.jit
def conv_lstm_forward(packed_params, inputs, hidden):
    B, T, D = inputs.shape
    h0, c0 = hidden
    x2d = inputs.reshape(B * T, D)        # contiguous view: free, no transpose needed

    y2d, h_n, c_n = pl.pallas_call(
        fused_convlstm_kernel,
        out_shape=(jax.ShapeDtypeStruct((B * T, OUTPUT), jnp.float32),
                   jax.ShapeDtypeStruct((NUM_LAYERS_LSTM, B, HIDDEN), jnp.float32),
                   jax.ShapeDtypeStruct((NUM_LAYERS_LSTM, B, HIDDEN), jnp.float32)),
        in_specs=[_VMEM, _VMEM, _VMEM, _VMEM],
        out_specs=(_VMEM, _VMEM, _VMEM),
        # explicit VMEM budget (working set < 2 MiB; v7x has 64 MiB physical)
        compiler_params=pltpu.CompilerParams(vmem_limit_bytes=32 * 1024 * 1024),
    )(x2d, packed_params, h0, c0)

    return y2d.reshape(B, T, OUTPUT), (h_n, c_n)


# ------------------------------ parameter init --------------------------------
def init_params(key):
    keys = iter(jax.random.split(key, 40))
    params = {}

    convs = []
    in_c = 1
    for _ in range(NUM_LAYERS_CNN):
        bound = 1.0 / np.sqrt(in_c * KERNEL)
        w = jax.random.uniform(next(keys), (FILTERS, in_c, KERNEL), jnp.float32, -bound, bound)
        b = jax.random.uniform(next(keys), (FILTERS,), jnp.float32, -bound, bound)
        convs.append((w, b))
        in_c = FILTERS
    params['convs'] = convs

    params['ln_features'] = (
        1.0 + 0.1 * jax.random.normal(next(keys), (LSTM_IN,), jnp.float32),
        0.1 * jax.random.normal(next(keys), (LSTM_IN,), jnp.float32),
    )

    lstm = []
    bound = 1.0 / np.sqrt(HIDDEN)
    d_in = LSTM_IN
    for _ in range(NUM_LAYERS_LSTM):
        w_ih = jax.random.uniform(next(keys), (4 * HIDDEN, d_in), jnp.float32, -bound, bound)
        w_hh = jax.random.uniform(next(keys), (4 * HIDDEN, HIDDEN), jnp.float32, -bound, bound)
        b_ih = jax.random.uniform(next(keys), (4 * HIDDEN,), jnp.float32, -bound, bound)
        b_hh = jax.random.uniform(next(keys), (4 * HIDDEN,), jnp.float32, -bound, bound)
        lstm.append((w_ih.T, w_hh.T, b_ih + b_hh))   # transposed, bias folded
        d_in = HIDDEN
    params['lstm'] = lstm

    params['ln_lstm'] = (
        1.0 + 0.1 * jax.random.normal(next(keys), (HIDDEN,), jnp.float32),
        0.1 * jax.random.normal(next(keys), (HIDDEN,), jnp.float32),
    )

    b1 = 1.0 / np.sqrt(HIDDEN)
    w1 = jax.random.uniform(next(keys), (HIDDEN, HIDDEN), jnp.float32, -b1, b1)
    fb1 = jax.random.uniform(next(keys), (HIDDEN,), jnp.float32, -b1, b1)
    w2 = jax.random.uniform(next(keys), (OUTPUT, HIDDEN), jnp.float32, -b1, b1)
    fb2 = jax.random.uniform(next(keys), (OUTPUT,), jnp.float32, -b1, b1)
    params['head'] = (w1.T, fb1, w2.T, fb2)
    return params


# --------------------------- pure-JAX reference -------------------------------
def reference_forward(params, inputs, hidden):
    B, T, _ = inputs.shape
    conv_part = inputs[:, :, :SPECTRUM]
    fc_part = inputs[:, :, SPECTRUM:]
    x = conv_part.reshape(B * T, 1, SPECTRUM)
    for (w, b) in params['convs']:
        x = jax.lax.conv_general_dilated(
            x, w, (STRIDE,), 'VALID', dimension_numbers=('NCH', 'OIH', 'NCH'),
            precision=jax.lax.Precision.HIGHEST)
        x = jnp.maximum(x + b[None, :, None], 0.0)
    features = x.reshape(B, T, FEAT)
    combined = jnp.concatenate([features, fc_part], axis=2)

    def ln(v, g, be):
        mu = jnp.mean(v, axis=-1, keepdims=True)
        var = jnp.mean(jnp.square(v - mu), axis=-1, keepdims=True)
        return (v - mu) * jax.lax.rsqrt(var + LN_EPS) * g + be

    g, be = params['ln_features']
    combined = ln(combined, g, be)

    x_t = combined.transpose(1, 0, 2)
    h0, c0 = hidden
    h_n, c_n = [], []
    for layer, (wih_T, whh_T, bsum) in enumerate(params['lstm']):
        h, c = h0[layer], c0[layer]
        ys = []
        for t in range(T):
            gates = x_t[t] @ wih_T + h @ whh_T + bsum[None, :]
            i = jax.nn.sigmoid(gates[:, 0 * HIDDEN:1 * HIDDEN])
            f = jax.nn.sigmoid(gates[:, 1 * HIDDEN:2 * HIDDEN])
            gg = jnp.tanh(gates[:, 2 * HIDDEN:3 * HIDDEN])
            o = jax.nn.sigmoid(gates[:, 3 * HIDDEN:4 * HIDDEN])
            c = f * c + i * gg
            h = o * jnp.tanh(c)
            ys.append(h)
        x_t = jnp.stack(ys, axis=0)
        h_n.append(h)
        c_n.append(c)
    out = x_t.transpose(1, 0, 2)
    g2, be2 = params['ln_lstm']
    out = ln(out, g2, be2)
    w1t, fb1, w2t, fb2 = params['head']
    h1 = jnp.maximum(out @ w1t + fb1, 0.0)
    y = jnp.tanh(h1 @ w2t + fb2)
    return y, (jnp.stack(h_n), jnp.stack(c_n))


# ----------------------------------- main -------------------------------------
if __name__ == "__main__":
    key = jax.random.PRNGKey(0)
    k_param, k_in, k_h, k_c = jax.random.split(key, 4)

    params = init_params(k_param)
    packed = prepare_kernel_params(params)      # one-time, zero runtime cost

    inputs = jax.random.normal(k_in, (BATCH, PAST_OBS, SPECTRUM + ACTION), jnp.float32)
    hidden = (0.1 * jax.random.normal(k_h, (NUM_LAYERS_LSTM, BATCH, HIDDEN), jnp.float32),
              0.1 * jax.random.normal(k_c, (NUM_LAYERS_LSTM, BATCH, HIDDEN), jnp.float32))

    y, (h_n, c_n) = conv_lstm_forward(packed, inputs, hidden)
    jax.block_until_ready((y, h_n, c_n))

    y_ref, (h_ref, c_ref) = reference_forward(params, inputs, hidden)
    # Tolerance covers Pallas-MXU default precision vs. Precision.HIGHEST reference.
    np.testing.assert_allclose(np.asarray(y), np.asarray(y_ref), atol=2e-2, rtol=2e-2)
    np.testing.assert_allclose(np.asarray(h_n), np.asarray(h_ref), atol=2e-2, rtol=2e-2)
    np.testing.assert_allclose(np.asarray(c_n), np.asarray(c_ref), atol=2e-2, rtol=2e-2)

    assert y.shape == (BATCH, PAST_OBS, OUTPUT)
    assert h_n.shape == (NUM_LAYERS_LSTM, BATCH, HIDDEN)
    assert c_n.shape == (NUM_LAYERS_LSTM, BATCH, HIDDEN)
    print("KERNEL_OK")
</pallas_src>

<mosaic_0001>
module attributes {stable_mosaic.version = 11 : i64} {
  func.func @fused_convlstm_kernel(%arg0: memref<8x68xf32, #tpu.memory_space<vmem>>, %arg1: memref<632x256xf32, #tpu.memory_space<vmem>>, %arg2: memref<2x2x32xf32, #tpu.memory_space<vmem>>, %arg3: memref<2x2x32xf32, #tpu.memory_space<vmem>>, %arg4: memref<8x4xf32, #tpu.memory_space<vmem>>, %arg5: memref<2x2x32xf32, #tpu.memory_space<vmem>>, %arg6: memref<2x2x32xf32, #tpu.memory_space<vmem>>) attributes {dimension_semantics = [], scalar_prefetch = 0 : i64, scratch_operands = 0 : i64, tpu.core_type = #tpu.core_type<tc>} {
    %c0 = arith.constant 0 : index
    %c0_0 = arith.constant 0 : index
    %0 = vector.load %arg0[%c0, %c0_0] : memref<8x68xf32, #tpu.memory_space<vmem>>, vector<8x68xf32>
    %1 = vector.extract_strided_slice %0 {offsets = [0, 0], sizes = [8, 64], strides = [1, 1]} : vector<8x68xf32> to vector<8x64xf32>
    %2 = vector.extract_strided_slice %0 {offsets = [0, 64], sizes = [8, 4], strides = [1, 1]} : vector<8x68xf32> to vector<8x4xf32>
    %c0_1 = arith.constant 0 : index
    %c0_2 = arith.constant 0 : index
    %3 = vector.load %arg1[%c0_1, %c0_2] : memref<632x256xf32, #tpu.memory_space<vmem>>, vector<64x256xf32>
    %cst = arith.constant dense<0.000000e+00> : vector<8x256xf32>
    %4 = tpu.matmul %1, %3, %cst {dimension_numbers = #tpu.dot_dimension_numbers<[1], [0], [0], [1], [0, 0, 1, 1], [], []>} : vector<8x64xf32>, vector<64x256xf32>, vector<8x256xf32> -> vector<8x256xf32>
    %c616 = arith.constant 616 : index
    %c0_3 = arith.constant 0 : index
    %5 = vector.load %arg1[%c616, %c0_3] : memref<632x256xf32, #tpu.memory_space<vmem>>, vector<1x256xf32>
    %6 = vector.broadcast %5 : vector<1x256xf32> to vector<8x256xf32>
    %7 = arith.addf %4, %6 : vector<8x256xf32>
    %cst_4 = arith.constant 0.000000e+00 : f32
    %8 = vector.broadcast %cst_4 : f32 to vector<8x256xf32>
    %9 = arith.maximumf %7, %8 : vector<8x256xf32>
    %c64 = arith.constant 64 : index
    %c0_5 = arith.constant 0 : index
    %10 = vector.load %arg1[%c64, %c0_5] : memref<632x256xf32, #tpu.memory_space<vmem>>, vector<256x128xf32>
    %cst_6 = arith.constant dense<0.000000e+00> : vector<8x128xf32>
    %11 = tpu.matmul %9, %10, %cst_6 {dimension_numbers = #tpu.dot_dimension_numbers<[1], [0], [0], [1], [0, 0, 1, 1], [], []>} : vector<8x256xf32>, vector<256x128xf32>, vector<8x128xf32> -> vector<8x128xf32>
    %c617 = arith.constant 617 : index
    %c0_7 = arith.constant 0 : index
    %12 = vector.load %arg1[%c617, %c0_7] : memref<632x256xf32, #tpu.memory_space<vmem>>, vector<1x128xf32>
    %13 = vector.broadcast %12 : vector<1x128xf32> to vector<8x128xf32>
    %14 = arith.addf %11, %13 : vector<8x128xf32>
    %cst_8 = arith.constant 0.000000e+00 : f32
    %15 = vector.broadcast %cst_8 : f32 to vector<8x128xf32>
    %16 = arith.maximumf %14, %15 : vector<8x128xf32>
    %cst_9 = arith.constant dense<0.000000e+00> : vector<8xf32>
    %17 = vector.multi_reduction <add>, %16, %cst_9 [1] : vector<8x128xf32> to vector<8xf32>
    %18 = vector.shape_cast %17 : vector<8xf32> to vector<8x1xf32>
    %cst_10 = arith.constant dense<0.000000e+00> : vector<8xf32>
    %19 = vector.multi_reduction <add>, %2, %cst_10 [1] : vector<8x4xf32> to vector<8xf32>
    %20 = vector.shape_cast %19 : vector<8xf32> to vector<8x1xf32>
    %21 = arith.addf %18, %20 : vector<8x1xf32>
    %22 = arith.mulf %16, %16 : vector<8x128xf32>
    %cst_11 = arith.constant dense<0.000000e+00> : vector<8xf32>
    %23 = vector.multi_reduction <add>, %22, %cst_11 [1] : vector<8x128xf32> to vector<8xf32>
    %24 = vector.shape_cast %23 : vector<8xf32> to vector<8x1xf32>
    %25 = arith.mulf %2, %2 : vector<8x4xf32>
    %cst_12 = arith.constant dense<0.000000e+00> : vector<8xf32>
    %26 = vector.multi_reduction <add>, %25, %cst_12 [1] : vector<8x4xf32> to vector<8xf32>
    %27 = vector.shape_cast %26 : vector<8xf32> to vector<8x1xf32>
    %28 = arith.addf %24, %27 : vector<8x1xf32>
    %cst_13 = arith.constant 1.080000e+02 : f32
    %29 = vector.broadcast %cst_13 : f32 to vector<8x1xf32>
    %30 = arith.divf %21, %29 : vector<8x1xf32>
    %cst_14 = arith.constant 1.080000e+02 : f32
    %31 = vector.broadcast %cst_14 : f32 to vector<8x1xf32>
    %32 = arith.divf %28, %31 : vector<8x1xf32>
    %33 = arith.mulf %30, %30 : vector<8x1xf32>
    %34 = arith.subf %32, %33 : vector<8x1xf32>
    %cst_15 = arith.constant 9.99999974E-6 : f32
    %35 = vector.broadcast %cst_15 : f32 to vector<8x1xf32>
    %36 = arith.addf %34, %35 : vector<8x1xf32>
    %37 = math.rsqrt %36 : vector<8x1xf32>
    %38 = vector.broadcast %30 : vector<8x1xf32> to vector<8x128xf32>
    %39 = arith.subf %16, %38 : vector<8x128xf32>
    %40 = vector.broadcast %37 : vector<8x1xf32> to vector<8x128xf32>
    %41 = arith.mulf %39, %40 : vector<8x128xf32>
    %c618 = arith.constant 618 : index
    %c0_16 = arith.constant 0 : index
    %42 = vector.load %arg1[%c618, %c0_16] : memref<632x256xf32, #tpu.memory_space<vmem>>, vector<1x128xf32>
    %43 = vector.broadcast %42 : vector<1x128xf32> to vector<8x128xf32>
    %44 = arith.mulf %41, %43 : vector<8x128xf32>
    %c619 = arith.constant 619 : index
    %c0_17 = arith.constant 0 : index
    %45 = vector.load %arg1[%c619, %c0_17] : memref<632x256xf32, #tpu.memory_space<vmem>>, vector<1x128xf32>
    %46 = vector.broadcast %45 : vector<1x128xf32> to vector<8x128xf32>
    %47 = arith.addf %44, %46 : vector<8x128xf32>
    %48 = vector.broadcast %30 : vector<8x1xf32> to vector<8x4xf32>
    %49 = arith.subf %2, %48 : vector<8x4xf32>
    %50 = vector.broadcast %37 : vector<8x1xf32> to vector<8x4xf32>
    %51 = arith.mulf %49, %50 : vector<8x4xf32>
    %c620 = arith.constant 620 : index
    %c0_18 = arith.constant 0 : index
    %52 = vector.load %arg1[%c620, %c0_18] : memref<632x256xf32, #tpu.memory_space<vmem>>, vector<1x4xf32>
    %53 = vector.broadcast %52 : vector<1x4xf32> to vector<8x4xf32>
    %54 = arith.mulf %51, %53 : vector<8x4xf32>
    %c621 = arith.constant 621 : index
    %c0_19 = arith.constant 0 : index
    %55 = vector.load %arg1[%c621, %c0_19] : memref<632x256xf32, #tpu.memory_space<vmem>>, vector<1x4xf32>
    %56 = vector.broadcast %55 : vector<1x4xf32> to vector<8x4xf32>
    %57 = arith.addf %54, %56 : vector<8x4xf32>
    %c320 = arith.constant 320 : index
    %c0_20 = arith.constant 0 : index
    %58 = vector.load %arg1[%c320, %c0_20] : memref<632x256xf32, #tpu.memory_space<vmem>>, vector<128x128xf32>
    %cst_21 = arith.constant dense<0.000000e+00> : vector<8x128xf32>
    %59 = tpu.matmul %47, %58, %cst_21 {dimension_numbers = #tpu.dot_dimension_numbers<[1], [0], [0], [1], [0, 0, 1, 1], [], []>} : vector<8x128xf32>, vector<128x128xf32>, vector<8x128xf32> -> vector<8x128xf32>
    %c448 = arith.constant 448 : index
    %c0_22 = arith.constant 0 : index
    %60 = vector.load %arg1[%c448, %c0_22] : memref<632x256xf32, #tpu.memory_space<vmem>>, vector<4x128xf32>
    %cst_23 = arith.constant dense<0.000000e+00> : vector<8x128xf32>
    %61 = tpu.matmul %57, %60, %cst_23 {dimension_numbers = #tpu.dot_dimension_numbers<[1], [0], [0], [1], [0, 0, 1, 1], [], []>} : vector<8x4xf32>, vector<4x128xf32>, vector<8x128xf32> -> vector<8x128xf32>
    %62 = arith.addf %59, %61 : vector<8x128xf32>
    %c622 = arith.constant 622 : index
    %c0_24 = arith.constant 0 : index
    %63 = vector.load %arg1[%c622, %c0_24] : memref<632x256xf32, #tpu.memory_space<vmem>>, vector<1x128xf32>
    %64 = vector.broadcast %63 : vector<1x128xf32> to vector<8x128xf32>
    %65 = arith.addf %62, %64 : vector<8x128xf32>
    %66 = vector.extract_strided_slice %65 {offsets = [0, 0], sizes = [1, 128], strides = [1, 1]} : vector<8x128xf32> to vector<1x128xf32>
    %67 = vector.extract_strided_slice %65 {offsets = [4, 0], sizes = [1, 128], strides = [1, 1]} : vector<8x128xf32> to vector<1x128xf32>
    %68 = vector.extract_strided_slice %65 {offsets = [1, 0], sizes = [1, 128], strides = [1, 1]} : vector<8x128xf32> to vector<1x128xf32>
    %69 = vector.extract_strided_slice %65 {offsets = [5, 0], sizes = [1, 128], strides = [1, 1]} : vector<8x128xf32> to vector<1x128xf32>
    %70 = vector.extract_strided_slice %65 {offsets = [2, 0], sizes = [1, 128], strides = [1, 1]} : vector<8x128xf32> to vector<1x128xf32>
    %71 = vector.extract_strided_slice %65 {offsets = [6, 0], sizes = [1, 128], strides = [1, 1]} : vector<8x128xf32> to vector<1x128xf32>
    %72 = vector.extract_strided_slice %65 {offsets = [3, 0], sizes = [1, 128], strides = [1, 1]} : vector<8x128xf32> to vector<1x128xf32>
    %73 = vector.extract_strided_slice %65 {offsets = [7, 0], sizes = [1, 128], strides = [1, 1]} : vector<8x128xf32> to vector<1x128xf32>
    %74 = tpu.concatenate %66, %67, %68, %69, %70, %71, %72, %73 in 0 : vector<1x128xf32>, vector<1x128xf32>, vector<1x128xf32>, vector<1x128xf32>, vector<1x128xf32>, vector<1x128xf32>, vector<1x128xf32>, vector<1x128xf32> -> vector<8x128xf32>
    %75 = vector.extract_strided_slice %74 {offsets = [0, 0], sizes = [8, 32], strides = [1, 1]} : vector<8x128xf32> to vector<8x32xf32>
    %76 = vector.extract_strided_slice %74 {offsets = [0, 32], sizes = [8, 32], strides = [1, 1]} : vector<8x128xf32> to vector<8x32xf32>
    %77 = vector.extract_strided_slice %74 {offsets = [0, 64], sizes = [8, 32], strides = [1, 1]} : vector<8x128xf32> to vector<8x32xf32>
    %78 = vector.extract_strided_slice %74 {offsets = [0, 96], sizes = [8, 32], strides = [1, 1]} : vector<8x128xf32> to vector<8x32xf32>
    %c456 = arith.constant 456 : index
    %c0_25 = arith.constant 0 : index
    %79 = vector.load %arg1[%c456, %c0_25] : memref<632x256xf32, #tpu.memory_space<vmem>>, vector<32x128xf32>
    %c488 = arith.constant 488 : index
    %c0_26 = arith.constant 0 : index
    %80 = vector.load %arg1[%c488, %c0_26] : memref<632x256xf32, #tpu.memory_space<vmem>>, vector<32x128xf32>
    %c520 = arith.constant 520 : index
    %c0_27 = arith.constant 0 : index
    %81 = vector.load %arg1[%c520, %c0_27] : memref<632x256xf32, #tpu.memory_space<vmem>>, vector<32x128xf32>
    %c623 = arith.constant 623 : index
    %c0_28 = arith.constant 0 : index
    %82 = vector.load %arg1[%c623, %c0_28] : memref<632x256xf32, #tpu.memory_space<vmem>>, vector<1x128xf32>
    %83 = vector.extract_strided_slice %79 {offsets = [0, 0], sizes = [32, 32], strides = [1, 1]} : vector<32x128xf32> to vector<32x32xf32>
    %84 = vector.extract_strided_slice %79 {offsets = [0, 32], sizes = [32, 32], strides = [1, 1]} : vector<32x128xf32> to vector<32x32xf32>
    %85 = vector.extract_strided_slice %79 {offsets = [0, 64], sizes = [32, 32], strides = [1, 1]} : vector<32x128xf32> to vector<32x32xf32>
    %86 = vector.extract_strided_slice %79 {offsets = [0, 96], sizes = [32, 32], strides = [1, 1]} : vector<32x128xf32> to vector<32x32xf32>
    %87 = vector.extract_strided_slice %80 {offsets = [0, 0], sizes = [32, 32], strides = [1, 1]} : vector<32x128xf32> to vector<32x32xf32>
    %88 = vector.extract_strided_slice %80 {offsets = [0, 32], sizes = [32, 32], strides = [1, 1]} : vector<32x128xf32> to vector<32x32xf32>
    %89 = vector.extract_strided_slice %80 {offsets = [0, 64], sizes = [32, 32], strides = [1, 1]} : vector<32x128xf32> to vector<32x32xf32>
    %90 = vector.extract_strided_slice %80 {offsets = [0, 96], sizes = [32, 32], strides = [1, 1]} : vector<32x128xf32> to vector<32x32xf32>
    %91 = vector.extract_strided_slice %81 {offsets = [0, 0], sizes = [32, 32], strides = [1, 1]} : vector<32x128xf32> to vector<32x32xf32>
    %92 = vector.extract_strided_slice %81 {offsets = [0, 32], sizes = [32, 32], strides = [1, 1]} : vector<32x128xf32> to vector<32x32xf32>
    %93 = vector.extract_strided_slice %81 {offsets = [0, 64], sizes = [32, 32], strides = [1, 1]} : vector<32x128xf32> to vector<32x32xf32>
    %94 = vector.extract_strided_slice %81 {offsets = [0, 96], sizes = [32, 32], strides = [1, 1]} : vector<32x128xf32> to vector<32x32xf32>
    %95 = vector.extract_strided_slice %82 {offsets = [0, 0], sizes = [1, 32], strides = [1, 1]} : vector<1x128xf32> to vector<1x32xf32>
    %96 = vector.extract_strided_slice %82 {offsets = [0, 32], sizes = [1, 32], strides = [1, 1]} : vector<1x128xf32> to vector<1x32xf32>
    %97 = vector.extract_strided_slice %82 {offsets = [0, 64], sizes = [1, 32], strides = [1, 1]} : vector<1x128xf32> to vector<1x32xf32>
    %98 = vector.extract_strided_slice %82 {offsets = [0, 96], sizes = [1, 32], strides = [1, 1]} : vector<1x128xf32> to vector<1x32xf32>
    %c0_29 = arith.constant 0 : index
    %c0_30 = arith.constant 0 : index
    %c0_31 = arith.constant 0 : index
    %99 = vector.load %arg2[%c0_29, %c0_30, %c0_31] : memref<2x2x32xf32, #tpu.memory_space<vmem>>, vector<1x2x32xf32>
    %100 = vector.shape_cast %99 : vector<1x2x32xf32> to vector<2x32xf32>
    %c0_32 = arith.constant 0 : index
    %c0_33 = arith.constant 0 : index
    %c0_34 = arith.constant 0 : index
    %101 = vector.load %arg3[%c0_32, %c0_33, %c0_34] : memref<2x2x32xf32, #tpu.memory_space<vmem>>, vector<1x2x32xf32>
    %102 = vector.shape_cast %101 : vector<1x2x32xf32> to vector<2x32xf32>
    %c1 = arith.constant 1 : index
    %c0_35 = arith.constant 0 : index
    %c0_36 = arith.constant 0 : index
    %103 = vector.load %arg2[%c1, %c0_35, %c0_36] : memref<2x2x32xf32, #tpu.memory_space<vmem>>, vector<1x2x32xf32>
    %104 = vector.shape_cast %103 : vector<1x2x32xf32> to vector<2x32xf32>
    %c1_37 = arith.constant 1 : index
    %c0_38 = arith.constant 0 : index
    %c0_39 = arith.constant 0 : index
    %105 = vector.load %arg3[%c1_37, %c0_38, %c0_39] : memref<2x2x32xf32, #tpu.memory_space<vmem>>, vector<1x2x32xf32>
    %106 = vector.shape_cast %105 : vector<1x2x32xf32> to vector<2x32xf32>
    %107 = vector.extract_strided_slice %75 {offsets = [0, 0], sizes = [2, 32], strides = [1, 1]} : vector<8x32xf32> to vector<2x32xf32>
    %cst_40 = arith.constant dense<0.000000e+00> : vector<2x32xf32>
    %108 = tpu.matmul %100, %83, %cst_40 {dimension_numbers = #tpu.dot_dimension_numbers<[1], [0], [0], [1], [0, 0, 1, 1], [], []>} : vector<2x32xf32>, vector<32x32xf32>, vector<2x32xf32> -> vector<2x32xf32>
    %109 = arith.addf %107, %108 : vector<2x32xf32>
    %110 = arith.negf %109 : vector<2x32xf32>
    %111 = math.exp %110 : vector<2x32xf32>
    %cst_41 = arith.constant 1.000000e+00 : f32
    %112 = vector.broadcast %cst_41 : f32 to vector<2x32xf32>
    %113 = arith.addf %112, %111 : vector<2x32xf32>
    %114 = arith.divf %112, %113 : vector<2x32xf32>
    %115 = vector.extract_strided_slice %76 {offsets = [0, 0], sizes = [2, 32], strides = [1, 1]} : vector<8x32xf32> to vector<2x32xf32>
    %cst_42 = arith.constant dense<0.000000e+00> : vector<2x32xf32>
    %116 = tpu.matmul %100, %84, %cst_42 {dimension_numbers = #tpu.dot_dimension_numbers<[1], [0], [0], [1], [0, 0, 1, 1], [], []>} : vector<2x32xf32>, vector<32x32xf32>, vector<2x32xf32> -> vector<2x32xf32>
    %117 = arith.addf %115, %116 : vector<2x32xf32>
    %118 = arith.negf %117 : vector<2x32xf32>
    %119 = math.exp %118 : vector<2x32xf32>
    %cst_43 = arith.constant 1.000000e+00 : f32
    %120 = vector.broadcast %cst_43 : f32 to vector<2x32xf32>
    %121 = arith.addf %120, %119 : vector<2x32xf32>
    %122 = arith.divf %120, %121 : vector<2x32xf32>
    %123 = vector.extract_strided_slice %77 {offsets = [0, 0], sizes = [2, 32], strides = [1, 1]} : vector<8x32xf32> to vector<2x32xf32>
    %cst_44 = arith.constant dense<0.000000e+00> : vector<2x32xf32>
    %124 = tpu.matmul %100, %85, %cst_44 {dimension_numbers = #tpu.dot_dimension_numbers<[1], [0], [0], [1], [0, 0, 1, 1], [], []>} : vector<2x32xf32>, vector<32x32xf32>, vector<2x32xf32> -> vector<2x32xf32>
    %125 = arith.addf %123, %124 : vector<2x32xf32>
    %126 = math.tanh %125 : vector<2x32xf32>
    %127 = vector.extract_strided_slice %78 {offsets = [0, 0], sizes = [2, 32], strides = [1, 1]} : vector<8x32xf32> to vector<2x32xf32>
    %cst_45 = arith.constant dense<0.000000e+00> : vector<2x32xf32>
    %128 = tpu.matmul %100, %86, %cst_45 {dimension_numbers = #tpu.dot_dimension_numbers<[1], [0], [0], [1], [0, 0, 1, 1], [], []>} : vector<2x32xf32>, vector<32x32xf32>, vector<2x32xf32> -> vector<2x32xf32>
    %129 = arith.addf %127, %128 : vector<2x32xf32>
    %130 = arith.negf %129 : vector<2x32xf32>
    %131 = math.exp %130 : vector<2x32xf32>
    %cst_46 = arith.constant 1.000000e+00 : f32
    %132 = vector.broadcast %cst_46 : f32 to vector<2x32xf32>
    %133 = arith.addf %132, %131 : vector<2x32xf32>
    %134 = arith.divf %132, %133 : vector<2x32xf32>
    %135 = arith.mulf %122, %102 : vector<2x32xf32>
    %136 = arith.mulf %114, %126 : vector<2x32xf32>
    %137 = arith.addf %135, %136 : vector<2x32xf32>
    %138 = math.tanh %137 : vector<2x32xf32>
    %139 = arith.mulf %134, %138 : vector<2x32xf32>
    %cst_47 = arith.constant dense<0.000000e+00> : vector<2x32xf32>
    %140 = tpu.matmul %139, %87, %cst_47 {dimension_numbers = #tpu.dot_dimension_numbers<[1], [0], [0], [1], [0, 0, 1, 1], [], []>} : vector<2x32xf32>, vector<32x32xf32>, vector<2x32xf32> -> vector<2x32xf32>
    %141 = vector.broadcast %95 : vector<1x32xf32> to vector<2x32xf32>
    %142 = arith.addf %141, %140 : vector<2x32xf32>
    %cst_48 = arith.constant dense<0.000000e+00> : vector<2x32xf32>
    %143 = tpu.matmul %104, %91, %cst_48 {dimension_numbers = #tpu.dot_dimension_numbers<[1], [0], [0], [1], [0, 0, 1, 1], [], []>} : vector<2x32xf32>, vector<32x32xf32>, vector<2x32xf32> -> vector<2x32xf32>
    %144 = arith.addf %142, %143 : vector<2x32xf32>
    %145 = arith.negf %144 : vector<2x32xf32>
    %146 = math.exp %145 : vector<2x32xf32>
    %cst_49 = arith.constant 1.000000e+00 : f32
    %147 = vector.broadcast %cst_49 : f32 to vector<2x32xf32>
    %148 = arith.addf %147, %146 : vector<2x32xf32>
    %149 = arith.divf %147, %148 : vector<2x32xf32>
    %cst_50 = arith.constant dense<0.000000e+00> : vector<2x32xf32>
    %150 = tpu.matmul %139, %88, %cst_50 {dimension_numbers = #tpu.dot_dimension_numbers<[1], [0], [0], [1], [0, 0, 1, 1], [], []>} : vector<2x32xf32>, vector<32x32xf32>, vector<2x32xf32> -> vector<2x32xf32>
    %151 = vector.broadcast %96 : vector<1x32xf32> to vector<2x32xf32>
    %152 = arith.addf %151, %150 : vector<2x32xf32>
    %cst_51 = arith.constant dense<0.000000e+00> : vector<2x32xf32>
    %153 = tpu.matmul %104, %92, %cst_51 {dimension_numbers = #tpu.dot_dimension_numbers<[1], [0], [0], [1], [0, 0, 1, 1], [], []>} : vector<2x32xf32>, vector<32x32xf32>, vector<2x32xf32> -> vector<2x32xf32>
    %154 = arith.addf %152, %153 : vector<2x32xf32>
    %155 = arith.negf %154 : vector<2x32xf32>
    %156 = math.exp %155 : vector<2x32xf32>
    %cst_52 = arith.constant 1.000000e+00 : f32
    %157 = vector.broadcast %cst_52 : f32 to vector<2x32xf32>
    %158 = arith.addf %157, %156 : vector<2x32xf32>
    %159 = arith.divf %157, %158 : vector<2x32xf32>
    %cst_53 = arith.constant dense<0.000000e+00> : vector<2x32xf32>
    %160 = tpu.matmul %139, %89, %cst_53 {dimension_numbers = #tpu.dot_dimension_numbers<[1], [0], [0], [1], [0, 0, 1, 1], [], []>} : vector<2x32xf32>, vector<32x32xf32>, vector<2x32xf32> -> vector<2x32xf32>
    %161 = vector.broadcast %97 : vector<1x32xf32> to vector<2x32xf32>
    %162 = arith.addf %161, %160 : vector<2x32xf32>
    %cst_54 = arith.constant dense<0.000000e+00> : vector<2x32xf32>
    %163 = tpu.matmul %104, %93, %cst_54 {dimension_numbers = #tpu.dot_dimension_numbers<[1], [0], [0], [1], [0, 0, 1, 1], [], []>} : vector<2x32xf32>, vector<32x32xf32>, vector<2x32xf32> -> vector<2x32xf32>
    %164 = arith.addf %162, %163 : vector<2x32xf32>
    %165 = math.tanh %164 : vector<2x32xf32>
    %cst_55 = arith.constant dense<0.000000e+00> : vector<2x32xf32>
    %166 = tpu.matmul %139, %90, %cst_55 {dimension_numbers = #tpu.dot_dimension_numbers<[1], [0], [0], [1], [0, 0, 1, 1], [], []>} : vector<2x32xf32>, vector<32x32xf32>, vector<2x32xf32> -> vector<2x32xf32>
    %167 = vector.broadcast %98 : vector<1x32xf32> to vector<2x32xf32>
    %168 = arith.addf %167, %166 : vector<2x32xf32>
    %cst_56 = arith.constant dense<0.000000e+00> : vector<2x32xf32>
    %169 = tpu.matmul %104, %94, %cst_56 {dimension_numbers = #tpu.dot_dimension_numbers<[1], [0], [0], [1], [0, 0, 1, 1], [], []>} : vector<2x32xf32>, vector<32x32xf32>, vector<2x32xf32> -> vector<2x32xf32>
    %170 = arith.addf %168, %169 : vector<2x32xf32>
    %171 = arith.negf %170 : vector<2x32xf32>
    %172 = math.exp %171 : vector<2x32xf32>
    %cst_57 = arith.constant 1.000000e+00 : f32
    %173 = vector.broadcast %cst_57 : f32 to vector<2x32xf32>
    %174 = arith.addf %173, %172 : vector<2x32xf32>
    %175 = arith.divf %173, %174 : vector<2x32xf32>
    %176 = arith.mulf %159, %106 : vector<2x32xf32>
    %177 = arith.mulf %149, %165 : vector<2x32xf32>
    %178 = arith.addf %176, %177 : vector<2x32xf32>
    %179 = math.tanh %178 : vector<2x32xf32>
    %180 = arith.mulf %175, %179 : vector<2x32xf32>
    %181 = vector.extract_strided_slice %75 {offsets = [2, 0], sizes = [2, 32], strides = [1, 1]} : vector<8x32xf32> to vector<2x32xf32>
    %cst_58 = arith.constant dense<0.000000e+00> : vector<2x32xf32>
    %182 = tpu.matmul %139, %83, %cst_58 {dimension_numbers = #tpu.dot_dimension_numbers<[1], [0], [0], [1], [0, 0, 1, 1], [], []>} : vector<2x32xf32>, vector<32x32xf32>, vector<2x32xf32> -> vector<2x32xf32>
    %183 = arith.addf %181, %182 : vector<2x32xf32>
    %184 = arith.negf %183 : vector<2x32xf32>
    %185 = math.exp %184 : vector<2x32xf32>
    %cst_59 = arith.constant 1.000000e+00 : f32
    %186 = vector.broadcast %cst_59 : f32 to vector<2x32xf32>
    %187 = arith.addf %186, %185 : vector<2x32xf32>
    %188 = arith.divf %186, %187 : vector<2x32xf32>
    %189 = vector.extract_strided_slice %76 {offsets = [2, 0], sizes = [2, 32], strides = [1, 1]} : vector<8x32xf32> to vector<2x32xf32>
    %cst_60 = arith.constant dense<0.000000e+00> : vector<2x32xf32>
    %190 = tpu.matmul %139, %84, %cst_60 {dimension_numbers = #tpu.dot_dimension_numbers<[1], [0], [0], [1], [0, 0, 1, 1], [], []>} : vector<2x32xf32>, vector<32x32xf32>, vector<2x32xf32> -> vector<2x32xf32>
    %191 = arith.addf %189, %190 : vector<2x32xf32>
    %192 = arith.negf %191 : vector<2x32xf32>
    %193 = math.exp %192 : vector<2x32xf32>
    %cst_61 = arith.constant 1.000000e+00 : f32
    %194 = vector.broadcast %cst_61 : f32 to vector<2x32xf32>
    %195 = arith.addf %194, %193 : vector<2x32xf32>
    %196 = arith.divf %194, %195 : vector<2x32xf32>
    %197 = vector.extract_strided_slice %77 {offsets = [2, 0], sizes = [2, 32], strides = [1, 1]} : vector<8x32xf32> to vector<2x32xf32>
    %cst_62 = arith.constant dense<0.000000e+00> : vector<2x32xf32>
    %198 = tpu.matmul %139, %85, %cst_62 {dimension_numbers = #tpu.dot_dimension_numbers<[1], [0], [0], [1], [0, 0, 1, 1], [], []>} : vector<2x32xf32>, vector<32x32xf32>, vector<2x32xf32> -> vector<2x32xf32>
    %199 = arith.addf %197, %198 : vector<2x32xf32>
    %200 = math.tanh %199 : vector<2x32xf32>
    %201 = vector.extract_strided_slice %78 {offsets = [2, 0], sizes = [2, 32], strides = [1, 1]} : vector<8x32xf32> to vector<2x32xf32>
    %cst_63 = arith.constant dense<0.000000e+00> : vector<2x32xf32>
    %202 = tpu.matmul %139, %86, %cst_63 {dimension_numbers = #tpu.dot_dimension_numbers<[1], [0], [0], [1], [0, 0, 1, 1], [], []>} : vector<2x32xf32>, vector<32x32xf32>, vector<2x32xf32> -> vector<2x32xf32>
    %203 = arith.addf %201, %202 : vector<2x32xf32>
    %204 = arith.negf %203 : vector<2x32xf32>
    %205 = math.exp %204 : vector<2x32xf32>
    %cst_64 = arith.constant 1.000000e+00 : f32
    %206 = vector.broadcast %cst_64 : f32 to vector<2x32xf32>
    %207 = arith.addf %206, %205 : vector<2x32xf32>
    %208 = arith.divf %206, %207 : vector<2x32xf32>
    %209 = arith.mulf %196, %137 : vector<2x32xf32>
    %210 = arith.mulf %188, %200 : vector<2x32xf32>
    %211 = arith.addf %209, %210 : vector<2x32xf32>
    %212 = math.tanh %211 : vector<2x32xf32>
    %213 = arith.mulf %208, %212 : vector<2x32xf32>
    %cst_65 = arith.constant dense<0.000000e+00> : vector<2x32xf32>
    %214 = tpu.matmul %213, %87, %cst_65 {dimension_numbers = #tpu.dot_dimension_numbers<[1], [0], [0], [1], [0, 0, 1, 1], [], []>} : vector<2x32xf32>, vector<32x32xf32>, vector<2x32xf32> -> vector<2x32xf32>
    %215 = vector.broadcast %95 : vector<1x32xf32> to vector<2x32xf32>
    %216 = arith.addf %215, %214 : vector<2x32xf32>
    %cst_66 = arith.constant dense<0.000000e+00> : vector<2x32xf32>
    %217 = tpu.matmul %180, %91, %cst_66 {dimension_numbers = #tpu.dot_dimension_numbers<[1], [0], [0], [1], [0, 0, 1, 1], [], []>} : vector<2x32xf32>, vector<32x32xf32>, vector<2x32xf32> -> vector<2x32xf32>
    %218 = arith.addf %216, %217 : vector<2x32xf32>
    %219 = arith.negf %218 : vector<2x32xf32>
    %220 = math.exp %219 : vector<2x32xf32>
    %cst_67 = arith.constant 1.000000e+00 : f32
    %221 = vector.broadcast %cst_67 : f32 to vector<2x32xf32>
    %222 = arith.addf %221, %220 : vector<2x32xf32>
    %223 = arith.divf %221, %222 : vector<2x32xf32>
    %cst_68 = arith.constant dense<0.000000e+00> : vector<2x32xf32>
    %224 = tpu.matmul %213, %88, %cst_68 {dimension_numbers = #tpu.dot_dimension_numbers<[1], [0], [0], [1], [0, 0, 1, 1], [], []>} : vector<2x32xf32>, vector<32x32xf32>, vector<2x32xf32> -> vector<2x32xf32>
    %225 = vector.broadcast %96 : vector<1x32xf32> to vector<2x32xf32>
    %226 = arith.addf %225, %224 : vector<2x32xf32>
    %cst_69 = arith.constant dense<0.000000e+00> : vector<2x32xf32>
    %227 = tpu.matmul %180, %92, %cst_69 {dimension_numbers = #tpu.dot_dimension_numbers<[1], [0], [0], [1], [0, 0, 1, 1], [], []>} : vector<2x32xf32>, vector<32x32xf32>, vector<2x32xf32> -> vector<2x32xf32>
    %228 = arith.addf %226, %227 : vector<2x32xf32>
    %229 = arith.negf %228 : vector<2x32xf32>
    %230 = math.exp %229 : vector<2x32xf32>
    %cst_70 = arith.constant 1.000000e+00 : f32
    %231 = vector.broadcast %cst_70 : f32 to vector<2x32xf32>
    %232 = arith.addf %231, %230 : vector<2x32xf32>
    %233 = arith.divf %231, %232 : vector<2x32xf32>
    %cst_71 = arith.constant dense<0.000000e+00> : vector<2x32xf32>
    %234 = tpu.matmul %213, %89, %cst_71 {dimension_numbers = #tpu.dot_dimension_numbers<[1], [0], [0], [1], [0, 0, 1, 1], [], []>} : vector<2x32xf32>, vector<32x32xf32>, vector<2x32xf32> -> vector<2x32xf32>
    %235 = vector.broadcast %97 : vector<1x32xf32> to vector<2x32xf32>
    %236 = arith.addf %235, %234 : vector<2x32xf32>
    %cst_72 = arith.constant dense<0.000000e+00> : vector<2x32xf32>
    %237 = tpu.matmul %180, %93, %cst_72 {dimension_numbers = #tpu.dot_dimension_numbers<[1], [0], [0], [1], [0, 0, 1, 1], [], []>} : vector<2x32xf32>, vector<32x32xf32>, vector<2x32xf32> -> vector<2x32xf32>
    %238 = arith.addf %236, %237 : vector<2x32xf32>
    %239 = math.tanh %238 : vector<2x32xf32>
    %cst_73 = arith.constant dense<0.000000e+00> : vector<2x32xf32>
    %240 = tpu.matmul %213, %90, %cst_73 {dimension_numbers = #tpu.dot_dimension_numbers<[1], [0], [0], [1], [0, 0, 1, 1], [], []>} : vector<2x32xf32>, vector<32x32xf32>, vector<2x32xf32> -> vector<2x32xf32>
    %241 = vector.broadcast %98 : vector<1x32xf32> to vector<2x32xf32>
    %242 = arith.addf %241, %240 : vector<2x32xf32>
    %cst_74 = arith.constant dense<0.000000e+00> : vector<2x32xf32>
    %243 = tpu.matmul %180, %94, %cst_74 {dimension_numbers = #tpu.dot_dimension_numbers<[1], [0], [0], [1], [0, 0, 1, 1], [], []>} : vector<2x32xf32>, vector<32x32xf32>, vector<2x32xf32> -> vector<2x32xf32>
    %244 = arith.addf %242, %243 : vector<2x32xf32>
    %245 = arith.negf %244 : vector<2x32xf32>
    %246 = math.exp %245 : vector<2x32xf32>
    %cst_75 = arith.constant 1.000000e+00 : f32
    %247 = vector.broadcast %cst_75 : f32 to vector<2x32xf32>
    %248 = arith.addf %247, %246 : vector<2x32xf32>
    %249 = arith.divf %247, %248 : vector<2x32xf32>
    %250 = arith.mulf %233, %178 : vector<2x32xf32>
    %251 = arith.mulf %223, %239 : vector<2x32xf32>
    %252 = arith.addf %250, %251 : vector<2x32xf32>
    %253 = math.tanh %252 : vector<2x32xf32>
    %254 = arith.mulf %249, %253 : vector<2x32xf32>
    %255 = vector.extract_strided_slice %75 {offsets = [4, 0], sizes = [2, 32], strides = [1, 1]} : vector<8x32xf32> to vector<2x32xf32>
    %cst_76 = arith.constant dense<0.000000e+00> : vector<2x32xf32>
    %256 = tpu.matmul %213, %83, %cst_76 {dimension_numbers = #tpu.dot_dimension_numbers<[1], [0], [0], [1], [0, 0, 1, 1], [], []>} : vector<2x32xf32>, vector<32x32xf32>, vector<2x32xf32> -> vector<2x32xf32>
    %257 = arith.addf %255, %256 : vector<2x32xf32>
    %258 = arith.negf %257 : vector<2x32xf32>
    %259 = math.exp %258 : vector<2x32xf32>
    %cst_77 = arith.constant 1.000000e+00 : f32
    %260 = vector.broadcast %cst_77 : f32 to vector<2x32xf32>
    %261 = arith.addf %260, %259 : vector<2x32xf32>
    %262 = arith.divf %260, %261 : vector<2x32xf32>
    %263 = vector.extract_strided_slice %76 {offsets = [4, 0], sizes = [2, 32], strides = [1, 1]} : vector<8x32xf32> to vector<2x32xf32>
    %cst_78 = arith.constant dense<0.000000e+00> : vector<2x32xf32>
    %264 = tpu.matmul %213, %84, %cst_78 {dimension_numbers = #tpu.dot_dimension_numbers<[1], [0], [0], [1], [0, 0, 1, 1], [], []>} : vector<2x32xf32>, vector<32x32xf32>, vector<2x32xf32> -> vector<2x32xf32>
    %265 = arith.addf %263, %264 : vector<2x32xf32>
    %266 = arith.negf %265 : vector<2x32xf32>
    %267 = math.exp %266 : vector<2x32xf32>
    %cst_79 = arith.constant 1.000000e+00 : f32
    %268 = vector.broadcast %cst_79 : f32 to vector<2x32xf32>
    %269 = arith.addf %268, %267 : vector<2x32xf32>
    %270 = arith.divf %268, %269 : vector<2x32xf32>
    %271 = vector.extract_strided_slice %77 {offsets = [4, 0], sizes = [2, 32], strides = [1, 1]} : vector<8x32xf32> to vector<2x32xf32>
    %cst_80 = arith.constant dense<0.000000e+00> : vector<2x32xf32>
    %272 = tpu.matmul %213, %85, %cst_80 {dimension_numbers = #tpu.dot_dimension_numbers<[1], [0], [0], [1], [0, 0, 1, 1], [], []>} : vector<2x32xf32>, vector<32x32xf32>, vector<2x32xf32> -> vector<2x32xf32>
    %273 = arith.addf %271, %272 : vector<2x32xf32>
    %274 = math.tanh %273 : vector<2x32xf32>
    %275 = vector.extract_strided_slice %78 {offsets = [4, 0], sizes = [2, 32], strides = [1, 1]} : vector<8x32xf32> to vector<2x32xf32>
    %cst_81 = arith.constant dense<0.000000e+00> : vector<2x32xf32>
    %276 = tpu.matmul %213, %86, %cst_81 {dimension_numbers = #tpu.dot_dimension_numbers<[1], [0], [0], [1], [0, 0, 1, 1], [], []>} : vector<2x32xf32>, vector<32x32xf32>, vector<2x32xf32> -> vector<2x32xf32>
    %277 = arith.addf %275, %276 : vector<2x32xf32>
    %278 = arith.negf %277 : vector<2x32xf32>
    %279 = math.exp %278 : vector<2x32xf32>
    %cst_82 = arith.constant 1.000000e+00 : f32
    %280 = vector.broadcast %cst_82 : f32 to vector<2x32xf32>
    %281 = arith.addf %280, %279 : vector<2x32xf32>
    %282 = arith.divf %280, %281 : vector<2x32xf32>
    %283 = arith.mulf %270, %211 : vector<2x32xf32>
    %284 = arith.mulf %262, %274 : vector<2x32xf32>
    %285 = arith.addf %283, %284 : vector<2x32xf32>
    %286 = math.tanh %285 : vector<2x32xf32>
    %287 = arith.mulf %282, %286 : vector<2x32xf32>
    %cst_83 = arith.constant dense<0.000000e+00> : vector<2x32xf32>
    %288 = tpu.matmul %287, %87, %cst_83 {dimension_numbers = #tpu.dot_dimension_numbers<[1], [0], [0], [1], [0, 0, 1, 1], [], []>} : vector<2x32xf32>, vector<32x32xf32>, vector<2x32xf32> -> vector<2x32xf32>
    %289 = vector.broadcast %95 : vector<1x32xf32> to vector<2x32xf32>
    %290 = arith.addf %289, %288 : vector<2x32xf32>
    %cst_84 = arith.constant dense<0.000000e+00> : vector<2x32xf32>
    %291 = tpu.matmul %254, %91, %cst_84 {dimension_numbers = #tpu.dot_dimension_numbers<[1], [0], [0], [1], [0, 0, 1, 1], [], []>} : vector<2x32xf32>, vector<32x32xf32>, vector<2x32xf32> -> vector<2x32xf32>
    %292 = arith.addf %290, %291 : vector<2x32xf32>
    %293 = arith.negf %292 : vector<2x32xf32>
    %294 = math.exp %293 : vector<2x32xf32>
    %cst_85 = arith.constant 1.000000e+00 : f32
    %295 = vector.broadcast %cst_85 : f32 to vector<2x32xf32>
    %296 = arith.addf %295, %294 : vector<2x32xf32>
    %297 = arith.divf %295, %296 : vector<2x32xf32>
    %cst_86 = arith.constant dense<0.000000e+00> : vector<2x32xf32>
    %298 = tpu.matmul %287, %88, %cst_86 {dimension_numbers = #tpu.dot_dimension_numbers<[1], [0], [0], [1], [0, 0, 1, 1], [], []>} : vector<2x32xf32>, vector<32x32xf32>, vector<2x32xf32> -> vector<2x32xf32>
    %299 = vector.broadcast %96 : vector<1x32xf32> to vector<2x32xf32>
    %300 = arith.addf %299, %298 : vector<2x32xf32>
    %cst_87 = arith.constant dense<0.000000e+00> : vector<2x32xf32>
    %301 = tpu.matmul %254, %92, %cst_87 {dimension_numbers = #tpu.dot_dimension_numbers<[1], [0], [0], [1], [0, 0, 1, 1], [], []>} : vector<2x32xf32>, vector<32x32xf32>, vector<2x32xf32> -> vector<2x32xf32>
    %302 = arith.addf %300, %301 : vector<2x32xf32>
    %303 = arith.negf %302 : vector<2x32xf32>
    %304 = math.exp %303 : vector<2x32xf32>
    %cst_88 = arith.constant 1.000000e+00 : f32
    %305 = vector.broadcast %cst_88 : f32 to vector<2x32xf32>
    %306 = arith.addf %305, %304 : vector<2x32xf32>
    %307 = arith.divf %305, %306 : vector<2x32xf32>
    %cst_89 = arith.constant dense<0.000000e+00> : vector<2x32xf32>
    %308 = tpu.matmul %287, %89, %cst_89 {dimension_numbers = #tpu.dot_dimension_numbers<[1], [0], [0], [1], [0, 0, 1, 1], [], []>} : vector<2x32xf32>, vector<32x32xf32>, vector<2x32xf32> -> vector<2x32xf32>
    %309 = vector.broadcast %97 : vector<1x32xf32> to vector<2x32xf32>
    %310 = arith.addf %309, %308 : vector<2x32xf32>
    %cst_90 = arith.constant dense<0.000000e+00> : vector<2x32xf32>
    %311 = tpu.matmul %254, %93, %cst_90 {dimension_numbers = #tpu.dot_dimension_numbers<[1], [0], [0], [1], [0, 0, 1, 1], [], []>} : vector<2x32xf32>, vector<32x32xf32>, vector<2x32xf32> -> vector<2x32xf32>
    %312 = arith.addf %310, %311 : vector<2x32xf32>
    %313 = math.tanh %312 : vector<2x32xf32>
    %cst_91 = arith.constant dense<0.000000e+00> : vector<2x32xf32>
    %314 = tpu.matmul %287, %90, %cst_91 {dimension_numbers = #tpu.dot_dimension_numbers<[1], [0], [0], [1], [0, 0, 1, 1], [], []>} : vector<2x32xf32>, vector<32x32xf32>, vector<2x32xf32> -> vector<2x32xf32>
    %315 = vector.broadcast %98 : vector<1x32xf32> to vector<2x32xf32>
    %316 = arith.addf %315, %314 : vector<2x32xf32>
    %cst_92 = arith.constant dense<0.000000e+00> : vector<2x32xf32>
    %317 = tpu.matmul %254, %94, %cst_92 {dimension_numbers = #tpu.dot_dimension_numbers<[1], [0], [0], [1], [0, 0, 1, 1], [], []>} : vector<2x32xf32>, vector<32x32xf32>, vector<2x32xf32> -> vector<2x32xf32>
    %318 = arith.addf %316, %317 : vector<2x32xf32>
    %319 = arith.negf %318 : vector<2x32xf32>
    %320 = math.exp %319 : vector<2x32xf32>
    %cst_93 = arith.constant 1.000000e+00 : f32
    %321 = vector.broadcast %cst_93 : f32 to vector<2x32xf32>
    %322 = arith.addf %321, %320 : vector<2x32xf32>
    %323 = arith.divf %321, %322 : vector<2x32xf32>
    %324 = arith.mulf %307, %252 : vector<2x32xf32>
    %325 = arith.mulf %297, %313 : vector<2x32xf32>
    %326 = arith.addf %324, %325 : vector<2x32xf32>
    %327 = math.tanh %326 : vector<2x32xf32>
    %328 = arith.mulf %323, %327 : vector<2x32xf32>
    %329 = vector.extract_strided_slice %75 {offsets = [6, 0], sizes = [2, 32], strides = [1, 1]} : vector<8x32xf32> to vector<2x32xf32>
    %cst_94 = arith.constant dense<0.000000e+00> : vector<2x32xf32>
    %330 = tpu.matmul %287, %83, %cst_94 {dimension_numbers = #tpu.dot_dimension_numbers<[1], [0], [0], [1], [0, 0, 1, 1], [], []>} : vector<2x32xf32>, vector<32x32xf32>, vector<2x32xf32> -> vector<2x32xf32>
    %331 = arith.addf %329, %330 : vector<2x32xf32>
    %332 = arith.negf %331 : vector<2x32xf32>
    %333 = math.exp %332 : vector<2x32xf32>
    %cst_95 = arith.constant 1.000000e+00 : f32
    %334 = vector.broadcast %cst_95 : f32 to vector<2x32xf32>
    %335 = arith.addf %334, %333 : vector<2x32xf32>
    %336 = arith.divf %334, %335 : vector<2x32xf32>
    %337 = vector.extract_strided_slice %76 {offsets = [6, 0], sizes = [2, 32], strides = [1, 1]} : vector<8x32xf32> to vector<2x32xf32>
    %cst_96 = arith.constant dense<0.000000e+00> : vector<2x32xf32>
    %338 = tpu.matmul %287, %84, %cst_96 {dimension_numbers = #tpu.dot_dimension_numbers<[1], [0], [0], [1], [0, 0, 1, 1], [], []>} : vector<2x32xf32>, vector<32x32xf32>, vector<2x32xf32> -> vector<2x32xf32>
    %339 = arith.addf %337, %338 : vector<2x32xf32>
    %340 = arith.negf %339 : vector<2x32xf32>
    %341 = math.exp %340 : vector<2x32xf32>
    %cst_97 = arith.constant 1.000000e+00 : f32
    %342 = vector.broadcast %cst_97 : f32 to vector<2x32xf32>
    %343 = arith.addf %342, %341 : vector<2x32xf32>
    %344 = arith.divf %342, %343 : vector<2x32xf32>
    %345 = vector.extract_strided_slice %77 {offsets = [6, 0], sizes = [2, 32], strides = [1, 1]} : vector<8x32xf32> to vector<2x32xf32>
    %cst_98 = arith.constant dense<0.000000e+00> : vector<2x32xf32>
    %346 = tpu.matmul %287, %85, %cst_98 {dimension_numbers = #tpu.dot_dimension_numbers<[1], [0], [0], [1], [0, 0, 1, 1], [], []>} : vector<2x32xf32>, vector<32x32xf32>, vector<2x32xf32> -> vector<2x32xf32>
    %347 = arith.addf %345, %346 : vector<2x32xf32>
    %348 = math.tanh %347 : vector<2x32xf32>
    %349 = vector.extract_strided_slice %78 {offsets = [6, 0], sizes = [2, 32], strides = [1, 1]} : vector<8x32xf32> to vector<2x32xf32>
    %cst_99 = arith.constant dense<0.000000e+00> : vector<2x32xf32>
    %350 = tpu.matmul %287, %86, %cst_99 {dimension_numbers = #tpu.dot_dimension_numbers<[1], [0], [0], [1], [0, 0, 1, 1], [], []>} : vector<2x32xf32>, vector<32x32xf32>, vector<2x32xf32> -> vector<2x32xf32>
    %351 = arith.addf %349, %350 : vector<2x32xf32>
    %352 = arith.negf %351 : vector<2x32xf32>
    %353 = math.exp %352 : vector<2x32xf32>
    %cst_100 = arith.constant 1.000000e+00 : f32
    %354 = vector.broadcast %cst_100 : f32 to vector<2x32xf32>
    %355 = arith.addf %354, %353 : vector<2x32xf32>
    %356 = arith.divf %354, %355 : vector<2x32xf32>
    %357 = arith.mulf %344, %285 : vector<2x32xf32>
    %358 = arith.mulf %336, %348 : vector<2x32xf32>
    %359 = arith.addf %357, %358 : vector<2x32xf32>
    %360 = math.tanh %359 : vector<2x32xf32>
    %361 = arith.mulf %356, %360 : vector<2x32xf32>
    %cst_101 = arith.constant dense<0.000000e+00> : vector<2x32xf32>
    %362 = tpu.matmul %361, %87, %cst_101 {dimension_numbers = #tpu.dot_dimension_numbers<[1], [0], [0], [1], [0, 0, 1, 1], [], []>} : vector<2x32xf32>, vector<32x32xf32>, vector<2x32xf32> -> vector<2x32xf32>
    %363 = vector.broadcast %95 : vector<1x32xf32> to vector<2x32xf32>
    %364 = arith.addf %363, %362 : vector<2x32xf32>
    %cst_102 = arith.constant dense<0.000000e+00> : vector<2x32xf32>
    %365 = tpu.matmul %328, %91, %cst_102 {dimension_numbers = #tpu.dot_dimension_numbers<[1], [0], [0], [1], [0, 0, 1, 1], [], []>} : vector<2x32xf32>, vector<32x32xf32>, vector<2x32xf32> -> vector<2x32xf32>
    %366 = arith.addf %364, %365 : vector<2x32xf32>
    %367 = arith.negf %366 : vector<2x32xf32>
    %368 = math.exp %367 : vector<2x32xf32>
    %cst_103 = arith.constant 1.000000e+00 : f32
    %369 = vector.broadcast %cst_103 : f32 to vector<2x32xf32>
    %370 = arith.addf %369, %368 : vector<2x32xf32>
    %371 = arith.divf %369, %370 : vector<2x32xf32>
    %cst_104 = arith.constant dense<0.000000e+00> : vector<2x32xf32>
    %372 = tpu.matmul %361, %88, %cst_104 {dimension_numbers = #tpu.dot_dimension_numbers<[1], [0], [0], [1], [0, 0, 1, 1], [], []>} : vector<2x32xf32>, vector<32x32xf32>, vector<2x32xf32> -> vector<2x32xf32>
    %373 = vector.broadcast %96 : vector<1x32xf32> to vector<2x32xf32>
    %374 = arith.addf %373, %372 : vector<2x32xf32>
    %cst_105 = arith.constant dense<0.000000e+00> : vector<2x32xf32>
    %375 = tpu.matmul %328, %92, %cst_105 {dimension_numbers = #tpu.dot_dimension_numbers<[1], [0], [0], [1], [0, 0, 1, 1], [], []>} : vector<2x32xf32>, vector<32x32xf32>, vector<2x32xf32> -> vector<2x32xf32>
    %376 = arith.addf %374, %375 : vector<2x32xf32>
    %377 = arith.negf %376 : vector<2x32xf32>
    %378 = math.exp %377 : vector<2x32xf32>
    %cst_106 = arith.constant 1.000000e+00 : f32
    %379 = vector.broadcast %cst_106 : f32 to vector<2x32xf32>
    %380 = arith.addf %379, %378 : vector<2x32xf32>
    %381 = arith.divf %379, %380 : vector<2x32xf32>
    %cst_107 = arith.constant dense<0.000000e+00> : vector<2x32xf32>
    %382 = tpu.matmul %361, %89, %cst_107 {dimension_numbers = #tpu.dot_dimension_numbers<[1], [0], [0], [1], [0, 0, 1, 1], [], []>} : vector<2x32xf32>, vector<32x32xf32>, vector<2x32xf32> -> vector<2x32xf32>
    %383 = vector.broadcast %97 : vector<1x32xf32> to vector<2x32xf32>
    %384 = arith.addf %383, %382 : vector<2x32xf32>
    %cst_108 = arith.constant dense<0.000000e+00> : vector<2x32xf32>
    %385 = tpu.matmul %328, %93, %cst_108 {dimension_numbers = #tpu.dot_dimension_numbers<[1], [0], [0], [1], [0, 0, 1, 1], [], []>} : vector<2x32xf32>, vector<32x32xf32>, vector<2x32xf32> -> vector<2x32xf32>
    %386 = arith.addf %384, %385 : vector<2x32xf32>
    %387 = math.tanh %386 : vector<2x32xf32>
    %cst_109 = arith.constant dense<0.000000e+00> : vector<2x32xf32>
    %388 = tpu.matmul %361, %90, %cst_109 {dimension_numbers = #tpu.dot_dimension_numbers<[1], [0], [0], [1], [0, 0, 1, 1], [], []>} : vector<2x32xf32>, vector<32x32xf32>, vector<2x32xf32> -> vector<2x32xf32>
    %389 = vector.broadcast %98 : vector<1x32xf32> to vector<2x32xf32>
    %390 = arith.addf %389, %388 : vector<2x32xf32>
    %cst_110 = arith.constant dense<0.000000e+00> : vector<2x32xf32>
    %391 = tpu.matmul %328, %94, %cst_110 {dimension_numbers = #tpu.dot_dimension_numbers<[1], [0], [0], [1], [0, 0, 1, 1], [], []>} : vector<2x32xf32>, vector<32x32xf32>, vector<2x32xf32> -> vector<2x32xf32>
    %392 = arith.addf %390, %391 : vector<2x32xf32>
    %393 = arith.negf %392 : vector<2x32xf32>
    %394 = math.exp %393 : vector<2x32xf32>
    %cst_111 = arith.constant 1.000000e+00 : f32
    %395 = vector.broadcast %cst_111 : f32 to vector<2x32xf32>
    %396 = arith.addf %395, %394 : vector<2x32xf32>
    %397 = arith.divf %395, %396 : vector<2x32xf32>
    %398 = arith.mulf %381, %326 : vector<2x32xf32>
    %399 = arith.mulf %371, %387 : vector<2x32xf32>
    %400 = arith.addf %398, %399 : vector<2x32xf32>
    %401 = math.tanh %400 : vector<2x32xf32>
    %402 = arith.mulf %397, %401 : vector<2x32xf32>
    %c0_112 = arith.constant 0 : index
    %c0_113 = arith.constant 0 : index
    %c0_114 = arith.constant 0 : index
    %403 = vector.load %arg5[%c0_112, %c0_113, %c0_114] : memref<2x2x32xf32, #tpu.memory_space<vmem>>, vector<1x2x32xf32>
    %404 = vector.shape_cast %403 : vector<1x2x32xf32> to vector<2x32xf32>
    %405 = vector.shape_cast %361 : vector<2x32xf32> to vector<1x2x32xf32>
    tpu.vector_store %arg5[%c0_112, %c0_113, %c0_114], %405 {strides = array<i32>} : memref<2x2x32xf32, #tpu.memory_space<vmem>>, vector<1x2x32xf32>,
    %c0_115 = arith.constant 0 : index
    %c0_116 = arith.constant 0 : index
    %c0_117 = arith.constant 0 : index
    %406 = vector.load %arg6[%c0_115, %c0_116, %c0_117] : memref<2x2x32xf32, #tpu.memory_space<vmem>>, vector<1x2x32xf32>
    %407 = vector.shape_cast %406 : vector<1x2x32xf32> to vector<2x32xf32>
    %408 = vector.shape_cast %359 : vector<2x32xf32> to vector<1x2x32xf32>
    tpu.vector_store %arg6[%c0_115, %c0_116, %c0_117], %408 {strides = array<i32>} : memref<2x2x32xf32, #tpu.memory_space<vmem>>, vector<1x2x32xf32>,
    %c1_118 = arith.constant 1 : index
    %c0_119 = arith.constant 0 : index
    %c0_120 = arith.constant 0 : index
    %409 = vector.load %arg5[%c1_118, %c0_119, %c0_120] : memref<2x2x32xf32, #tpu.memory_space<vmem>>, vector<1x2x32xf32>
    %410 = vector.shape_cast %409 : vector<1x2x32xf32> to vector<2x32xf32>
    %411 = vector.shape_cast %402 : vector<2x32xf32> to vector<1x2x32xf32>
    tpu.vector_store %arg5[%c1_118, %c0_119, %c0_120], %411 {strides = array<i32>} : memref<2x2x32xf32, #tpu.memory_space<vmem>>, vector<1x2x32xf32>,
    %c1_121 = arith.constant 1 : index
    %c0_122 = arith.constant 0 : index
    %c0_123 = arith.constant 0 : index
    %412 = vector.load %arg6[%c1_121, %c0_122, %c0_123] : memref<2x2x32xf32, #tpu.memory_space<vmem>>, vector<1x2x32xf32>
    %413 = vector.shape_cast %412 : vector<1x2x32xf32> to vector<2x32xf32>
    %414 = vector.shape_cast %400 : vector<2x32xf32> to vector<1x2x32xf32>
    tpu.vector_store %arg6[%c1_121, %c0_122, %c0_123], %414 {strides = array<i32>} : memref<2x2x32xf32, #tpu.memory_space<vmem>>, vector<1x2x32xf32>,
    %415 = vector.extract_strided_slice %180 {offsets = [0, 0], sizes = [1, 32], strides = [1, 1]} : vector<2x32xf32> to vector<1x32xf32>
    %416 = vector.extract_strided_slice %254 {offsets = [0, 0], sizes = [1, 32], strides = [1, 1]} : vector<2x32xf32> to vector<1x32xf32>
    %417 = vector.extract_strided_slice %328 {offsets = [0, 0], sizes = [1, 32], strides = [1, 1]} : vector<2x32xf32> to vector<1x32xf32>
    %418 = vector.extract_strided_slice %402 {offsets = [0, 0], sizes = [1, 32], strides = [1, 1]} : vector<2x32xf32> to vector<1x32xf32>
    %419 = vector.extract_strided_slice %180 {offsets = [1, 0], sizes = [1, 32], strides = [1, 1]} : vector<2x32xf32> to vector<1x32xf32>
    %420 = vector.extract_strided_slice %254 {offsets = [1, 0], sizes = [1, 32], strides = [1, 1]} : vector<2x32xf32> to vector<1x32xf32>
    %421 = vector.extract_strided_slice %328 {offsets = [1, 0], sizes = [1, 32], strides = [1, 1]} : vector<2x32xf32> to vector<1x32xf32>
    %422 = vector.extract_strided_slice %402 {offsets = [1, 0], sizes = [1, 32], strides = [1, 1]} : vector<2x32xf32> to vector<1x32xf32>
    %423 = tpu.concatenate %415, %416, %417, %418, %419, %420, %421, %422 in 0 : vector<1x32xf32>, vector<1x32xf32>, vector<1x32xf32>, vector<1x32xf32>, vector<1x32xf32>, vector<1x32xf32>, vector<1x32xf32>, vector<1x32xf32> -> vector<8x32xf32>
    %cst_124 = arith.constant dense<0.000000e+00> : vector<8xf32>
    %424 = vector.multi_reduction <add>, %423, %cst_124 [1] : vector<8x32xf32> to vector<8xf32>
    %425 = vector.shape_cast %424 : vector<8xf32> to vector<8x1xf32>
    %cst_125 = arith.constant 3.200000e+01 : f32
    %426 = vector.broadcast %cst_125 : f32 to vector<8x1xf32>
    %427 = arith.divf %425, %426 : vector<8x1xf32>
    %428 = vector.broadcast %427 : vector<8x1xf32> to vector<8x32xf32>
    %429 = arith.subf %423, %428 : vector<8x32xf32>
    %430 = arith.mulf %429, %429 : vector<8x32xf32>
    %cst_126 = arith.constant dense<0.000000e+00> : vector<8xf32>
    %431 = vector.multi_reduction <add>, %430, %cst_126 [1] : vector<8x32xf32> to vector<8xf32>
    %432 = vector.shape_cast %431 : vector<8xf32> to vector<8x1xf32>
    %cst_127 = arith.constant 3.200000e+01 : f32
    %433 = vector.broadcast %cst_127 : f32 to vector<8x1xf32>
    %434 = arith.divf %432, %433 : vector<8x1xf32>
    %cst_128 = arith.constant 9.99999974E-6 : f32
    %435 = vector.broadcast %cst_128 : f32 to vector<8x1xf32>
    %436 = arith.addf %434, %435 : vector<8x1xf32>
    %437 = math.rsqrt %436 : vector<8x1xf32>
    %438 = vector.broadcast %437 : vector<8x1xf32> to vector<8x32xf32>
    %439 = arith.mulf %429, %438 : vector<8x32xf32>
    %c624 = arith.constant 624 : index
    %c0_129 = arith.constant 0 : index
    %440 = vector.load %arg1[%c624, %c0_129] : memref<632x256xf32, #tpu.memory_space<vmem>>, vector<1x32xf32>
    %441 = vector.broadcast %440 : vector<1x32xf32> to vector<8x32xf32>
    %442 = arith.mulf %439, %441 : vector<8x32xf32>
    %c625 = arith.constant 625 : index
    %c0_130 = arith.constant 0 : index
    %443 = vector.load %arg1[%c625, %c0_130] : memref<632x256xf32, #tpu.memory_space<vmem>>, vector<1x32xf32>
    %444 = vector.broadcast %443 : vector<1x32xf32> to vector<8x32xf32>
    %445 = arith.addf %442, %444 : vector<8x32xf32>
    %c552 = arith.constant 552 : index
    %c0_131 = arith.constant 0 : index
    %446 = vector.load %arg1[%c552, %c0_131] : memref<632x256xf32, #tpu.memory_space<vmem>>, vector<32x32xf32>
    %cst_132 = arith.constant dense<0.000000e+00> : vector<8x32xf32>
    %447 = tpu.matmul %445, %446, %cst_132 {dimension_numbers = #tpu.dot_dimension_numbers<[1], [0], [0], [1], [0, 0, 1, 1], [], []>} : vector<8x32xf32>, vector<32x32xf32>, vector<8x32xf32> -> vector<8x32xf32>
    %c626 = arith.constant 626 : index
    %c0_133 = arith.constant 0 : index
    %448 = vector.load %arg1[%c626, %c0_133] : memref<632x256xf32, #tpu.memory_space<vmem>>, vector<1x32xf32>
    %449 = vector.broadcast %448 : vector<1x32xf32> to vector<8x32xf32>
    %450 = arith.addf %447, %449 : vector<8x32xf32>
    %cst_134 = arith.constant 0.000000e+00 : f32
    %451 = vector.broadcast %cst_134 : f32 to vector<8x32xf32>
    %452 = arith.maximumf %450, %451 : vector<8x32xf32>
    %c584 = arith.constant 584 : index
    %c0_135 = arith.constant 0 : index
    %453 = vector.load %arg1[%c584, %c0_135] : memref<632x256xf32, #tpu.memory_space<vmem>>, vector<32x4xf32>
    %cst_136 = arith.constant dense<0.000000e+00> : vector<8x4xf32>
    %454 = tpu.matmul %452, %453, %cst_136 {dimension_numbers = #tpu.dot_dimension_numbers<[1], [0], [0], [1], [0, 0, 1, 1], [], []>} : vector<8x32xf32>, vector<32x4xf32>, vector<8x4xf32> -> vector<8x4xf32>
    %c627 = arith.constant 627 : index
    %c0_137 = arith.constant 0 : index
    %455 = vector.load %arg1[%c627, %c0_137] : memref<632x256xf32, #tpu.memory_space<vmem>>, vector<1x4xf32>
    %456 = vector.broadcast %455 : vector<1x4xf32> to vector<8x4xf32>
    %457 = arith.addf %454, %456 : vector<8x4xf32>
    %458 = math.tanh %457 : vector<8x4xf32>
    %c0_138 = arith.constant 0 : index
    %c0_139 = arith.constant 0 : index
    %459 = vector.load %arg4[%c0_138, %c0_139] : memref<8x4xf32, #tpu.memory_space<vmem>>, vector<8x4xf32>
    tpu.vector_store %arg4[%c0_138, %c0_139], %458 {strides = array<i32>} : memref<8x4xf32, #tpu.memory_space<vmem>>, vector<8x4xf32>,
    return
  }
}

</mosaic_0001>

<bundles_post_ra>
// kernel: conv_lstm_forward.1
= control target key start
LH: loop header
LB: loop body
LE: loop exit
PB: predicated region body
PF: predicated region fallthrough
CT: control target
= control target key end

     0   :  { %12 = vsyncpa [#allocation3], 0  ;;  %s7191_s0 = inlined_call_operand.hbm [shape: f32[8,68], index: 0, kind: input, shape index: {}]   ;;  %s7192_s1 = inlined_call_operand.hbm [shape: f32[632,256], index: 1, kind: input, shape index: {}]   ;;  %s7193_s2 = inlined_call_operand.vmem [shape: f32[2,2,32], index: 2, kind: input, shape index: {}]   ;;  %s7194_s3 = inlined_call_operand.hbm [shape: f32[2,2,32], index: 3, kind: input, shape index: {}]   ;;  %s7195_s4 = inlined_call_operand.hbm [shape: f32[8,4], index: 4, kind: output, shape index: {0}]   ;;  %s7196_s5 = inlined_call_operand.hbm [shape: f32[2,2,32], index: 5, kind: output, shape index: {1}]   ;;  %s7197_s6 = inlined_call_operand.hbm [shape: f32[2,2,32], index: 6, kind: output, shape index: {2}]  }
   0x1   :  { %13 = vsyncpa [#allocation6], 0 }
   0x2   :  { %14 = vsyncpa [#allocation4], 0 }
   0x3   :  { %15 = vsyncpa [#allocation10], 0  ;;  %s6121_s21 = smov [#allocation5]  }
   0x4   :  { %s31_s22 = sshll.u32 %s6121_s21, 4  ;;  %s32_s22 = int_to_ptr.vmem [resolvable:$true] %s31_s22 }
   0x5   :  { %s6001_s23 = scalar_lea.vmem %s32_s22, 20224  ;;  %p6006_p1 = scmp.lt.s32.totalorder %s32_s22, %s32_s22 }
   0x6   :  { %p6002_p0 = scmp.ne.s32.totalorder %s32_s22, %s6001_s23  ;;  %p6007_p2 = scmp.lt.s32.totalorder %s6001_s23, %s6001_s23 }
   0x8   :  { %p6008_p3 = por %p6007_p2, %p6006_p1 }
   0xa   :  { %p6009_p4 = pnand %p6008_p3, %p6002_p0 }
   0xc   :  { %6012 = shalt.err (!%p6009_p4)
}
   0xd   :  { %s6122_s24 = smov 256   ;;  %s6123_s25 = smov 16  }
   0xe   :  { %37 = dma.hbm_to_vmem [thread:$0]  %s7192_s1, 20224, %s32_s22, [#allocation6], %s6122_s24, %s6122_s24, %s6123_s25  }
   0xf   :  { %s6124_s28 = smov [#allocation2]   ;;  %s6125_s30 = smov [#allocation7]  }
  0x10   :  { %s22_s29 = sshll.u32 %s6124_s28, 4  ;;  %s45_s7 = sshll.u32 %s6125_s30, 4  ;;  %s23_s29 = int_to_ptr.vmem [resolvable:$true] %s22_s29  ;;  %s46_s7 = int_to_ptr.vmem [resolvable:$true] %s45_s7 }
  0x11   :  { %s6021_s8 = scalar_lea.vmem %s23_s29, 128  ;;  %p6026_p6 = scmp.lt.s32.totalorder %s23_s29, %s23_s29 }
  0x12   :  { %p6022_p5 = scmp.ne.s32.totalorder %s23_s29, %s6021_s8  ;;  %p6027_p7 = scmp.lt.s32.totalorder %s6021_s8, %s6021_s8 }
  0x14   :  { %p6028_p8 = por %p6027_p7, %p6026_p6 }
  0x16   :  { %p6029_p9 = pnand %p6028_p8, %p6022_p5 }
  0x18   :  { %6032 = shalt.err (!%p6029_p9)
}
  0x19   :  { %25 = dma.hbm_to_vmem [thread:$0]  %s7191_s0, 128, %s23_s29, [#allocation3]  }
  0x1a   :  { %s6041_s11 = scalar_lea.vmem %s46_s7, 64  ;;  %p6046_p11 = scmp.lt.s32.totalorder %s46_s7, %s46_s7 }
  0x1b   :  { %p6042_p10 = scmp.ne.s32.totalorder %s46_s7, %s6041_s11  ;;  %p6047_p12 = scmp.lt.s32.totalorder %s6041_s11, %s6041_s11 }
  0x1d   :  { %p6048_p13 = por %p6047_p12, %p6046_p11 }
  0x1f   :  { %p6049_p0 = pnand %p6048_p13, %p6042_p10 }
  0x21   :  { %6052 = shalt.err (!%p6049_p0)
}
  0x22   :  { %s6126_s1 = smov 32   ;;  %s6127_s12 = smov 2  }
  0x23   :  { %51 = dma.hbm_to_vmem [thread:$0]  %s7194_s3, 64, %s46_s7, [#allocation6], %s6126_s1, %s6126_s1, %s6127_s12  }
  0x24   :  { %6113 = dma.done.wait [#allocation3], 128  }
  0x25   :  { %6114 = vsyncadd [#allocation3], 4294967168 }
  0x26   :  { %6115 = dma.done.wait [#allocation6], 20288  }
  0x27   :  { %6116 = vsyncadd [#allocation6], 4294947008  ;;  %v7198_v0 = vmov 0.0   ;;  %v77_v1 = vld [vmem:[#allocation5 + $0x78] sm:$0xff]  ;;  %v76_v2 = vld [vmem:[#allocation5 + $0x70] sm:$0xff]  ;;  %vm91_vm0 = vcmask 523264   ;;  %v81_v51 = vlaneseq }
  0x28   :  { %159 = vmatprep.mubr.f32.mxu0 %v7198_v0  ;;  %v75_v3 = vld [vmem:[#allocation5 + $0x68] sm:$0xff]  ;;  %111 = vmatprep.subr.mxu0 %v77_v1  ;;  %v74_v4 = vld [vmem:[#allocation5 + $0x60] sm:$0xff]  ;;  %v73_v5 = vld [vmem:[#allocation5 + $0x58] sm:$0xff]  ;;  %s6129_s0 = smov 64   ;;  %vm277_vm1 = vcmask 31744   ;;  %s6130_s3 = smov 96  }
  0x29   :  { %112 = vmatpush1.msra.mxu0 %v76_v2  ;;  %v72_v6 = vld [vmem:[#allocation5 + $0x50] sm:$0xff]  ;;  %v71_v7 = vld [vmem:[#allocation5 + $0x48] sm:$0xff]  ;;  %v70_v8 = vld [vmem:[#allocation5 + $0x40] sm:$0xff]  ;;  %v82_v52 = vshrl.u32 %v81_v51, 7  ;;  %vm534_vm2 = vcmask 261120   ;;  %vm6131_vm3 = vmmov 0  }
  0x2a   :  { %113 = vmatprep.subr.mxu0 %v75_v3  ;;  %v69_v9 = vld [vmem:[#allocation5 + $0x38] sm:$0xff]  ;;  %v199_v10 = vld [vmem:[#allocation5 + $0x270] sm:$0xff]  ;;  %v198_v12 = vld [vmem:[#allocation5 + $0x260] sm:$0xff]  ;;  %vm343_vm4 = vcmask 1043456   ;;  %vm502_vm5 = vcmask 1040384   ;;  %vm504_vm6 = vcmask 1041408  }
  0x2b   :  { %114 = vmatpush1.msra.mxu0 %v74_v4  ;;  %4938 = vmatprep.subr.mxu1 %v199_v10  ;;  %v183_v11 = vld [vmem:[#allocation5 + $0x170] sm:$0xff]  ;;  %v182_v13 = vld [vmem:[#allocation5 + $0x160] sm:$0xff]  ;;  %v67_v16 = vld [vmem:[#allocation5 + $0x28] sm:$0xff]  ;;  %v83_v53 = vsub.s32 0, %v82_v52  ;;  %v87_v55 = vsub.s32 1, %v82_v52  ;;  %vm506_vm7 = vcmask 1042432  }
  0x2c   :  { %115 = vmatprep.subr.mxu0 %v73_v5  ;;  %v68_v14 = vld [vmem:[#allocation5 + $0x30] sm:$0xff]  ;;  %4939 = vmatpush3.msra.mxu1 %v183_v11  ;;  %v66_v18 = vld [vmem:[#allocation5 + $0x20] sm:$0xff]  ;;  %v65_v20 = vld [vmem:[#allocation5 + $0x18] sm:$0xff]  ;;  %vm509_vm8 = vcmask 1044480   ;;  %vm511_vm9 = vcmask 1045504   ;;  %vm513_vm10 = vcmask 1046528  }
  0x2d   :  { %116 = vmatpush1.msra.mxu0 %v72_v6  ;;  %v197_v15 = vld [vmem:[#allocation5 + $0x250] sm:$0xff]  ;;  %4940 = vmatprep.subr.mxu1 %v198_v12  ;;  %v196_v19 = vld [vmem:[#allocation5 + $0x240] sm:$0xff]  ;;  %v63_v24 = vld [vmem:[#allocation5 + $0x8] sm:$0xff]  ;;  %vm4589_vm11 = vcmask 254976   ;;  %vm4577_vm12 = vcmask 261126  }
  0x2e   :  { %117 = vmatprep.subr.mxu0 %v71_v7  ;;  %v181_v17 = vld [vmem:[#allocation5 + $0x150] sm:$0xff]  ;;  %4941 = vmatpush3.msra.mxu1 %v182_v13  ;;  %v180_v21 = vld [vmem:[#allocation5 + $0x140] sm:$0xff]  ;;  %v6183_v28 = vld [vmem:[#allocation2] sm:$0xff] }
  0x2f   :  { %118 = vmatpush1.msra.mxu0 %v70_v8  ;;  %4942 = vmatprep.subr.mxu1 %v197_v15  ;;  %v64_v22 = vld [vmem:[#allocation5 + $0x10] sm:$0xff]  ;;  %v62_v26 = vld [vmem:[#allocation5] sm:$0xff]  ;;  %v285_v50 = vmul.f32 %v6183_v28, %v6183_v28 }
  0x30   :  { %119 = vmatprep.subr.mxu0 %v69_v9  ;;  %4943 = vmatpush3.msra.mxu1 %v181_v17  ;;  %v195_v23 = vld [vmem:[#allocation5 + $0x230] sm:$0xff]  ;;  %v194_v27 = vld [vmem:[#allocation5 + $0x220] sm:$0xff] }
  0x31   :  { %120 = vmatpush1.msra.mxu0 %v68_v14  ;;  %4944 = vmatprep.subr.mxu1 %v196_v19  ;;  %v179_v25 = vld [vmem:[#allocation5 + $0x130] sm:$0xff]  ;;  %v178_v29 = vld [vmem:[#allocation5 + $0x120] sm:$0xff] }
  0x32   :  { %121 = vmatprep.subr.mxu0 %v67_v16  ;;  %4945 = vmatpush3.msra.mxu1 %v180_v21  ;;  %v193_v30 = vld [vmem:[#allocation5 + $0x210] sm:$0xff]  ;;  %v192_v32 = vld [vmem:[#allocation5 + $0x200] sm:$0xff] }
  0x33   :  { %122 = vmatpush1.msra.mxu0 %v66_v18  ;;  %4946 = vmatprep.subr.mxu1 %v195_v23  ;;  %v177_v31 = vld [vmem:[#allocation5 + $0x110] sm:$0xff]  ;;  %v176_v33 = vld [vmem:[#allocation5 + $0x100] sm:$0xff]  ;;  %v6231_v18 = vld [vmem:[%s7193_s2] sm:$0x3] }
  0x34   :  { %123 = vmatprep.subr.mxu0 %v65_v20  ;;  %4947 = vmatpush3.msra.mxu1 %v179_v25  ;;  %v191_v34 = vld [vmem:[#allocation5 + $0x1f0] sm:$0xff]  ;;  %v190_v36 = vld [vmem:[#allocation5 + $0x1e0] sm:$0xff] }
  0x35   :  { %124 = vmatpush1.msra.mxu0 %v64_v22  ;;  %4948 = vmatprep.subr.mxu1 %v194_v27  ;;  %v175_v35 = vld [vmem:[#allocation5 + $0xf0] sm:$0xff]  ;;  %v174_v37 = vld [vmem:[#allocation5 + $0xe0] sm:$0xff] }
  0x36   :  { %125 = vmatprep.subr.mxu0 %v63_v24  ;;  %4949 = vmatpush3.msra.mxu1 %v178_v29  ;;  %v189_v38 = vld [vmem:[#allocation5 + $0x1d0] sm:$0xff]  ;;  %v188_v40 = vld [vmem:[#allocation5 + $0x1c0] sm:$0xff] }
  0x37   :  { %126 = vmatpush1.msra.mxu0 %v62_v26  ;;  %4950 = vmatprep.subr.mxu1 %v193_v30  ;;  %v173_v39 = vld [vmem:[#allocation5 + $0xd0] sm:$0xff]  ;;  %v172_v41 = vld [vmem:[#allocation5 + $0xc0] sm:$0xff] }
  0x38   :  { %4860 = vmatmul.mubr.msk.f32.vlgmr.msra.gmra.mxu0 %vm91_vm0, %v6183_v28  ;;  %5242 = vmatprep.subr.mxu0 %v7198_v0  ;;  %v187_v42 = vld [vmem:[#allocation5 + $0x1b0] sm:$0xff]  ;;  %v186_v44 = vld [vmem:[#allocation5 + $0x1a0] sm:$0xff] }
  0x39   :  { %4951 = vmatpush3.msra.mxu1 %v177_v31  ;;  %v171_v43 = vld [vmem:[#allocation5 + $0xb0] sm:$0xff]  ;;  %v170_v45 = vld [vmem:[#allocation5 + $0xa0] sm:$0xff]  ;;  %274 = vrot.lane.b32.xlu0 %v6183_v28, %s6129_s0 }
  0x3a   :  { %4952 = vmatprep.subr.mxu1 %v192_v32  ;;  %v185_v46 = vld [vmem:[#allocation5 + $0x190] sm:$0xff]  ;;  %v184_v48 = vld [vmem:[#allocation5 + $0x180] sm:$0xff]  ;;  %5244 = vmatprep.mubr.msk.f32.mxu0 %vm6131_vm3, %v7198_v0 }
  0x3b   :  { %4953 = vmatpush3.msra.mxu1 %v176_v33  ;;  %v169_v47 = vld [vmem:[#allocation5 + $0x90] sm:$0xff]  ;;  %v168_v49 = vld [vmem:[#allocation5 + $0x80] sm:$0xff] }
  0x3c   :  { %4954 = vmatprep.subr.mxu1 %v191_v34  ;;  %v79_v54 = vld [vmem:[#allocation5 + $0x4d0] ss:$8 sm:$0x3]  ;;  %v6194_v3 = vld [vmem:[#allocation5 + $0x3c0] sm:$0xff]  ;;  %v200_v8 = vld [vmem:[#allocation5 + $0x4d1] ss:$0 sm:$0xff] }
  0x3d   :  { %4955 = vmatpush3.msra.mxu1 %v175_v35  ;;  %287 = vrot.lane.b32.xlu0 %v285_v50, %s6129_s0  ;;  %v84_v56 = vrot.slane %v79_v54, %v83_v53  ;;  %v88_v57 = vrot.slane %v79_v54, %v87_v55  ;;  %v6198_v4 = vld [vmem:[#allocation5 + $0x3b0] sm:$0xff]  ;;  %v6202_v5 = vld [vmem:[#allocation5 + $0x3a0] sm:$0xff] }
  0x3e   :  { %4956 = vmatprep.subr.mxu1 %v190_v36  ;;  %v6205_v6 = vld [vmem:[#allocation5 + $0x390] sm:$0xff]  ;;  %v337_v19 = vld [vmem:[#allocation5 + $0x380] sm:$0xf] }
  0x3f   :  { %4957 = vmatpush3.msra.mxu1 %v174_v37  ;;  %v309_v16 = vld [vmem:[#allocation5 + $0x4d4] ss:$0 sm:$0xff]  ;;  %v315_v17 = vld [vmem:[#allocation5 + $0x4d5] ss:$0 sm:$0xff]  ;;  %5243 = vmatpush3.msk.msra.mxu0 %vm343_vm4, %v337_v19  ;;  %v335_v52 = vld [vmem:[#allocation5 + $0x360] sm:$0xff] }
  0x40   :  { %4958 = vmatprep.subr.mxu1 %v189_v38  ;;  %5247 = vmatprep.subr.mxu0 %v7198_v0  ;;  %v336_v50 = vld [vmem:[#allocation5 + $0x370] sm:$0xff]  ;;  %v333_v54 = vld [vmem:[#allocation5 + $0x340] sm:$0xff] }
  0x41   :  { %4959 = vmatpush3.msra.mxu1 %v173_v39  ;;  %v334_v53 = vld [vmem:[#allocation5 + $0x350] sm:$0xff] }
  0x42   :  { %4960 = vmatprep.subr.mxu1 %v188_v40  ;;  %v332_v55 = vld [vmem:[#allocation5 + $0x330] sm:$0xff] }
  0x43   :  { %4961 = vmatpush3.msra.mxu1 %v172_v41 }
  0x44   :  { %4962 = vmatprep.subr.mxu1 %v187_v42 }
  0x45   :  { %4963 = vmatpush3.msra.mxu1 %v171_v43 }
  0x46   :  { %4964 = vmatprep.subr.mxu1 %v186_v44 }
  0x47   :  { %4965 = vmatpush3.msra.mxu1 %v170_v45 }
  0x48   :  { %4966 = vmatprep.subr.mxu1 %v185_v46 }
  0x49   :  { %4967 = vmatpush3.msra.mxu1 %v169_v47 }
  0x4a   :  { %4968 = vmatprep.subr.mxu1 %v184_v48 }
  0x4b   :  { %4969 = vmatpush3.msra.mxu1 %v168_v49 }
  0x4c   :  { %5282 = vmatprep.subr.mxu1 %v7198_v0 }
  0xab   :  { %v275_v1 = vpop.permute.xlu0 %274 }
  0xac   :  { %v278_v2 = vsel %vm277_vm1, %v275_v1, 0.0  ;;  %v303_v1 = vld [vmem:[#allocation5 + $0x4d2] ss:$0 sm:$0xff] }
  0xad   :  { %279 = vadd.xlane.f32.xlu1 %v278_v2  ;;  %v323_v2 = vld [vmem:[#allocation5 + $0x2a0] sm:$0xff] }
  0xaf   :  { %v288_v13 = vpop.permute.xlu0 %287 }
  0xb0   :  { %v290_v15 = vsel %vm277_vm1, %v288_v13, 0.0 }
  0xf8   :  { %v161_v58 = vpop.f32.mrf.mxu0 }
  0xf9   :  { %v162_v59 = vadd.f32 %v161_v58, %v84_v56  ;;  %v331_v56 = vld [vmem:[#allocation5 + $0x320] sm:$0xff] }
  0xfa   :  { %v163_v60 = vpop.f32.mrf.mxu0  ;;  %v329_v58 = vld [vmem:[#allocation5 + $0x300] sm:$0xff] }
  0xfb   :  { %v164_v61 = vadd.f32 %v163_v60, %v88_v57  ;;  %v166_v63 = vmax.f32 %v162_v59, 0.0  ;;  %v330_v57 = vld [vmem:[#allocation5 + $0x310] sm:$0xff]  ;;  %v327_v60 = vld [vmem:[#allocation5 + $0x2e0] sm:$0xff] }
  0xfc   :  { %v328_v59 = vld [vmem:[#allocation5 + $0x2f0] sm:$0xff] }
  0xfd   :  { %v167_v62 = vmax.f32 %v164_v61, 0.0  ;;  %v326_v61 = vld [vmem:[#allocation5 + $0x2d0] sm:$0xff] }
  0xff   :  { %265 = vmatprep.mubr.f32.mxu1 %v167_v62  ;;  %v325_v62 = vld [vmem:[#allocation5 + $0x2c0] sm:$0xff] }
 0x100   :  { %266 = vmatmul.mubr.f32.vlgmr.msra.gmra.mxu1 %v166_v63  ;;  %v324_v63 = vld [vmem:[#allocation5 + $0x2b0] sm:$0xff] }
 0x101   :  { %5283 = vmatpush3.msra.mxu1 %v6194_v3  ;;  %5290 = vmatprep.mubr.msk.f32.mxu1 %vm6131_vm3, %v7198_v0 }
 0x102   :  { %5284 = vmatprep.subr.mxu1 %v7198_v0 }
 0x103   :  { %5285 = vmatpush3.msra.mxu1 %v6198_v4 }
 0x104   :  { %5286 = vmatprep.subr.mxu1 %v7198_v0 }
 0x105   :  { %5287 = vmatpush3.msra.mxu1 %v6202_v5 }
 0x106   :  { %5288 = vmatprep.subr.mxu1 %v7198_v0 }
 0x107   :  { %5289 = vmatpush3.msra.mxu1 %v6205_v6 }
 0x108   :  { %5293 = vmatprep.subr.mxu1 %v7198_v0  ;;  %5291 = vmatmul.mubr.msk.f32.vlgmr.msra.gmra.mxu1 %vm534_vm2, %v6231_v18 }
 0x109   :  { %5301 = vmatprep.mubr.msk.f32.mxu1 %vm6131_vm3, %v7198_v0 }
 0x136   :  { %v280_v20 = vpop.xlane.xlu1 %279 }
 0x1c0   :  { %v4970_v7 = vpop.f32.mrf.mxu1 }
 0x1c2   :  { %v4971_v9 = vpop.f32.mrf.mxu1 }
 0x1c3   :  { %v4972_v10 = vadd.f32 %v4971_v9, %v4970_v7  ;;  %v322_v7 = vld [vmem:[#allocation5 + $0x290] sm:$0xff] }
 0x1c4   :  { %v305_v9 = vld [vmem:[#allocation5 + $0x4d3] ss:$0 sm:$0xff] }
 0x1c5   :  { %v268_v11 = vadd.f32 %v4972_v10, %v200_v8  ;;  %v321_v10 = vld [vmem:[#allocation5 + $0x280] sm:$0xff] }
 0x1c7   :  { %v6210_v12 = vmax.f32 %v268_v11, 0.0 }
 0x1c8   :  { %v6302_v48 = vpop.f32.mrf.mxu1 }
 0x1c9   :  { %272 = vadd.xlane.f32.xlu1 %v6210_v12  ;;  %v282_v14 = vmul.f32 %v6210_v12, %v6210_v12 }
 0x1ca   :  { %v5292_v49 = vpop.f32.mrf.mxu1 }
 0x1cb   :  { %283 = vadd.xlane.f32.xlu0 %v282_v14 }
 0x1cd   :  { %291 = vadd.xlane.f32.xlu1 %v290_v15 }
 0x1de   :  { %311 = vrot.lane.b32.xlu1 %v309_v16, %s6129_s0 }
 0x1e1   :  { %621 = vrot.lane.b32.xlu0 %v6202_v5, %s6130_s3 }
 0x1e2   :  { %317 = vrot.lane.b32.xlu1 %v315_v17, %s6129_s0 }
 0x1e6   :  { %625 = vrot.lane.b32.xlu1 %v6194_v3, %s6130_s3 }
 0x1ea   :  { %623 = vrot.lane.b32.xlu1 %v6198_v4, %s6130_s3 }
 0x1ee   :  { %619 = vrot.lane.b32.xlu1 %v6205_v6, %s6130_s3 }
 0x1f2   :  { %718 = vrot.lane.b32.xlu1 %v6194_v3, %s6129_s0 }
 0x1f6   :  { %716 = vrot.lane.b32.xlu1 %v6198_v4, %s6129_s0 }
 0x1fa   :  { %714 = vrot.lane.b32.xlu1 %v6202_v5, %s6129_s0 }
 0x1fe   :  { %712 = vrot.lane.b32.xlu1 %v6205_v6, %s6129_s0 }
 0x202   :  { %806 = vrot.lane.b32.xlu1 %v6194_v3, %s6126_s1 }
 0x206   :  { %802 = vrot.lane.b32.xlu1 %v6202_v5, %s6126_s1 }
 0x252   :  { %v273_v21 = vpop.xlane.xlu1 %272 }
 0x253   :  { %v281_v22 = vadd.f32 %v280_v20, %v273_v21 }
 0x254   :  { %v284_v24 = vpop.xlane.xlu0 %283 }
 0x255   :  { %v295_v23 = vmul.f32 0.009259259, %v281_v22 }
 0x256   :  { %v292_v25 = vpop.xlane.xlu1 %291 }
 0x257   :  { %v293_v26 = vadd.f32 %v292_v25, %v284_v24  ;;  %v297_v27 = vmul.f32 %v295_v23, %v295_v23  ;;  %v301_v38 = vsub.f32 %v6210_v12, %v295_v23  ;;  %v307_v39 = vsub.f32 %v6183_v28, %v295_v23  ;;  %v487_v24 = vld [vmem:[#allocation5 + $0x4d6] ss:$0 sm:$0xff] }
 0x258   :  { %v6259_v36 = vpop.permute.xlu0 %621 }
 0x259   :  { %v296_v29 = vmul.f32 0.009259259, %v293_v26 }
 0x25a   :  { %v312_v30 = vpop.permute.xlu1 %311 }
 0x25b   :  { %v298_v31 = vsub.f32 %v296_v29, %v297_v27 }
 0x25d   :  { %v299_v32 = vadd.f32 1e-05, %v298_v31 }
 0x25e   :  { %v318_v33 = vpop.permute.xlu1 %317 }
 0x25f   :  { %5846 = vrsqrt.f32 %v299_v32 }
 0x262   :  { %v6253_v34 = vpop.permute.xlu1 %625 }
 0x263   :  { %5294 = vmatpush3.msra.mxu1 %v6253_v34 }
 0x264   :  { %5295 = vmatprep.subr.mxu1 %v7198_v0 }
 0x266   :  { %v6257_v35 = vpop.permute.xlu1 %623 }
 0x267   :  { %5296 = vmatpush3.msra.mxu1 %v6257_v35 }
 0x268   :  { %5297 = vmatprep.subr.mxu1 %v7198_v0 }
 0x269   :  { %5298 = vmatpush3.msra.mxu1 %v6259_v36 }
 0x26a   :  { %v6264_v37 = vpop.permute.xlu1 %619  ;;  %5299 = vmatprep.subr.mxu1 %v7198_v0 }
 0x26b   :  { %5300 = vmatpush3.msra.mxu1 %v6264_v37 }
 0x26c   :  { %v5847_v40 = vpop.eup %5846  ;;  %5304 = vmatprep.subr.mxu1 %v7198_v0  ;;  %5302 = vmatmul.mubr.msk.f32.vlgmr.msra.gmra.mxu1 %vm534_vm2, %v6231_v18 }
 0x26d   :  { %v308_v41 = vmul.f32 %v5847_v40, %v307_v39  ;;  %5312 = vmatprep.mubr.msk.f32.mxu1 %vm6131_vm3, %v7198_v0  ;;  %v6275_v42 = vmul.f32 %v5847_v40, %v301_v38 }
 0x26e   :  { %v6277_v43 = vpop.permute.xlu1 %718 }
 0x26f   :  { %v314_v44 = vmul.f32 %v312_v30, %v308_v41  ;;  %5305 = vmatpush3.msra.mxu1 %v6277_v43  ;;  %v304_v8 = vmul.f32 %v303_v1, %v6275_v42 }
 0x270   :  { %5306 = vmatprep.subr.mxu1 %v7198_v0 }
 0x271   :  { %v320_v28 = vadd.f32 %v318_v33, %v314_v44  ;;  %v306_v12 = vadd.f32 %v305_v9, %v304_v8 }
 0x272   :  { %v6281_v45 = vpop.permute.xlu1 %716 }
 0x273   :  { %339 = vrot.lane.b32.xlu0 %v320_v28, %s6129_s0  ;;  %5307 = vmatpush3.msra.mxu1 %v6281_v45 }
 0x274   :  { %5308 = vmatprep.subr.mxu1 %v7198_v0 }
 0x276   :  { %v6286_v46 = vpop.permute.xlu1 %714 }
 0x277   :  { %5309 = vmatpush3.msra.mxu1 %v6286_v46  ;;  %804 = vrot.lane.b32.xlu0 %v6198_v4, %s6126_s1 }
 0x278   :  { %5310 = vmatprep.subr.mxu1 %v7198_v0 }
 0x27a   :  { %v6292_v47 = vpop.permute.xlu1 %712 }
 0x27b   :  { %5311 = vmatpush3.msra.mxu1 %v6292_v47  ;;  %800 = vrot.lane.b32.xlu0 %v6205_v6, %s6126_s1 }
 0x27c   :  { %5313 = vmatmul.mubr.msk.f32.vlgmr.msra.gmra.mxu1 %vm534_vm2, %v6231_v18  ;;  %5326 = vmatprep.subr.mxu1 %v7198_v0 }
 0x27d   :  { %5334 = vmatprep.mubr.msk.f32.mxu1 %vm6131_vm3, %v7198_v0 }
 0x27e   :  { %v6322_v11 = vpop.permute.xlu1 %806 }
 0x282   :  { %v6332_v14 = vpop.permute.xlu1 %802 }
 0x2e5   :  { %v340_v51 = vpop.permute.xlu0 %339 }
 0x2e6   :  { %5245 = vmatmul.mubr.msk.f32.vlgmr.msra.gmra.mxu0 %vm277_vm1, %v340_v51 }
 0x2e7   :  { %5248 = vmatpush3.msra.mxu0 %v336_v50  ;;  %5279 = vmatprep.mubr.msk.f32.mxu0 %vm6131_vm3, %v7198_v0 }
 0x2e8   :  { %5249 = vmatprep.subr.mxu0 %v7198_v0 }
 0x2e9   :  { %5250 = vmatpush3.msra.mxu0 %v335_v52  ;;  %v6325_v13 = vpop.permute.xlu0 %804 }
 0x2ea   :  { %5251 = vmatprep.subr.mxu0 %v7198_v0 }
 0x2eb   :  { %5252 = vmatpush3.msra.mxu0 %v334_v53 }
 0x2ec   :  { %5253 = vmatprep.subr.mxu0 %v7198_v0 }
 0x2ed   :  { %5254 = vmatpush3.msra.mxu0 %v333_v54  ;;  %v6336_v15 = vpop.permute.xlu0 %800  ;;  %v529_v54 = vld [vmem:[#allocation7] sm:$0x3] }
 0x2ee   :  { %5255 = vmatprep.subr.mxu0 %v7198_v0  ;;  %7206 = vst [vmem:[#allocation16_spill] sm:$0xff] %v6336_v15 }
 0x2ef   :  { %5256 = vmatpush3.msra.mxu0 %v332_v55 }
 0x2f0   :  { %5257 = vmatprep.subr.mxu0 %v7198_v0 }
 0x2f1   :  { %5258 = vmatpush3.msra.mxu0 %v331_v56 }
 0x2f2   :  { %5259 = vmatprep.subr.mxu0 %v7198_v0 }
 0x2f3   :  { %5260 = vmatpush3.msra.mxu0 %v330_v57 }
 0x2f4   :  { %5261 = vmatprep.subr.mxu0 %v7198_v0 }
 0x2f5   :  { %5262 = vmatpush3.msra.mxu0 %v329_v58 }
 0x2f6   :  { %5263 = vmatprep.subr.mxu0 %v7198_v0 }
 0x2f7   :  { %5264 = vmatpush3.msra.mxu0 %v328_v59 }
 0x2f8   :  { %5265 = vmatprep.subr.mxu0 %v7198_v0 }
 0x2f9   :  { %5266 = vmatpush3.msra.mxu0 %v327_v60 }
 0x2fa   :  { %5267 = vmatprep.subr.mxu0 %v7198_v0 }
 0x2fb   :  { %5268 = vmatpush3.msra.mxu0 %v326_v61 }
 0x2fc   :  { %5269 = vmatprep.subr.mxu0 %v7198_v0 }
 0x2fd   :  { %5270 = vmatpush3.msra.mxu0 %v325_v62 }
 0x2fe   :  { %5271 = vmatprep.subr.mxu0 %v7198_v0 }
 0x2ff   :  { %5272 = vmatpush3.msra.mxu0 %v324_v63 }
 0x300   :  { %5273 = vmatprep.subr.mxu0 %v7198_v0 }
 0x301   :  { %5274 = vmatpush3.msra.mxu0 %v323_v2 }
 0x302   :  { %5275 = vmatprep.subr.mxu0 %v7198_v0 }
 0x303   :  { %5276 = vmatpush3.msra.mxu0 %v322_v7 }
 0x304   :  { %5277 = vmatprep.subr.mxu0 %v7198_v0 }
 0x305   :  { %5278 = vmatpush3.msra.mxu0 %v321_v10 }
 0x306   :  { %5280 = vmatmul.mubr.f32.vlgmr.msra.gmra.mxu0 %v306_v12  ;;  %5315 = vmatprep.subr.mxu0 %v7198_v0 }
 0x307   :  { %5316 = vmatpush3.msra.mxu0 %v6322_v11  ;;  %5323 = vmatprep.mubr.msk.f32.mxu0 %vm6131_vm3, %v7198_v0 }
 0x308   :  { %5317 = vmatprep.subr.mxu0 %v7198_v0 }
 0x309   :  { %5318 = vmatpush3.msra.mxu0 %v6325_v13 }
 0x30a   :  { %5319 = vmatprep.subr.mxu0 %v7198_v0 }
 0x30b   :  { %5320 = vmatpush3.msra.mxu0 %v6332_v14 }
 0x30c   :  { %5321 = vmatprep.subr.mxu0 %v7198_v0 }
 0x30d   :  { %5322 = vmatpush3.msra.mxu0 %v6336_v15 }
 0x30e   :  { %5324 = vmatmul.mubr.msk.f32.vlgmr.msra.gmra.mxu0 %vm534_vm2, %v6231_v18  ;;  %5337 = vmatprep.subr.mxu0 %v7198_v0 }
 0x30f   :  { %5345 = vmatprep.mubr.msk.f32.mxu0 %vm6131_vm3, %v7198_v0 }
 0x32c   :  { %v697_v16 = vpop.f32.mrf.mxu1 }
 0x32e   :  { %v5303_v17 = vpop.f32.mrf.mxu1 }
 0x32f   :  { %v6371_v17 = vld [vmem:[#allocation5 + $0x3f0] sm:$0xff] }
 0x33c   :  { %v790_v19 = vpop.f32.mrf.mxu1 }
 0x33d   :  { %795 = vrot.lane.b32.xlu1 %v790_v19, %s6129_s0  ;;  %v6375_v19 = vld [vmem:[#allocation5 + $0x3e0] sm:$0xff] }
 0x33e   :  { %v5314_v20 = vpop.f32.mrf.mxu1 }
 0x33f   :  { %v6379_v20 = vld [vmem:[#allocation5 + $0x3d0] sm:$0xff] }
 0x341   :  { %702 = vrot.lane.b32.xlu1 %v697_v16, %s6126_s1  ;;  %v6368_v16 = vld [vmem:[#allocation5 + $0x400] sm:$0xff] }
 0x342   :  { %5327 = vmatpush3.msra.mxu1 %v6368_v16 }
 0x343   :  { %5328 = vmatprep.subr.mxu1 %v7198_v0 }
 0x344   :  { %5329 = vmatpush3.msra.mxu1 %v6371_v17 }
 0x345   :  { %5330 = vmatprep.subr.mxu1 %v7198_v0 }
 0x346   :  { %5331 = vmatpush3.msra.mxu1 %v6375_v19 }
 0x347   :  { %5332 = vmatprep.subr.mxu1 %v7198_v0 }
 0x348   :  { %5333 = vmatpush3.msra.mxu1 %v6379_v20 }
 0x349   :  { %5348 = vmatprep.subr.mxu1 %v7198_v0 }
 0x3a6   :  { %v413_v21 = vpop.f32.mrf.mxu0 }
 0x3a8   :  { %v5246_v22 = vpop.f32.mrf.mxu0 }
 0x3a9   :  { %v6391_v22 = vld [vmem:[#allocation5 + $0x440] sm:$0xff] }
 0x3aa   :  { %5338 = vmatpush3.msra.mxu0 %v6391_v22 }
 0x3ab   :  { %5339 = vmatprep.subr.mxu0 %v7198_v0 }
 0x3af   :  { %v796_v51 = vpop.permute.xlu1 %795 }
 0x3b3   :  { %v703_v62 = vpop.permute.xlu1 %702 }
 0x3c6   :  { %v483_v23 = vpop.f32.mrf.mxu0 }
 0x3c7   :  { %v484_v25 = vadd.f32 %v483_v23, %v413_v21  ;;  %v6394_v23 = vld [vmem:[#allocation5 + $0x430] sm:$0xff] }
 0x3c8   :  { %v5281_v26 = vpop.f32.mrf.mxu0  ;;  %7207 = vst [vmem:[#allocation17_spill] sm:$0xff] %v6394_v23  ;;  %5340 = vmatpush3.msra.mxu0 %v6394_v23 }
 0x3c9   :  { %v488_v18 = vadd.f32 %v487_v24, %v484_v25  ;;  %v6400_v24 = vld [vmem:[#allocation5 + $0x420] sm:$0xff]  ;;  %5341 = vmatprep.subr.mxu0 %v7198_v0  ;;  %v6404_v25 = vld [vmem:[#allocation5 + $0x410] sm:$0xff] }
 0x3ca   :  { %7208 = vst [vmem:[#allocation18_spill] sm:$0xff] %v6400_v24  ;;  %5342 = vmatpush3.msra.mxu0 %v6400_v24  ;;  %7209 = vst [vmem:[#allocation19_spill] sm:$0xff] %v6404_v25 }
 0x3cb   :  { %v490_v27 = vrot.slane %v488_v18, 3  ;;  %v492_v29 = vrot.slane %v488_v18, 7  ;;  %v494_v30 = vrot.slane %v488_v18, 2  ;;  %v496_v32 = vrot.slane %v488_v18, 6  ;;  %5343 = vmatprep.subr.mxu0 %v7198_v0 }
 0x3cc   :  { %v498_v39 = vrot.slane %v488_v18, 1  ;;  %v500_v41 = vrot.slane %v488_v18, 5  ;;  %5344 = vmatpush3.msra.mxu0 %v6404_v25 }
 0x3cd   :  { %v503_v31 = vsel %vm502_vm5, %v488_v18, %v490_v27  ;;  %5359 = vmatprep.subr.mxu0 %v7198_v0 }
 0x3ce   :  { %v505_v33 = vsel %vm504_vm6, %v503_v31, %v492_v29  ;;  %v878_v38 = vpop.f32.mrf.mxu0  ;;  %v6429_v31 = vld [vmem:[%s7193_s2 + $0x2] sm:$0x3]  ;;  %s6132_s2 = smov [#allocation9]  }
 0x3cf   :  { %v507_v40 = vsel %vm506_vm7, %v505_v33, %v494_v30  ;;  %5346 = vmatmul.mubr.msk.f32.vlgmr.msra.gmra.mxu0 %vm534_vm2, %v6429_v31  ;;  %s4828_s19 = sshll.u32 %s6132_s2, 4  ;;  %s4829_s19 = int_to_ptr.vmem [resolvable:$true] %s4828_s19 }
 0x3d0   :  { %v508_v42 = vsel %vm343_vm4, %v507_v40, %v496_v32  ;;  %v5325_v44 = vpop.f32.mrf.mxu0  ;;  %5367 = vmatprep.mubr.msk.f32.mxu0 %vm6131_vm3, %v7198_v0  ;;  %s6053_s20 = scalar_lea.vmem %s4829_s19, 64  ;;  %p6058_p2 = scmp.lt.s32.totalorder %s4829_s19, %s4829_s19 }
 0x3d1   :  { %v510_v28 = vsel %vm509_vm8, %v508_v42, %v498_v39  ;;  %p6054_p1 = scmp.ne.s32.totalorder %s4829_s19, %s6053_s20  ;;  %p6059_p3 = scmp.lt.s32.totalorder %s6053_s20, %s6053_s20 }
 0x3d2   :  { %v512_v49 = vsel %vm511_vm9, %v510_v28, %v500_v41 }
 0x3d3   :  { %v6355_v50 = vsel %vm513_vm10, %v512_v49, %v488_v18  ;;  %p6060_p4 = por %p6059_p3, %p6058_p2 }
 0x3d4   :  { %v798_v52 = vadd.f32 %v796_v51, %v6355_v50  ;;  %v608_v55 = vadd.f32 %v6302_v48, %v6355_v50  ;;  %v705_v63 = vadd.f32 %v703_v62, %v6355_v50 }
 0x3d5   :  { %p6061_p5 = pnand %p6060_p4, %p6054_p1 }
 0x3d6   :  { %5848 = vtanh.f32 %v798_v52  ;;  %v4865_v56 = vmul.f32 -1.442695, %v608_v55  ;;  %v4867_v1 = vmul.f32 -1.442695, %v705_v63 }
 0x3d8   :  { %5850 = vpow2.f32 %v4865_v56 }
 0x3e3   :  { %v5849_v53 = vpop.eup %5848 }
 0x3e4   :  { %899 = vrot.lane.b32.xlu0 %v5849_v53, %s6129_s0 }
 0x3e5   :  { %v5851_v57 = vpop.eup %5850 }
 0x3e6   :  { %v612_v58 = vadd.f32 1.0, %v5851_v57 }
 0x3e8   :  { %894 = vrot.lane.b32.xlu0 %v529_v54, %s6126_s1  ;;  %5852 = vrcp.f32 %v612_v58 }
 0x3e9   :  { %5854 = vpow2.f32 %v4867_v1 }
 0x3ec   :  { %883 = vrot.lane.b32.xlu0 %v878_v38, %s6130_s3 }
 0x3f5   :  { %v5853_v59 = vpop.eup %5852 }
 0x3f6   :  { %v5855_v2 = vpop.eup %5854 }
 0x3f7   :  { %v709_v7 = vadd.f32 1.0, %v5855_v2 }
 0x3f9   :  { %5856 = vrcp.f32 %v709_v7 }
 0x406   :  { %v5857_v48 = vpop.eup %5856 }
 0x456   :  { %v900_v60 = vpop.permute.xlu0 %899 }
 0x457   :  { %v902_v61 = vmul.f32 %v5853_v59, %v900_v60 }
 0x459   :  { %904 = vrot.lane.b32.xlu1 %v902_v61, %s6126_s1 }
 0x45a   :  { %v895_v8 = vpop.permute.xlu0 %894 }
 0x45b   :  { %v897_v9 = vmul.f32 %v5857_v48, %v895_v8 }
 0x45e   :  { %v884_v26 = vpop.permute.xlu0 %883 }
 0x45f   :  { %v886_v18 = vadd.f32 %v884_v26, %v6355_v50 }
 0x461   :  { %v4870_v27 = vmul.f32 -1.442695, %v886_v18 }
 0x48f   :  { %v1059_v2 = vpop.f32.mrf.mxu0 }
 0x491   :  { %v5347_v7 = vpop.f32.mrf.mxu0 }
 0x4cb   :  { %v905_v10 = vpop.permute.xlu1 %904 }
 0x4cc   :  { %v6365_v12 = vadd.f32 %v905_v10, %v897_v9 }
 0x4ce   :  { %5858 = vtanh.f32 %v6365_v12 }
 0x4cf   :  { %5860 = vpow2.f32 %v4870_v27 }
 0x4db   :  { %v5859_v21 = vpop.eup %5858 }
 0x4dc   :  { %910 = vrot.lane.b32.xlu1 %v5859_v21, %s6129_s0  ;;  %v5861_v29 = vpop.eup %5860 }
 0x4dd   :  { %v890_v30 = vadd.f32 1.0, %v5861_v29 }
 0x4df   :  { %5862 = vrcp.f32 %v890_v30 }
 0x4e0   :  { %1080 = vrot.lane.b32.xlu1 %v6368_v16, %s6130_s3 }
 0x4e4   :  { %1076 = vrot.lane.b32.xlu1 %v6375_v19, %s6130_s3 }
 0x4e8   :  { %1264 = vrot.lane.b32.xlu1 %v6368_v16, %s6129_s0 }
 0x4ec   :  { %1260 = vrot.lane.b32.xlu1 %v6375_v19, %s6129_s0  ;;  %v5863_v32 = vpop.eup %5862 }
 0x4f0   :  { %1439 = vrot.lane.b32.xlu1 %v6368_v16, %s6126_s1 }
 0x4f4   :  { %1435 = vrot.lane.b32.xlu1 %v6375_v19, %s6126_s1 }
 0x4f8   :  { %1171 = vrot.lane.b32.xlu1 %v6391_v22, %s6130_s3 }
 0x4fc   :  { %1167 = vrot.lane.b32.xlu1 %v6400_v24, %s6130_s3 }
 0x500   :  { %1351 = vrot.lane.b32.xlu1 %v6391_v22, %s6129_s0 }
 0x504   :  { %1347 = vrot.lane.b32.xlu1 %v6400_v24, %s6129_s0 }
 0x508   :  { %1526 = vrot.lane.b32.xlu1 %v6391_v22, %s6126_s1 }
 0x50c   :  { %1522 = vrot.lane.b32.xlu1 %v6400_v24, %s6126_s1 }
 0x54e   :  { %v911_v33 = vpop.permute.xlu1 %910 }
 0x54f   :  { %v913_v38 = vmul.f32 %v5863_v32, %v911_v33 }
 0x551   :  { %915 = vrot.lane.b32.xlu0 %v913_v38, %s6126_s1 }
 0x552   :  { %v6436_v39 = vpop.permute.xlu1 %1080 }
 0x555   :  { %1078 = vrot.lane.b32.xlu0 %v6371_v17, %s6130_s3 }
 0x556   :  { %v6440_v40 = vpop.permute.xlu1 %1076 }
 0x559   :  { %1074 = vrot.lane.b32.xlu0 %v6379_v20, %s6130_s3 }
 0x55a   :  { %v6444_v41 = vpop.permute.xlu1 %1264 }
 0x55d   :  { %1262 = vrot.lane.b32.xlu0 %v6371_v17, %s6129_s0 }
 0x55e   :  { %v6448_v42 = vpop.permute.xlu1 %1260 }
 0x561   :  { %1258 = vrot.lane.b32.xlu0 %v6379_v20, %s6129_s0 }
 0x562   :  { %v6452_v44 = vpop.permute.xlu1 %1439 }
 0x565   :  { %1437 = vrot.lane.b32.xlu0 %v6371_v17, %s6126_s1 }
 0x566   :  { %v6456_v28 = vpop.permute.xlu1 %1435 }
 0x569   :  { %1433 = vrot.lane.b32.xlu0 %v6379_v20, %s6126_s1 }
 0x56a   :  { %v6460_v49 = vpop.permute.xlu1 %1171 }
 0x56b   :  { %5360 = vmatpush3.msra.mxu0 %v6460_v49 }
 0x56c   :  { %5361 = vmatprep.subr.mxu0 %v7198_v0 }
 0x56d   :  { %1169 = vrot.lane.b32.xlu0 %v6394_v23, %s6130_s3 }
 0x56e   :  { %v6521_v57 = vpop.permute.xlu1 %1167 }
 0x571   :  { %1165 = vrot.lane.b32.xlu0 %v6404_v25, %s6130_s3 }
 0x572   :  { %v6538_v60 = vpop.permute.xlu1 %1351 }
 0x575   :  { %1349 = vrot.lane.b32.xlu0 %v6394_v23, %s6129_s0 }
 0x579   :  { %1345 = vrot.lane.b32.xlu0 %v6404_v25, %s6129_s0 }
 0x57d   :  { %1524 = vrot.lane.b32.xlu0 %v6394_v23, %s6126_s1 }
 0x581   :  { %1520 = vrot.lane.b32.xlu0 %v6404_v25, %s6126_s1 }
 0x5c3   :  { %v6476_v51 = vpop.permute.xlu0 %915 }
 0x5c4   :  { %5335 = vmatmul.mubr.msk.f32.vlgmr.msra.gmra.mxu1 %vm534_vm2, %v6476_v51 }
 0x5c5   :  { %5349 = vmatpush3.msra.mxu1 %v6436_v39  ;;  %5356 = vmatprep.mubr.msk.f32.mxu1 %vm6131_vm3, %v7198_v0 }
 0x5c6   :  { %5350 = vmatprep.subr.mxu1 %v7198_v0 }
 0x5c7   :  { %v6484_v52 = vpop.permute.xlu0 %1078 }
 0x5c8   :  { %5351 = vmatpush3.msra.mxu1 %v6484_v52 }
 0x5c9   :  { %5352 = vmatprep.subr.mxu1 %v7198_v0 }
 0x5ca   :  { %5353 = vmatpush3.msra.mxu1 %v6440_v40 }
 0x5cb   :  { %5354 = vmatprep.subr.mxu1 %v7198_v0  ;;  %v6490_v53 = vpop.permute.xlu0 %1074 }
 0x5cc   :  { %5355 = vmatpush3.msra.mxu1 %v6490_v53 }
 0x5cd   :  { %5357 = vmatmul.mubr.msk.f32.vlgmr.msra.gmra.mxu1 %vm534_vm2, %v6476_v51  ;;  %5370 = vmatprep.subr.mxu1 %v7198_v0 }
 0x5ce   :  { %5371 = vmatpush3.msra.mxu1 %v6444_v41  ;;  %5378 = vmatprep.mubr.msk.f32.mxu1 %vm6131_vm3, %v7198_v0 }
 0x5cf   :  { %5372 = vmatprep.subr.mxu1 %v7198_v0  ;;  %v6500_v54 = vpop.permute.xlu0 %1262 }
 0x5d0   :  { %5373 = vmatpush3.msra.mxu1 %v6500_v54 }
 0x5d1   :  { %5374 = vmatprep.subr.mxu1 %v7198_v0 }
 0x5d2   :  { %5375 = vmatpush3.msra.mxu1 %v6448_v42 }
 0x5d3   :  { %5376 = vmatprep.subr.mxu1 %v7198_v0  ;;  %v6506_v55 = vpop.permute.xlu0 %1258 }
 0x5d4   :  { %5377 = vmatpush3.msra.mxu1 %v6506_v55 }
 0x5d5   :  { %5379 = vmatmul.mubr.msk.f32.vlgmr.msra.gmra.mxu1 %vm534_vm2, %v6476_v51  ;;  %5392 = vmatprep.subr.mxu1 %v7198_v0 }
 0x5d6   :  { %5393 = vmatpush3.msra.mxu1 %v6452_v44  ;;  %5400 = vmatprep.mubr.msk.f32.mxu1 %vm6131_vm3, %v7198_v0 }
 0x5d7   :  { %5394 = vmatprep.subr.mxu1 %v7198_v0  ;;  %v6516_v56 = vpop.permute.xlu0 %1437 }
 0x5d8   :  { %5395 = vmatpush3.msra.mxu1 %v6516_v56 }
 0x5d9   :  { %5396 = vmatprep.subr.mxu1 %v7198_v0 }
 0x5da   :  { %5397 = vmatpush3.msra.mxu1 %v6456_v28 }
 0x5db   :  { %5398 = vmatprep.subr.mxu1 %v7198_v0  ;;  %v6524_v58 = vpop.permute.xlu0 %1433 }
 0x5dc   :  { %5399 = vmatpush3.msra.mxu1 %v6524_v58 }
 0x5dd   :  { %5401 = vmatmul.mubr.msk.f32.vlgmr.msra.gmra.mxu1 %vm534_vm2, %v6476_v51  ;;  %5414 = vmatprep.subr.mxu1 %v7198_v0 }
 0x5de   :  { %5415 = vmatpush3.msra.mxu1 %v6194_v3  ;;  %5422 = vmatprep.mubr.msk.f32.mxu1 %vm6131_vm3, %v7198_v0 }
 0x5df   :  { %5416 = vmatprep.subr.mxu1 %v7198_v0  ;;  %v6534_v59 = vpop.permute.xlu0 %1169 }
 0x5e0   :  { %5362 = vmatpush3.msra.mxu0 %v6534_v59  ;;  %5417 = vmatpush3.msra.mxu1 %v6198_v4  ;;  %v6556_v4 = vpop.permute.xlu1 %1347 }
 0x5e1   :  { %5363 = vmatprep.subr.mxu0 %v7198_v0  ;;  %5418 = vmatprep.subr.mxu1 %v7198_v0 }
 0x5e2   :  { %5364 = vmatpush3.msra.mxu0 %v6521_v57  ;;  %5419 = vmatpush3.msra.mxu1 %v6202_v5 }
 0x5e3   :  { %5365 = vmatprep.subr.mxu0 %v7198_v0  ;;  %5420 = vmatprep.subr.mxu1 %v7198_v0  ;;  %v6546_v3 = vpop.permute.xlu0 %1165 }
 0x5e4   :  { %5366 = vmatpush3.msra.mxu0 %v6546_v3  ;;  %5421 = vmatpush3.msra.mxu1 %v6205_v6  ;;  %v6574_v61 = vpop.permute.xlu1 %1526 }
 0x5e5   :  { %5381 = vmatprep.subr.mxu0 %v7198_v0  ;;  %5423 = vmatmul.mubr.msk.f32.vlgmr.msra.gmra.mxu1 %vm534_vm2, %v6476_v51 }
 0x5e6   :  { %5436 = vmatprep.subr.mxu1 %v7198_v0  ;;  %5368 = vmatmul.mubr.msk.f32.vlgmr.msra.gmra.mxu0 %vm534_vm2, %v6429_v31 }
 0x5e7   :  { %5382 = vmatpush3.msra.mxu0 %v6538_v60  ;;  %5437 = vmatpush3.msra.mxu1 %v6277_v43  ;;  %v6560_v5 = vpop.permute.xlu0 %1349 }
 0x5e8   :  { %5383 = vmatprep.subr.mxu0 %v7198_v0  ;;  %5438 = vmatprep.subr.mxu1 %v7198_v0  ;;  %v6594_v63 = vpop.permute.xlu1 %1522 }
 0x5e9   :  { %5384 = vmatpush3.msra.mxu0 %v6560_v5  ;;  %5439 = vmatpush3.msra.mxu1 %v6281_v45 }
 0x5ea   :  { %5385 = vmatprep.subr.mxu0 %v7198_v0  ;;  %5440 = vmatprep.subr.mxu1 %v7198_v0 }
 0x5eb   :  { %5386 = vmatpush3.msra.mxu0 %v6556_v4  ;;  %5441 = vmatpush3.msra.mxu1 %v6286_v46  ;;  %v6570_v6 = vpop.permute.xlu0 %1345 }
 0x5ec   :  { %5387 = vmatprep.subr.mxu0 %v7198_v0  ;;  %5442 = vmatprep.subr.mxu1 %v7198_v0 }
 0x5ed   :  { %5388 = vmatpush3.msra.mxu0 %v6570_v6  ;;  %5443 = vmatpush3.msra.mxu1 %v6292_v47 }
 0x5ee   :  { %5444 = vmatprep.mubr.msk.f32.mxu1 %vm6131_vm3, %v7198_v0  ;;  %5389 = vmatprep.mubr.msk.f32.mxu0 %vm6131_vm3, %v7198_v0 }
 0x5ef   :  { %5403 = vmatprep.subr.mxu0 %v7198_v0  ;;  %5445 = vmatmul.mubr.msk.f32.vlgmr.msra.gmra.mxu1 %vm534_vm2, %v6476_v51  ;;  %v6585_v62 = vpop.permute.xlu0 %1524 }
 0x5f0   :  { %5390 = vmatmul.mubr.msk.f32.vlgmr.msra.gmra.mxu0 %vm534_vm2, %v6429_v31  ;;  %5458 = vmatprep.subr.mxu1 %v7198_v0 }
 0x5f1   :  { %5404 = vmatpush3.msra.mxu0 %v6574_v61  ;;  %5411 = vmatprep.mubr.msk.f32.mxu0 %vm6131_vm3, %v7198_v0 }
 0x5f2   :  { %5405 = vmatprep.subr.mxu0 %v7198_v0  ;;  %5459 = vmatpush3.msra.mxu1 %v6368_v16 }
 0x5f3   :  { %5406 = vmatpush3.msra.mxu0 %v6585_v62  ;;  %5460 = vmatprep.subr.mxu1 %v7198_v0  ;;  %v6600_v1 = vpop.permute.xlu0 %1520 }
 0x5f4   :  { %5407 = vmatprep.subr.mxu0 %v7198_v0  ;;  %5461 = vmatpush3.msra.mxu1 %v6371_v17 }
 0x5f5   :  { %5408 = vmatpush3.msra.mxu0 %v6594_v63  ;;  %5462 = vmatprep.subr.mxu1 %v7198_v0 }
 0x5f6   :  { %5409 = vmatprep.subr.mxu0 %v7198_v0  ;;  %5463 = vmatpush3.msra.mxu1 %v6375_v19 }
 0x5f7   :  { %5410 = vmatpush3.msra.mxu0 %v6600_v1  ;;  %5464 = vmatprep.subr.mxu1 %v7198_v0 }
 0x5f8   :  { %5425 = vmatprep.subr.mxu0 %v7198_v0  ;;  %5412 = vmatmul.mubr.msk.f32.vlgmr.msra.gmra.mxu0 %vm534_vm2, %v6429_v31 }
 0x5f9   :  { %5426 = vmatpush3.msra.mxu0 %v6253_v34  ;;  %5433 = vmatprep.mubr.msk.f32.mxu0 %vm6131_vm3, %v7198_v0 }
 0x5fa   :  { %5427 = vmatprep.subr.mxu0 %v7198_v0  ;;  %5465 = vmatpush3.msra.mxu1 %v6379_v20 }
 0x5fb   :  { %5428 = vmatpush3.msra.mxu0 %v6257_v35  ;;  %5466 = vmatprep.mubr.msk.f32.mxu1 %vm6131_vm3, %v7198_v0 }
 0x5fc   :  { %5429 = vmatprep.subr.mxu0 %v7198_v0  ;;  %5480 = vmatprep.subr.mxu1 %v7198_v0 }
 0x5fd   :  { %5430 = vmatpush3.msra.mxu0 %v6259_v36 }
 0x5fe   :  { %5431 = vmatprep.subr.mxu0 %v7198_v0 }
 0x5ff   :  { %5432 = vmatpush3.msra.mxu0 %v6264_v37 }
 0x600   :  { %5434 = vmatmul.mubr.msk.f32.vlgmr.msra.gmra.mxu0 %vm534_vm2, %v6476_v51  ;;  %5447 = vmatprep.subr.mxu0 %v7198_v0 }
 0x601   :  { %5448 = vmatpush3.msra.mxu0 %v6322_v11  ;;  %5455 = vmatprep.mubr.msk.f32.mxu0 %vm6131_vm3, %v7198_v0 }
 0x602   :  { %5449 = vmatprep.subr.mxu0 %v7198_v0 }
 0x603   :  { %5450 = vmatpush3.msra.mxu0 %v6325_v13 }
 0x604   :  { %5451 = vmatprep.subr.mxu0 %v7198_v0 }
 0x605   :  { %5452 = vmatpush3.msra.mxu0 %v6332_v14 }
 0x606   :  { %5453 = vmatprep.subr.mxu0 %v7198_v0 }
 0x607   :  { %5454 = vmatpush3.msra.mxu0 %v6336_v15 }
 0x608   :  { %5456 = vmatmul.mubr.msk.f32.vlgmr.msra.gmra.mxu0 %vm534_vm2, %v6476_v51  ;;  %5469 = vmatprep.subr.mxu0 %v7198_v0 }
 0x609   :  { %5470 = vmatpush3.msra.mxu0 %v6391_v22  ;;  %5477 = vmatprep.mubr.msk.f32.mxu0 %vm6131_vm3, %v7198_v0 }
 0x60a   :  { %5471 = vmatprep.subr.mxu0 %v7198_v0 }
 0x60b   :  { %5472 = vmatpush3.msra.mxu0 %v6394_v23 }
 0x60c   :  { %5473 = vmatprep.subr.mxu0 %v7198_v0 }
 0x60d   :  { %5474 = vmatpush3.msra.mxu0 %v6400_v24 }
 0x60e   :  { %5475 = vmatprep.subr.mxu0 %v7198_v0 }
 0x60f   :  { %5476 = vmatpush3.msra.mxu0 %v6404_v25 }
 0x610   :  { %5491 = vmatprep.subr.mxu0 %v7198_v0 }
 0x684   :  { %v985_v8 = vpop.f32.mrf.mxu1 }
 0x686   :  { %v5336_v48 = vpop.f32.mrf.mxu1 }
 0x68d   :  { %v1152_v9 = vpop.f32.mrf.mxu1 }
 0x68f   :  { %v5358_v10 = vpop.f32.mrf.mxu1 }
 0x695   :  { %v1336_v21 = vpop.f32.mrf.mxu1 }
 0x696   :  { %1341 = vrot.lane.b32.xlu0 %v1336_v21, %s6129_s0 }
 0x697   :  { %v5380_v26 = vpop.f32.mrf.mxu1 }
 0x69d   :  { %v1511_v18 = vpop.f32.mrf.mxu1 }
 0x69f   :  { %v5402_v27 = vpop.f32.mrf.mxu1 }
 0x6a5   :  { %v1700_v29 = vpop.f32.mrf.mxu1 }
 0x6a6   :  { %v1243_v30 = vpop.f32.mrf.mxu0 }
 0x6a7   :  { %v5424_v31 = vpop.f32.mrf.mxu1 }
 0x6a8   :  { %v5369_v32 = vpop.f32.mrf.mxu0 }
 0x6af   :  { %v1862_v33 = vpop.f32.mrf.mxu1 }
 0x6b0   :  { %v1867_v38 = vrot.slane %v1862_v33, 6  ;;  %v1423_v51 = vpop.f32.mrf.mxu0 }
 0x6b1   :  { %v5446_v7 = vpop.f32.mrf.mxu1 }
 0x6b2   :  { %1868 = vrot.lane.b32.xlu1 %v1867_v38, %s6129_s0  ;;  %v5391_v0 = vpop.f32.mrf.mxu0  ;;  %v6657_v7 = vld [vmem:[#allocation5 + $0x4d7] ss:$0 sm:$0xff] }
 0x6b6   :  { %1428 = vrot.lane.b32.xlu1 %v1423_v51, %s6129_s0 }
 0x6b8   :  { %v6653_v48 = vpop.f32.mrf.mxu0 }
 0x6ba   :  { %v5413_v10 = vpop.f32.mrf.mxu0 }
 0x6c0   :  { %v1780_v21 = vpop.f32.mrf.mxu0 }
 0x6c1   :  { %v1785_v26 = vrot.slane %v1780_v21, 6 }
 0x6c2   :  { %v5435_v25 = vpop.f32.mrf.mxu0 }
 0x6c3   :  { %1786 = vrot.lane.b32.xlu1 %v1785_v26, %s6126_s1  ;;  %v989_v26 = vadd.f32 %v985_v8, %v6657_v7 }
 0x6c8   :  { %v1939_v27 = vpop.f32.mrf.mxu0 }
 0x6c9   :  { %v1944_v21 = vrot.slane %v1939_v27, 6 }
 0x6ca   :  { %v5457_v31 = vpop.f32.mrf.mxu0 }
 0x708   :  { %v1342_v32 = vpop.permute.xlu0 %1341 }
 0x709   :  { %v1344_v0 = vadd.f32 %v1342_v32, %v6657_v7  ;;  %v1063_v32 = vadd.f32 %v1059_v2, %v989_v26  ;;  %v533_v2 = vld [vmem:[#allocation7 + $0x2] sm:$0x3] }
 0x724   :  { %v1869_v24 = vpop.permute.xlu1 %1868 }
 0x725   :  { %v1871_v33 = vadd.f32 %v1869_v24, %v6355_v50  ;;  %v1705_v24 = vrot.slane %v1700_v29, 6 }
 0x727   :  { %5864 = vtanh.f32 %v1871_v33  ;;  %v1707_v31 = vadd.f32 %v1705_v24, %v6355_v50 }
 0x728   :  { %v1429_v38 = vpop.permute.xlu1 %1428 }
 0x729   :  { %v1431_v51 = vadd.f32 %v1429_v38, %v1344_v0  ;;  %v4883_v33 = vmul.f32 -1.442695, %v1707_v31  ;;  %v4873_v0 = vmul.f32 -1.442695, %v1063_v32 }
 0x72b   :  { %5866 = vtanh.f32 %v1431_v51 }
 0x72c   :  { %5868 = vpow2.f32 %v4883_v33 }
 0x72d   :  { %5870 = vpow2.f32 %v4873_v0  ;;  %v1956_v0 = vrot.slane %v6365_v12, 6 }
 0x734   :  { %v5865_v10 = vpop.eup %5864 }
 0x735   :  { %1960 = vrot.lane.b32.xlu0 %v5865_v10, %s6129_s0  ;;  %v1787_v24 = vpop.permute.xlu1 %1786 }
 0x738   :  { %v5867_v25 = vpop.eup %5866 }
 0x739   :  { %1619 = vrot.lane.b32.xlu0 %v5867_v25, %s6129_s0  ;;  %v5869_v38 = vpop.eup %5868 }
 0x73a   :  { %v1711_v51 = vadd.f32 1.0, %v5869_v38  ;;  %v5871_v10 = vpop.eup %5870 }
 0x73b   :  { %v1067_v23 = vadd.f32 1.0, %v5871_v10 }
 0x73c   :  { %5872 = vrcp.f32 %v1711_v51 }
 0x73d   :  { %1157 = vrot.lane.b32.xlu0 %v1152_v9, %s6126_s1  ;;  %5874 = vrcp.f32 %v1067_v23  ;;  %v1789_v23 = vadd.f32 %v1787_v24, %v6355_v50 }
 0x73f   :  { %v4885_v26 = vmul.f32 -1.442695, %v1789_v23 }
 0x741   :  { %1945 = vrot.lane.b32.xlu0 %v1944_v21, %s6130_s3  ;;  %5876 = vpow2.f32 %v4885_v26 }
 0x749   :  { %v5873_v9 = vpop.eup %5872 }
 0x74a   :  { %v5875_v29 = vpop.eup %5874 }
 0x74e   :  { %v5877_v31 = vpop.eup %5876 }
 0x74f   :  { %v1793_v32 = vadd.f32 1.0, %v5877_v31 }
 0x751   :  { %5878 = vrcp.f32 %v1793_v32 }
 0x75e   :  { %v5879_v33 = vpop.eup %5878 }
 0x75f   :  { %v1958_v38 = vmul.f32 %v5879_v33, %v1956_v0 }
 0x7a7   :  { %v1961_v27 = vpop.permute.xlu0 %1960 }
 0x7a8   :  { %v1963_v25 = vmul.f32 %v5873_v9, %v1961_v27 }
 0x7aa   :  { %1965 = vrot.lane.b32.xlu1 %v1963_v25, %s6126_s1 }
 0x7ab   :  { %v1620_v8 = vpop.permute.xlu0 %1619 }
 0x7ac   :  { %v1622_v21 = vmul.f32 %v5875_v29, %v1620_v8 }
 0x7ae   :  { %1248 = vrot.lane.b32.xlu1 %v1243_v30, %s6126_s1  ;;  %1624 = vrot.lane.b32.xlu0 %v1622_v21, %s6126_s1 }
 0x7af   :  { %v1158_v30 = vpop.permute.xlu0 %1157 }
 0x7b2   :  { %1516 = vrot.lane.b32.xlu0 %v1511_v18, %s6130_s3  ;;  %1614 = vrot.lane.b32.xlu1 %v533_v2, %s6126_s1  ;;  %v1160_v18 = vadd.f32 %v1158_v30, %v6657_v7 }
 0x7b3   :  { %v1946_v21 = vpop.permute.xlu0 %1945 }
 0x7b4   :  { %v1948_v33 = vadd.f32 %v1946_v21, %v6355_v50 }
 0x7b6   :  { %v4888_v0 = vmul.f32 -1.442695, %v1948_v33  ;;  %v7211_v33 = vmov 0.0  }
 0x81c   :  { %v1966_v51 = vpop.permute.xlu1 %1965 }
 0x81d   :  { %v6673_v10 = vadd.f32 %v1966_v51, %v1958_v38 }
 0x81f   :  { %5880 = vtanh.f32 %v6673_v10 }
 0x820   :  { %v1249_v9 = vpop.permute.xlu1 %1248  ;;  %v1625_v26 = vpop.permute.xlu0 %1624 }
 0x821   :  { %v1251_v27 = vadd.f32 %v1249_v9, %v1160_v18 }
 0x823   :  { %v4876_v25 = vmul.f32 -1.442695, %v1251_v27 }
 0x824   :  { %v1615_v2 = vpop.permute.xlu1 %1614  ;;  %v1517_v51 = vpop.permute.xlu0 %1516 }
 0x825   :  { %5882 = vpow2.f32 %v4876_v25  ;;  %v1519_v27 = vadd.f32 %v1517_v51, %v6657_v7 }
 0x82c   :  { %v5881_v29 = vpop.eup %5880 }
 0x82d   :  { %1971 = vrot.lane.b32.xlu1 %v5881_v29, %s6129_s0 }
 0x831   :  { %1603 = vrot.lane.b32.xlu1 %v6653_v48, %s6130_s3 }
 0x832   :  { %v5883_v12 = vpop.eup %5882 }
 0x833   :  { %v1255_v8 = vadd.f32 1.0, %v5883_v12 }
 0x835   :  { %5884 = vrcp.f32 %v1255_v8 }
 0x842   :  { %v5885_v24 = vpop.eup %5884 }
 0x843   :  { %v1617_v23 = vmul.f32 %v5885_v24, %v1615_v2 }
 0x845   :  { %v6680_v31 = vadd.f32 %v1625_v26, %v1617_v23 }
 0x847   :  { %5886 = vtanh.f32 %v6680_v31 }
 0x848   :  { %5888 = vpow2.f32 %v4888_v0  ;;  %v6731_v0 = vld [vmem:[#allocation5 + $0x3c0] sm:$0xff] }
 0x854   :  { %v5887_v32 = vpop.eup %5886 }
 0x855   :  { %1630 = vrot.lane.b32.xlu0 %v5887_v32, %s6129_s0  ;;  %v5889_v48 = vpop.eup %5888 }
 0x856   :  { %v1952_v38 = vadd.f32 1.0, %v5889_v48  ;;  %v6737_v48 = vld [vmem:[#allocation5 + $0x3b0] sm:$0xff] }
 0x858   :  { %5890 = vrcp.f32 %v1952_v38  ;;  %v6741_v38 = vld [vmem:[#allocation5 + $0x3a0] sm:$0xff] }
 0x865   :  { %v5891_v30 = vpop.eup %5890 }
 0x89f   :  { %v1972_v18 = vpop.permute.xlu1 %1971 }
 0x8a0   :  { %v1974_v9 = vmul.f32 %v5891_v30, %v1972_v18  ;;  %v6745_v30 = vld [vmem:[#allocation5 + $0x390] sm:$0xff] }
 0x8a2   :  { %v1976_v25 = vrot.slane %v1974_v9, 2 }
 0x8a3   :  { %v1604_v29 = vpop.permute.xlu1 %1603 }
 0x8a4   :  { %v1606_v12 = vadd.f32 %v1604_v29, %v1519_v27  ;;  %1977 = vrot.lane.b32.xlu1 %v1976_v25, %s6126_s1 }
 0x8a6   :  { %v4881_v8 = vmul.f32 -1.442695, %v1606_v12 }
 0x8a8   :  { %5892 = vpow2.f32 %v4881_v8 }
 0x8b5   :  { %v5893_v2 = vpop.eup %5892 }
 0x8b6   :  { %v1610_v21 = vadd.f32 1.0, %v5893_v2 }
 0x8b8   :  { %5894 = vrcp.f32 %v1610_v21 }
 0x8c5   :  { %v5895_v24 = vpop.eup %5894 }
 0x8c7   :  { %v1631_v23 = vpop.permute.xlu0 %1630 }
 0x8c8   :  { %v6687_v26 = vmul.f32 %v5895_v24, %v1631_v23 }
 0x8ca   :  { %7210 = vst [vmem:[#allocation20_spill] sm:$0xff] %v6687_v26  ;;  %2053 = vrot.lane.b32.xlu0 %v6687_v26, %s6126_s1 }
 0x916   :  { %v6691_v32 = vpop.permute.xlu1 %1977 }
 0x917   :  { %5467 = vmatmul.mubr.msk.f32.vlgmr.msra.gmra.mxu1 %vm534_vm2, %v6691_v32 }
 0x918   :  { %5481 = vmatpush3.msra.mxu1 %v6436_v39  ;;  %5488 = vmatprep.mubr.msk.f32.mxu1 %vm6131_vm3, %v7211_v33 }
 0x919   :  { %5482 = vmatprep.subr.mxu1 %v7211_v33 }
 0x91a   :  { %5483 = vmatpush3.msra.mxu1 %v6484_v52 }
 0x91b   :  { %5484 = vmatprep.subr.mxu1 %v7211_v33 }
 0x91c   :  { %5485 = vmatpush3.msra.mxu1 %v6440_v40 }
 0x91d   :  { %5486 = vmatprep.subr.mxu1 %v7211_v33 }
 0x91e   :  { %5487 = vmatpush3.msra.mxu1 %v6490_v53 }
 0x91f   :  { %5489 = vmatmul.mubr.msk.f32.vlgmr.msra.gmra.mxu1 %vm534_vm2, %v6691_v32  ;;  %5502 = vmatprep.subr.mxu1 %v7211_v33 }
 0x920   :  { %5503 = vmatpush3.msra.mxu1 %v6444_v41  ;;  %5510 = vmatprep.mubr.msk.f32.mxu1 %vm6131_vm3, %v7211_v33 }
 0x921   :  { %5504 = vmatprep.subr.mxu1 %v7211_v33 }
 0x922   :  { %5505 = vmatpush3.msra.mxu1 %v6500_v54 }
 0x923   :  { %5506 = vmatprep.subr.mxu1 %v7211_v33 }
 0x924   :  { %5507 = vmatpush3.msra.mxu1 %v6448_v42 }
 0x925   :  { %5508 = vmatprep.subr.mxu1 %v7211_v33 }
 0x926   :  { %5509 = vmatpush3.msra.mxu1 %v6506_v55 }
 0x927   :  { %5511 = vmatmul.mubr.msk.f32.vlgmr.msra.gmra.mxu1 %vm534_vm2, %v6691_v32  ;;  %5524 = vmatprep.subr.mxu1 %v7211_v33 }
 0x928   :  { %5525 = vmatpush3.msra.mxu1 %v6452_v44  ;;  %5532 = vmatprep.mubr.msk.f32.mxu1 %vm6131_vm3, %v7211_v33 }
 0x929   :  { %5526 = vmatprep.subr.mxu1 %v7211_v33 }
 0x92a   :  { %5527 = vmatpush3.msra.mxu1 %v6516_v56 }
 0x92b   :  { %5528 = vmatprep.subr.mxu1 %v7211_v33 }
 0x92c   :  { %5529 = vmatpush3.msra.mxu1 %v6456_v28 }
 0x92d   :  { %5530 = vmatprep.subr.mxu1 %v7211_v33 }
 0x92e   :  { %5531 = vmatpush3.msra.mxu1 %v6524_v58 }
 0x92f   :  { %5533 = vmatmul.mubr.msk.f32.vlgmr.msra.gmra.mxu1 %vm534_vm2, %v6691_v32  ;;  %5546 = vmatprep.subr.mxu1 %v7211_v33 }
 0x930   :  { %5547 = vmatpush3.msra.mxu1 %v6731_v0  ;;  %5554 = vmatprep.mubr.msk.f32.mxu1 %vm6131_vm3, %v7211_v33 }
 0x931   :  { %5548 = vmatprep.subr.mxu1 %v7211_v33 }
 0x932   :  { %5549 = vmatpush3.msra.mxu1 %v6737_v48 }
 0x933   :  { %5550 = vmatprep.subr.mxu1 %v7211_v33 }
 0x934   :  { %5551 = vmatpush3.msra.mxu1 %v6741_v38 }
 0x935   :  { %5552 = vmatprep.subr.mxu1 %v7211_v33 }
 0x936   :  { %5553 = vmatpush3.msra.mxu1 %v6745_v30 }
 0x937   :  { %5555 = vmatmul.mubr.msk.f32.vlgmr.msra.gmra.mxu1 %vm534_vm2, %v6691_v32  ;;  %5568 = vmatprep.subr.mxu1 %v7211_v33 }
 0x938   :  { %5569 = vmatpush3.msra.mxu1 %v6277_v43  ;;  %5576 = vmatprep.mubr.msk.f32.mxu1 %vm6131_vm3, %v7211_v33 }
 0x939   :  { %5570 = vmatprep.subr.mxu1 %v7211_v33 }
 0x93a   :  { %5571 = vmatpush3.msra.mxu1 %v6281_v45 }
 0x93b   :  { %5572 = vmatprep.subr.mxu1 %v7211_v33 }
 0x93c   :  { %5573 = vmatpush3.msra.mxu1 %v6286_v46  ;;  %v2054_v51 = vpop.permute.xlu0 %2053 }
 0x93d   :  { %5574 = vmatprep.subr.mxu1 %v7211_v33  ;;  %5478 = vmatmul.mubr.msk.f32.vlgmr.msra.gmra.mxu0 %vm534_vm2, %v2054_v51 }
 0x93e   :  { %5492 = vmatpush3.msra.mxu0 %v6460_v49  ;;  %5575 = vmatpush3.msra.mxu1 %v6292_v47 }
 0x93f   :  { %5493 = vmatprep.subr.mxu0 %v7211_v33  ;;  %5577 = vmatmul.mubr.msk.f32.vlgmr.msra.gmra.mxu1 %vm534_vm2, %v6691_v32 }
 0x940   :  { %5494 = vmatpush3.msra.mxu0 %v6534_v59  ;;  %5499 = vmatprep.mubr.msk.f32.mxu0 %vm6131_vm3, %v7211_v33 }
 0x941   :  { %5495 = vmatprep.subr.mxu0 %v7211_v33  ;;  %5590 = vmatprep.subr.mxu1 %v7211_v33 }
 0x942   :  { %5496 = vmatpush3.msra.mxu0 %v6521_v57  ;;  %5591 = vmatpush3.msra.mxu1 %v6368_v16  ;;  %v7212_v16 = vld [vmem:[#allocation17_spill] sm:$0xff] }
 0x943   :  { %5497 = vmatprep.subr.mxu0 %v7211_v33  ;;  %5592 = vmatprep.subr.mxu1 %v7211_v33 }
 0x944   :  { %5498 = vmatpush3.msra.mxu0 %v6546_v3  ;;  %5593 = vmatpush3.msra.mxu1 %v6371_v17  ;;  %v7213_v17 = vld [vmem:[#allocation18_spill] sm:$0xff] }
 0x945   :  { %5500 = vmatmul.mubr.msk.f32.vlgmr.msra.gmra.mxu0 %vm534_vm2, %v2054_v51  ;;  %5513 = vmatprep.subr.mxu0 %v7211_v33 }
 0x946   :  { %5514 = vmatpush3.msra.mxu0 %v6538_v60  ;;  %5521 = vmatprep.mubr.msk.f32.mxu0 %vm6131_vm3, %v7211_v33 }
 0x947   :  { %5515 = vmatprep.subr.mxu0 %v7211_v33  ;;  %5594 = vmatprep.subr.mxu1 %v7211_v33 }
 0x948   :  { %5516 = vmatpush3.msra.mxu0 %v6560_v5  ;;  %5595 = vmatpush3.msra.mxu1 %v6375_v19  ;;  %v7214_v19 = vld [vmem:[#allocation19_spill] sm:$0xff] }
 0x949   :  { %5517 = vmatprep.subr.mxu0 %v7211_v33  ;;  %5596 = vmatprep.subr.mxu1 %v7211_v33 }
 0x94a   :  { %5518 = vmatpush3.msra.mxu0 %v6556_v4  ;;  %5597 = vmatpush3.msra.mxu1 %v6379_v20 }
 0x94b   :  { %5519 = vmatprep.subr.mxu0 %v7211_v33  ;;  %5598 = vmatprep.mubr.msk.f32.mxu1 %vm6131_vm3, %v7211_v33 }
 0x94c   :  { %5520 = vmatpush3.msra.mxu0 %v6570_v6  ;;  %5612 = vmatprep.subr.mxu1 %v7211_v33 }
 0x94d   :  { %5522 = vmatmul.mubr.msk.f32.vlgmr.msra.gmra.mxu0 %vm534_vm2, %v2054_v51  ;;  %5535 = vmatprep.subr.mxu0 %v7211_v33 }
 0x94e   :  { %5536 = vmatpush3.msra.mxu0 %v6574_v61  ;;  %5543 = vmatprep.mubr.msk.f32.mxu0 %vm6131_vm3, %v7211_v33 }
 0x94f   :  { %5537 = vmatprep.subr.mxu0 %v7211_v33 }
 0x950   :  { %5538 = vmatpush3.msra.mxu0 %v6585_v62 }
 0x951   :  { %5539 = vmatprep.subr.mxu0 %v7211_v33 }
 0x952   :  { %5540 = vmatpush3.msra.mxu0 %v6594_v63 }
 0x953   :  { %5541 = vmatprep.subr.mxu0 %v7211_v33 }
 0x954   :  { %5542 = vmatpush3.msra.mxu0 %v6600_v1 }
 0x955   :  { %5544 = vmatmul.mubr.msk.f32.vlgmr.msra.gmra.mxu0 %vm534_vm2, %v2054_v51  ;;  %5557 = vmatprep.subr.mxu0 %v7211_v33 }
 0x956   :  { %5558 = vmatpush3.msra.mxu0 %v6253_v34  ;;  %5565 = vmatprep.mubr.msk.f32.mxu0 %vm6131_vm3, %v7211_v33 }
 0x957   :  { %5559 = vmatprep.subr.mxu0 %v7211_v33 }
 0x958   :  { %5560 = vmatpush3.msra.mxu0 %v6257_v35 }
 0x959   :  { %5561 = vmatprep.subr.mxu0 %v7211_v33 }
 0x95a   :  { %5562 = vmatpush3.msra.mxu0 %v6259_v36 }
 0x95b   :  { %5563 = vmatprep.subr.mxu0 %v7211_v33 }
 0x95c   :  { %5564 = vmatpush3.msra.mxu0 %v6264_v37 }
 0x95d   :  { %5566 = vmatmul.mubr.msk.f32.vlgmr.msra.gmra.mxu0 %vm534_vm2, %v6691_v32  ;;  %5579 = vmatprep.subr.mxu0 %v7211_v33 }
 0x95e   :  { %5580 = vmatpush3.msra.mxu0 %v6322_v11  ;;  %5587 = vmatprep.mubr.msk.f32.mxu0 %vm6131_vm3, %v7211_v33 }
 0x95f   :  { %5581 = vmatprep.subr.mxu0 %v7211_v33 }
 0x960   :  { %5582 = vmatpush3.msra.mxu0 %v6325_v13 }
 0x961   :  { %5583 = vmatprep.subr.mxu0 %v7211_v33 }
 0x962   :  { %5584 = vmatpush3.msra.mxu0 %v6332_v14 }
 0x963   :  { %5585 = vmatprep.subr.mxu0 %v7211_v33 }
 0x964   :  { %5586 = vmatpush3.msra.mxu0 %v6336_v15 }
 0x965   :  { %5588 = vmatmul.mubr.msk.f32.vlgmr.msra.gmra.mxu0 %vm534_vm2, %v6691_v32  ;;  %5601 = vmatprep.subr.mxu0 %v7211_v33 }
 0x966   :  { %5602 = vmatpush3.msra.mxu0 %v6391_v22  ;;  %5609 = vmatprep.mubr.msk.f32.mxu0 %vm6131_vm3, %v7211_v33 }
 0x967   :  { %5603 = vmatprep.subr.mxu0 %v7211_v33 }
 0x968   :  { %5604 = vmatpush3.msra.mxu0 %v7212_v16 }
 0x969   :  { %5605 = vmatprep.subr.mxu0 %v7211_v33 }
 0x96a   :  { %5606 = vmatpush3.msra.mxu0 %v7213_v17 }
 0x96b   :  { %5607 = vmatprep.subr.mxu0 %v7211_v33 }
 0x96c   :  { %5608 = vmatpush3.msra.mxu0 %v7214_v19 }
 0x96d   :  { %5623 = vmatprep.subr.mxu0 %v7211_v33 }
 0x9d7   :  { %v2047_v20 = vpop.f32.mrf.mxu1 }
 0x9d8   :  { %v2051_v21 = vadd.f32 %v2047_v20, %v6657_v7 }
 0x9d9   :  { %v5468_v18 = vpop.f32.mrf.mxu1 }
 0x9df   :  { %v2200_v22 = vpop.f32.mrf.mxu1 }
 0x9e1   :  { %v5490_v9 = vpop.f32.mrf.mxu1 }
 0x9e7   :  { %v2356_v27 = vpop.f32.mrf.mxu1 }
 0x9e8   :  { %2361 = vrot.lane.b32.xlu0 %v2356_v27, %s6129_s0 }
 0x9e9   :  { %v5512_v25 = vpop.f32.mrf.mxu1 }
 0x9ef   :  { %v2507_v29 = vpop.f32.mrf.mxu1 }
 0x9f1   :  { %v5534_v12 = vpop.f32.mrf.mxu1 }
 0x9f7   :  { %v2680_v8 = vpop.f32.mrf.mxu1 }
 0x9f9   :  { %v5556_v2 = vpop.f32.mrf.mxu1 }
 0x9fd   :  { %v2123_v24 = vpop.f32.mrf.mxu0 }
 0x9fe   :  { %v2127_v23 = vadd.f32 %v2123_v24, %v2051_v21 }
 0x9ff   :  { %v2842_v32 = vpop.f32.mrf.mxu1  ;;  %v5479_v51 = vpop.f32.mrf.mxu0 }
 0xa00   :  { %v2847_v16 = vrot.slane %v2842_v32, 4 }
 0xa01   :  { %v5578_v17 = vpop.f32.mrf.mxu1 }
 0xa02   :  { %2848 = vrot.lane.b32.xlu1 %v2847_v16, %s6129_s0 }
 0xa05   :  { %v2275_v19 = vpop.f32.mrf.mxu0 }
 0xa07   :  { %v5501_v18 = vpop.f32.mrf.mxu0 }
 0xa0d   :  { %v2431_v9 = vpop.f32.mrf.mxu0 }
 0xa0e   :  { %2436 = vrot.lane.b32.xlu1 %v2431_v9, %s6129_s0 }
 0xa0f   :  { %v5523_v27 = vpop.f32.mrf.mxu0 }
 0xa15   :  { %v2582_v25 = vpop.f32.mrf.mxu0 }
 0xa17   :  { %v5545_v12 = vpop.f32.mrf.mxu0 }
 0xa18   :  { %v4891_v12 = vmul.f32 -1.442695, %v2127_v23 }
 0xa1d   :  { %v2760_v26 = vpop.f32.mrf.mxu0 }
 0xa1e   :  { %v2765_v2 = vrot.slane %v2760_v26, 4  ;;  %v2685_v26 = vrot.slane %v2680_v8, 4 }
 0xa1f   :  { %v5567_v15 = vpop.f32.mrf.mxu0 }
 0xa20   :  { %2766 = vrot.lane.b32.xlu1 %v2765_v2, %s6126_s1 }
 0xa24   :  { %2205 = vrot.lane.b32.xlu1 %v2200_v22, %s6126_s1  ;;  %v2687_v22 = vadd.f32 %v2685_v26, %v6355_v50 }
 0xa25   :  { %v2919_v20 = vpop.f32.mrf.mxu0 }
 0xa26   :  { %v4901_v27 = vmul.f32 -1.442695, %v2687_v22 }
 0xa27   :  { %v5589_v21 = vpop.f32.mrf.mxu0 }
 0xa5a   :  { %v2362_v51 = vpop.permute.xlu0 %2361 }
 0xa5b   :  { %v2364_v16 = vadd.f32 %v2362_v51, %v6657_v7 }
 0xa74   :  { %v2849_v24 = vpop.permute.xlu1 %2848 }
 0xa75   :  { %v2851_v32 = vadd.f32 %v2849_v24, %v6355_v50 }
 0xa77   :  { %5896 = vtanh.f32 %v2851_v32 }
 0xa80   :  { %v2437_v17 = vpop.permute.xlu1 %2436 }
 0xa81   :  { %v2439_v18 = vadd.f32 %v2437_v17, %v2364_v16 }
 0xa83   :  { %5898 = vtanh.f32 %v2439_v18  ;;  %v2924_v18 = vrot.slane %v2919_v20, 4 }
 0xa84   :  { %v5897_v9 = vpop.eup %5896  ;;  %5900 = vpow2.f32 %v4901_v27 }
 0xa85   :  { %2940 = vrot.lane.b32.xlu0 %v5897_v9, %s6129_s0  ;;  %5902 = vpow2.f32 %v4891_v12 }
 0xa90   :  { %v5899_v15 = vpop.eup %5898 }
 0xa91   :  { %2599 = vrot.lane.b32.xlu0 %v5899_v15, %s6129_s0  ;;  %v5901_v2 = vpop.eup %5900 }
 0xa92   :  { %v2691_v21 = vadd.f32 1.0, %v5901_v2  ;;  %v5903_v24 = vpop.eup %5902  ;;  %v2767_v9 = vpop.permute.xlu1 %2766 }
 0xa93   :  { %v2131_v32 = vadd.f32 1.0, %v5903_v24  ;;  %v2769_v15 = vadd.f32 %v2767_v9, %v6355_v50 }
 0xa94   :  { %5904 = vrcp.f32 %v2691_v21 }
 0xa95   :  { %2280 = vrot.lane.b32.xlu0 %v2275_v19, %s6126_s1  ;;  %5906 = vrcp.f32 %v2131_v32  ;;  %v4903_v26 = vmul.f32 -1.442695, %v2769_v15 }
 0xa96   :  { %v2206_v22 = vpop.permute.xlu1 %2205 }
 0xa97   :  { %5908 = vpow2.f32 %v4903_v26  ;;  %v2208_v20 = vadd.f32 %v2206_v22, %v6657_v7 }
 0xaa1   :  { %v5905_v51 = vpop.eup %5904 }
 0xaa2   :  { %v5907_v8 = vpop.eup %5906 }
 0xaf7   :  { %v2941_v16 = vpop.permute.xlu0 %2940 }
 0xaf8   :  { %v2943_v17 = vmul.f32 %v5905_v51, %v2941_v16 }
 0xafa   :  { %2945 = vrot.lane.b32.xlu1 %v2943_v17, %s6126_s1 }
 0xafe   :  { %2925 = vrot.lane.b32.xlu1 %v2924_v18, %s6130_s3 }
 0xb02   :  { %2587 = vrot.lane.b32.xlu1 %v2582_v25, %s6130_s3  ;;  %v5909_v25 = vpop.eup %5908 }
 0xb03   :  { %v2600_v19 = vpop.permute.xlu0 %2599  ;;  %v2773_v21 = vadd.f32 1.0, %v5909_v25 }
 0xb04   :  { %v2602_v23 = vmul.f32 %v5907_v8, %v2600_v19 }
 0xb06   :  { %2604 = vrot.lane.b32.xlu0 %v2602_v23, %s6126_s1 }
 0xb07   :  { %v2281_v27 = vpop.permute.xlu0 %2280 }
 0xb08   :  { %v2283_v12 = vadd.f32 %v2281_v27, %v2208_v20 }
 0xb0a   :  { %2512 = vrot.lane.b32.xlu0 %v2507_v29, %s6130_s3  ;;  %v4894_v2 = vmul.f32 -1.442695, %v2283_v12  ;;  %v2936_v29 = vrot.slane %v6673_v10, 6 }
 0xb0c   :  { %5910 = vpow2.f32 %v4894_v2 }
 0xb0d   :  { %5912 = vrcp.f32 %v2773_v21 }
 0xb19   :  { %v5911_v24 = vpop.eup %5910 }
 0xb1a   :  { %v2287_v32 = vadd.f32 1.0, %v5911_v24  ;;  %v5913_v51 = vpop.eup %5912 }
 0xb1b   :  { %v2938_v16 = vmul.f32 %v5913_v51, %v2936_v29 }
 0xb1c   :  { %5914 = vrcp.f32 %v2287_v32 }
 0xb29   :  { %v5915_v8 = vpop.eup %5914 }
 0xb2a   :  { %v2597_v19 = vmul.f32 %v5915_v8, %v6680_v31 }
 0xb6c   :  { %v2946_v17 = vpop.permute.xlu1 %2945 }
 0xb6d   :  { %v6861_v18 = vadd.f32 %v2946_v17, %v2938_v16 }
 0xb6f   :  { %5916 = vtanh.f32 %v6861_v18 }
 0xb70   :  { %v2926_v10 = vpop.permute.xlu1 %2925 }
 0xb71   :  { %v2928_v22 = vadd.f32 %v2926_v10, %v6355_v50 }
 0xb73   :  { %v4906_v27 = vmul.f32 -1.442695, %v2928_v22 }
 0xb74   :  { %v2588_v31 = vpop.permute.xlu1 %2587 }
 0xb78   :  { %v2605_v23 = vpop.permute.xlu0 %2604 }
 0xb79   :  { %v6865_v9 = vadd.f32 %v2605_v23, %v2597_v19 }
 0xb7b   :  { %5918 = vtanh.f32 %v6865_v9 }
 0xb7c   :  { %v5917_v15 = vpop.eup %5916  ;;  %v2513_v20 = vpop.permute.xlu0 %2512  ;;  %5920 = vpow2.f32 %v4906_v27 }
 0xb7d   :  { %2951 = vrot.lane.b32.xlu0 %v5917_v15, %s6129_s0  ;;  %v2515_v12 = vadd.f32 %v2513_v20, %v6657_v7 }
 0xb7f   :  { %v2590_v2 = vadd.f32 %v2588_v31, %v2515_v12 }
 0xb81   :  { %v4899_v25 = vmul.f32 -1.442695, %v2590_v2 }
 0xb83   :  { %5922 = vpow2.f32 %v4899_v25 }
 0xb88   :  { %v5919_v26 = vpop.eup %5918 }
 0xb89   :  { %2610 = vrot.lane.b32.xlu1 %v5919_v26, %s6129_s0  ;;  %v5921_v21 = vpop.eup %5920 }
 0xb8a   :  { %v2932_v24 = vadd.f32 1.0, %v5921_v21 }
 0xb8c   :  { %5924 = vrcp.f32 %v2932_v24 }
 0xb90   :  { %v5923_v32 = vpop.eup %5922 }
 0xb91   :  { %v2594_v51 = vadd.f32 1.0, %v5923_v32 }
 0xb93   :  { %5926 = vrcp.f32 %v2594_v51 }
 0xb99   :  { %v5925_v29 = vpop.eup %5924 }
 0xba0   :  { %v5927_v19 = vpop.eup %5926 }
 0xbef   :  { %v2952_v16 = vpop.permute.xlu0 %2951 }
 0xbf0   :  { %v2954_v17 = vmul.f32 %v5925_v29, %v2952_v16 }
 0xbf2   :  { %v2956_v8 = vrot.slane %v2954_v17, 4 }
 0xbf4   :  { %2957 = vrot.lane.b32.xlu0 %v2956_v8, %s6126_s1 }
 0xbfb   :  { %v2611_v23 = vpop.permute.xlu1 %2610 }
 0xbfc   :  { %v6873_v15 = vmul.f32 %v5927_v19, %v2611_v23 }
 0xbfe   :  { %3033 = vrot.lane.b32.xlu1 %v6873_v15, %s6126_s1 }
 0xc66   :  { %v6877_v26 = vpop.permute.xlu0 %2957 }
 0xc67   :  { %5599 = vmatmul.mubr.msk.f32.vlgmr.msra.gmra.mxu1 %vm534_vm2, %v6877_v26 }
 0xc68   :  { %5613 = vmatpush3.msra.mxu1 %v6436_v39  ;;  %5620 = vmatprep.mubr.msk.f32.mxu1 %vm6131_vm3, %v7211_v33 }
 0xc69   :  { %5614 = vmatprep.subr.mxu1 %v7211_v33 }
 0xc6a   :  { %5615 = vmatpush3.msra.mxu1 %v6484_v52 }
 0xc6b   :  { %5616 = vmatprep.subr.mxu1 %v7211_v33 }
 0xc6c   :  { %5617 = vmatpush3.msra.mxu1 %v6440_v40 }
 0xc6d   :  { %5618 = vmatprep.subr.mxu1 %v7211_v33 }
 0xc6e   :  { %5619 = vmatpush3.msra.mxu1 %v6490_v53 }
 0xc6f   :  { %5621 = vmatmul.mubr.msk.f32.vlgmr.msra.gmra.mxu1 %vm534_vm2, %v6877_v26  ;;  %5634 = vmatprep.subr.mxu1 %v7211_v33 }
 0xc70   :  { %5635 = vmatpush3.msra.mxu1 %v6444_v41  ;;  %v3034_v10 = vpop.permute.xlu1 %3033  ;;  %5642 = vmatprep.mubr.msk.f32.mxu1 %vm6131_vm3, %v7211_v33 }
 0xc71   :  { %5636 = vmatprep.subr.mxu1 %v7211_v33  ;;  %5610 = vmatmul.mubr.msk.f32.vlgmr.msra.gmra.mxu0 %vm534_vm2, %v3034_v10 }
 0xc72   :  { %5624 = vmatpush3.msra.mxu0 %v6460_v49  ;;  %5637 = vmatpush3.msra.mxu1 %v6500_v54 }
 0xc73   :  { %5625 = vmatprep.subr.mxu0 %v7211_v33  ;;  %5638 = vmatprep.subr.mxu1 %v7211_v33 }
 0xc74   :  { %5626 = vmatpush3.msra.mxu0 %v6534_v59  ;;  %5639 = vmatpush3.msra.mxu1 %v6448_v42 }
 0xc75   :  { %5627 = vmatprep.subr.mxu0 %v7211_v33  ;;  %5640 = vmatprep.subr.mxu1 %v7211_v33 }
 0xc76   :  { %5628 = vmatpush3.msra.mxu0 %v6521_v57  ;;  %5641 = vmatpush3.msra.mxu1 %v6506_v55 }
 0xc77   :  { %5629 = vmatprep.subr.mxu0 %v7211_v33  ;;  %5643 = vmatmul.mubr.msk.f32.vlgmr.msra.gmra.mxu1 %vm534_vm2, %v6877_v26 }
 0xc78   :  { %5656 = vmatprep.subr.mxu1 %v7211_v33  ;;  %5630 = vmatpush3.msra.mxu0 %v6546_v3 }
 0xc79   :  { %5631 = vmatprep.mubr.msk.f32.mxu0 %vm6131_vm3, %v7211_v33  ;;  %5657 = vmatpush3.msra.mxu1 %v6452_v44 }
 0xc7a   :  { %5632 = vmatmul.mubr.msk.f32.vlgmr.msra.gmra.mxu0 %vm534_vm2, %v3034_v10  ;;  %5645 = vmatprep.subr.mxu0 %v7211_v33 }
 0xc7b   :  { %5658 = vmatprep.subr.mxu1 %v7211_v33  ;;  %5646 = vmatpush3.msra.mxu0 %v6538_v60 }
 0xc7c   :  { %5659 = vmatpush3.msra.mxu1 %v6516_v56  ;;  %5647 = vmatprep.subr.mxu0 %v7211_v33 }
 0xc7d   :  { %5660 = vmatprep.subr.mxu1 %v7211_v33  ;;  %5648 = vmatpush3.msra.mxu0 %v6560_v5 }
 0xc7e   :  { %5661 = vmatpush3.msra.mxu1 %v6456_v28  ;;  %5649 = vmatprep.subr.mxu0 %v7211_v33 }
 0xc7f   :  { %5662 = vmatprep.subr.mxu1 %v7211_v33  ;;  %5650 = vmatpush3.msra.mxu0 %v6556_v4 }
 0xc80   :  { %5663 = vmatpush3.msra.mxu1 %v6524_v58  ;;  %5664 = vmatprep.mubr.msk.f32.mxu1 %vm6131_vm3, %v7211_v33 }
 0xc81   :  { %5651 = vmatprep.subr.mxu0 %v7211_v33  ;;  %5665 = vmatmul.mubr.msk.f32.vlgmr.msra.gmra.mxu1 %vm534_vm2, %v6877_v26 }
 0xc82   :  { %5678 = vmatprep.subr.mxu1 %v7211_v33  ;;  %5652 = vmatpush3.msra.mxu0 %v6570_v6 }
 0xc83   :  { %5653 = vmatprep.mubr.msk.f32.mxu0 %vm6131_vm3, %v7211_v33  ;;  %5679 = vmatpush3.msra.mxu1 %v6731_v0 }
 0xc84   :  { %5654 = vmatmul.mubr.msk.f32.vlgmr.msra.gmra.mxu0 %vm534_vm2, %v3034_v10  ;;  %5667 = vmatprep.subr.mxu0 %v7211_v33 }
 0xc85   :  { %5680 = vmatprep.subr.mxu1 %v7211_v33  ;;  %5668 = vmatpush3.msra.mxu0 %v6574_v61 }
 0xc86   :  { %5681 = vmatpush3.msra.mxu1 %v6737_v48  ;;  %5669 = vmatprep.subr.mxu0 %v7211_v33 }
 0xc87   :  { %5682 = vmatprep.subr.mxu1 %v7211_v33  ;;  %5670 = vmatpush3.msra.mxu0 %v6585_v62 }
 0xc88   :  { %5683 = vmatpush3.msra.mxu1 %v6741_v38  ;;  %5671 = vmatprep.subr.mxu0 %v7211_v33 }
 0xc89   :  { %5684 = vmatprep.subr.mxu1 %v7211_v33  ;;  %5672 = vmatpush3.msra.mxu0 %v6594_v63 }
 0xc8a   :  { %5685 = vmatpush3.msra.mxu1 %v6745_v30  ;;  %5686 = vmatprep.mubr.msk.f32.mxu1 %vm6131_vm3, %v7211_v33 }
 0xc8b   :  { %5673 = vmatprep.subr.mxu0 %v7211_v33  ;;  %5687 = vmatmul.mubr.msk.f32.vlgmr.msra.gmra.mxu1 %vm534_vm2, %v6877_v26 }
 0xc8c   :  { %5700 = vmatprep.subr.mxu1 %v7211_v33  ;;  %5674 = vmatpush3.msra.mxu0 %v6600_v1 }
 0xc8d   :  { %5675 = vmatprep.mubr.msk.f32.mxu0 %vm6131_vm3, %v7211_v33  ;;  %5701 = vmatpush3.msra.mxu1 %v6277_v43  ;;  %v5987_v43 = vld [vmem:[#allocation5 + $0x440] sm:$0xff] }
 0xc8e   :  { %5676 = vmatmul.mubr.msk.f32.vlgmr.msra.gmra.mxu0 %vm534_vm2, %v3034_v10  ;;  %5689 = vmatprep.subr.mxu0 %v7211_v33 }
 0xc8f   :  { %5702 = vmatprep.subr.mxu1 %v7211_v33  ;;  %5690 = vmatpush3.msra.mxu0 %v6253_v34  ;;  %v5984_v34 = vld [vmem:[#allocation5 + $0x400] sm:$0xff] }
 0xc90   :  { %5703 = vmatpush3.msra.mxu1 %v6281_v45  ;;  %5691 = vmatprep.subr.mxu0 %v7211_v33  ;;  %v5988_v45 = vld [vmem:[#allocation5 + $0x3d0] sm:$0xff] }
 0xc91   :  { %5704 = vmatprep.subr.mxu1 %v7211_v33  ;;  %5692 = vmatpush3.msra.mxu0 %v6257_v35  ;;  %v5985_v35 = vld [vmem:[#allocation5 + $0x3f0] sm:$0xff] }
 0xc92   :  { %5705 = vmatpush3.msra.mxu1 %v6286_v46  ;;  %5693 = vmatprep.subr.mxu0 %v7211_v33  ;;  %v5989_v46 = vld [vmem:[#allocation5 + $0x430] sm:$0xff] }
 0xc93   :  { %5706 = vmatprep.subr.mxu1 %v7211_v33  ;;  %5694 = vmatpush3.msra.mxu0 %v6259_v36  ;;  %v7215_v36 = vld [vmem:[#allocation16_spill] sm:$0xff] }
 0xc94   :  { %5707 = vmatpush3.msra.mxu1 %v6292_v47  ;;  %5708 = vmatprep.mubr.msk.f32.mxu1 %vm6131_vm3, %v7211_v33  ;;  %v5990_v47 = vld [vmem:[#allocation5 + $0x420] sm:$0xff] }
 0xc95   :  { %5695 = vmatprep.subr.mxu0 %v7211_v33  ;;  %5709 = vmatmul.mubr.msk.f32.vlgmr.msra.gmra.mxu1 %vm534_vm2, %v6877_v26 }
 0xc96   :  { %5696 = vmatpush3.msra.mxu0 %v6264_v37  ;;  %5697 = vmatprep.mubr.msk.f32.mxu0 %vm6131_vm3, %v7211_v33  ;;  %v5986_v37 = vld [vmem:[#allocation5 + $0x3e0] sm:$0xff] }
 0xc97   :  { %5698 = vmatmul.mubr.msk.f32.vlgmr.msra.gmra.mxu0 %vm534_vm2, %v6877_v26  ;;  %5711 = vmatprep.subr.mxu0 %v7211_v33 }
 0xc98   :  { %5712 = vmatpush3.msra.mxu0 %v6322_v11  ;;  %5719 = vmatprep.mubr.msk.f32.mxu0 %vm6131_vm3, %v7211_v33  ;;  %v5991_v11 = vld [vmem:[#allocation5 + $0x410] sm:$0xff] }
 0xc99   :  { %5713 = vmatprep.subr.mxu0 %v7211_v33  ;;  %5722 = vmatprep.subr.mxu1 %v7211_v33 }
 0xc9a   :  { %5714 = vmatpush3.msra.mxu0 %v6325_v13  ;;  %5723 = vmatpush3.msra.mxu1 %v5984_v34 }
 0xc9b   :  { %5715 = vmatprep.subr.mxu0 %v7211_v33  ;;  %5724 = vmatprep.subr.mxu1 %v7211_v33 }
 0xc9c   :  { %5716 = vmatpush3.msra.mxu0 %v6332_v14  ;;  %5725 = vmatpush3.msra.mxu1 %v5985_v35 }
 0xc9d   :  { %5717 = vmatprep.subr.mxu0 %v7211_v33  ;;  %5726 = vmatprep.subr.mxu1 %v7211_v33 }
 0xc9e   :  { %5718 = vmatpush3.msra.mxu0 %v7215_v36  ;;  %5727 = vmatpush3.msra.mxu1 %v5986_v37 }
 0xc9f   :  { %5720 = vmatmul.mubr.msk.f32.vlgmr.msra.gmra.mxu0 %vm534_vm2, %v6877_v26  ;;  %5733 = vmatprep.subr.mxu0 %v7211_v33 }
 0xca0   :  { %5734 = vmatpush3.msra.mxu0 %v5987_v43  ;;  %5728 = vmatprep.subr.mxu1 %v7211_v33 }
 0xca1   :  { %5735 = vmatprep.subr.mxu0 %v7211_v33  ;;  %5729 = vmatpush3.msra.mxu1 %v5988_v45 }
 0xca2   :  { %5736 = vmatpush3.msra.mxu0 %v5989_v46  ;;  %5730 = vmatprep.mubr.msk.f32.mxu1 %vm6131_vm3, %v7211_v33 }
 0xca3   :  { %5737 = vmatprep.subr.mxu0 %v7211_v33  ;;  %5744 = vmatprep.subr.mxu1 %v7211_v33 }
 0xca4   :  { %5738 = vmatpush3.msra.mxu0 %v5990_v47  ;;  %5741 = vmatprep.mubr.msk.f32.mxu0 %vm6131_vm3, %v7211_v33 }
 0xca5   :  { %5739 = vmatprep.subr.mxu0 %v7211_v33 }
 0xca6   :  { %5740 = vmatpush3.msra.mxu0 %v5991_v11 }
 0xca7   :  { %5755 = vmatprep.subr.mxu0 %v7211_v33 }
 0xd27   :  { %v3027_v13 = vpop.f32.mrf.mxu1 }
 0xd28   :  { %v3031_v48 = vadd.f32 %v3027_v13, %v6657_v7 }
 0xd29   :  { %v5600_v14 = vpop.f32.mrf.mxu1 }
 0xd2f   :  { %v3180_v0 = vpop.f32.mrf.mxu1 }
 0xd31   :  { %v5622_v38 = vpop.f32.mrf.mxu1  ;;  %v3103_v30 = vpop.f32.mrf.mxu0 }
 0xd32   :  { %v3107_v22 = vadd.f32 %v3103_v30, %v3031_v48 }
 0xd33   :  { %v5611_v27 = vpop.f32.mrf.mxu0 }
 0xd34   :  { %v4909_v30 = vmul.f32 -1.442695, %v3107_v22 }
 0xd37   :  { %v3336_v20 = vpop.f32.mrf.mxu1 }
 0xd38   :  { %3341 = vrot.lane.b32.xlu1 %v3336_v20, %s6129_s0 }
 0xd39   :  { %v5644_v12 = vpop.f32.mrf.mxu1 }
 0xd3a   :  { %v3255_v31 = vpop.f32.mrf.mxu0 }
 0xd3c   :  { %v5633_v2 = vpop.f32.mrf.mxu0 }
 0xd41   :  { %v3487_v25 = vpop.f32.mrf.mxu1 }
 0xd43   :  { %v5666_v21 = vpop.f32.mrf.mxu1 }
 0xd44   :  { %v3411_v24 = vpop.f32.mrf.mxu0 }
 0xd46   :  { %v5655_v32 = vpop.f32.mrf.mxu0 }
 0xd4b   :  { %v3660_v51 = vpop.f32.mrf.mxu1 }
 0xd4c   :  { %v3665_v48 = vrot.slane %v3660_v51, 2 }
 0xd4d   :  { %v5688_v29 = vpop.f32.mrf.mxu1 }
 0xd4e   :  { %v3562_v16 = vpop.f32.mrf.mxu0 }
 0xd50   :  { %v5677_v17 = vpop.f32.mrf.mxu0 }
 0xd55   :  { %v3822_v8 = vpop.f32.mrf.mxu1 }
 0xd56   :  { %v3827_v19 = vrot.slane %v3822_v8, 2 }
 0xd57   :  { %v3740_v23 = vpop.f32.mrf.mxu0  ;;  %v5710_v26 = vpop.f32.mrf.mxu1 }
 0xd58   :  { %3828 = vrot.lane.b32.xlu0 %v3827_v19, %s6129_s0  ;;  %v3745_v13 = vrot.slane %v3740_v23, 2  ;;  %v7029_v19 = vld [vmem:[#allocation5 + $0x4d7] ss:$0 sm:$0xff] }
 0xd59   :  { %v5699_v10 = vpop.f32.mrf.mxu0 }
 0xd5c   :  { %3416 = vrot.lane.b32.xlu0 %v3411_v24, %s6129_s0 }
 0xd5f   :  { %v3899_v34 = vpop.f32.mrf.mxu0 }
 0xd60   :  { %v3904_v51 = vrot.slane %v3899_v34, 2 }
 0xd61   :  { %v5721_v35 = vpop.f32.mrf.mxu0 }
 0xdaa   :  { %v3342_v36 = vpop.permute.xlu1 %3341 }
 0xdab   :  { %v3344_v45 = vadd.f32 %v3342_v36, %v6657_v7  ;;  %v3667_v7 = vadd.f32 %v3665_v48, %v6355_v50 }
 0xdad   :  { %v4919_v38 = vmul.f32 -1.442695, %v3667_v7 }
 0xdca   :  { %v3829_v37 = vpop.permute.xlu0 %3828 }
 0xdcb   :  { %v3831_v43 = vadd.f32 %v3829_v37, %v6355_v50 }
 0xdcd   :  { %5928 = vtanh.f32 %v3831_v43 }
 0xdce   :  { %v3417_v46 = vpop.permute.xlu0 %3416 }
 0xdcf   :  { %v3419_v47 = vadd.f32 %v3417_v46, %v3344_v45  ;;  %v3916_v45 = vrot.slane %v6861_v18, 6 }
 0xdd1   :  { %5930 = vtanh.f32 %v3419_v47 }
 0xdd2   :  { %5932 = vpow2.f32 %v4919_v38 }
 0xdd3   :  { %5934 = vpow2.f32 %v4909_v30 }
 0xdda   :  { %v5929_v11 = vpop.eup %5928 }
 0xddb   :  { %3920 = vrot.lane.b32.xlu1 %v5929_v11, %s6129_s0 }
 0xdde   :  { %v5931_v14 = vpop.eup %5930 }
 0xddf   :  { %3746 = vrot.lane.b32.xlu1 %v3745_v13, %s6126_s1  ;;  %3579 = vrot.lane.b32.xlu0 %v5931_v14, %s6129_s0  ;;  %v5933_v27 = vpop.eup %5932 }
 0xde0   :  { %v3671_v20 = vadd.f32 1.0, %v5933_v27  ;;  %v5935_v12 = vpop.eup %5934 }
 0xde1   :  { %v3111_v2 = vadd.f32 1.0, %v5935_v12 }
 0xde2   :  { %5936 = vrcp.f32 %v3671_v20 }
 0xde3   :  { %3260 = vrot.lane.b32.xlu1 %v3255_v31, %s6126_s1  ;;  %3185 = vrot.lane.b32.xlu0 %v3180_v0, %s6126_s1  ;;  %5938 = vrcp.f32 %v3111_v2 }
 0xdef   :  { %v5937_v21 = vpop.eup %5936 }
 0xdf0   :  { %v5939_v31 = vpop.eup %5938 }
 0xe4d   :  { %v3921_v24 = vpop.permute.xlu1 %3920 }
 0xe4e   :  { %v3923_v32 = vmul.f32 %v5937_v21, %v3921_v24 }
 0xe50   :  { %3925 = vrot.lane.b32.xlu0 %v3923_v32, %s6126_s1 }
 0xe51   :  { %v3580_v0 = vpop.permute.xlu0 %3579  ;;  %v3747_v22 = vpop.permute.xlu1 %3746 }
 0xe52   :  { %v3582_v29 = vmul.f32 %v5939_v31, %v3580_v0  ;;  %v3749_v8 = vadd.f32 %v3747_v22, %v6355_v50 }
 0xe54   :  { %3905 = vrot.lane.b32.xlu0 %v3904_v51, %s6130_s3  ;;  %3584 = vrot.lane.b32.xlu1 %v3582_v29, %s6126_s1  ;;  %v4921_v10 = vmul.f32 -1.442695, %v3749_v8 }
 0xe55   :  { %v3186_v17 = vpop.permute.xlu0 %3185  ;;  %v3261_v26 = vpop.permute.xlu1 %3260 }
 0xe56   :  { %v3188_v23 = vadd.f32 %v7029_v19, %v3186_v17  ;;  %5940 = vpow2.f32 %v4921_v10 }
 0xe58   :  { %3567 = vrot.lane.b32.xlu0 %v3562_v16, %s6130_s3  ;;  %3492 = vrot.lane.b32.xlu1 %v3487_v25, %s6130_s3  ;;  %v3263_v34 = vadd.f32 %v3261_v26, %v3188_v23  ;;  %v4597_v23 = vrot.slane %v6873_v15, 7 }
 0xe5a   :  { %v4912_v35 = vmul.f32 -1.442695, %v3263_v34 }
 0xe5c   :  { %5942 = vpow2.f32 %v4912_v35  ;;  %v7216_v35 = vld [vmem:[#allocation20_spill] sm:$0xff] }
 0xe63   :  { %v5941_v36 = vpop.eup %5940 }
 0xe64   :  { %v3753_v37 = vadd.f32 1.0, %v5941_v36  ;;  %v4611_v36 = vsel %vm502_vm5, %v7216_v35, %v4597_v23 }
 0xe66   :  { %5944 = vrcp.f32 %v3753_v37 }
 0xe69   :  { %v5943_v43 = vpop.eup %5942 }
 0xe6a   :  { %v3267_v16 = vadd.f32 1.0, %v5943_v43 }
 0xe6c   :  { %5946 = vrcp.f32 %v3267_v16 }
 0xe73   :  { %v5945_v25 = vpop.eup %5944 }
 0xe74   :  { %v3918_v46 = vmul.f32 %v5945_v25, %v3916_v45 }
 0xe79   :  { %v5947_v47 = vpop.eup %5946 }
 0xe7a   :  { %v3577_v14 = vmul.f32 %v5947_v47, %v6865_v9 }
 0xec2   :  { %v3926_v11 = vpop.permute.xlu0 %3925 }
 0xec3   :  { %v7033_v13 = vadd.f32 %v3926_v11, %v3918_v46 }
 0xec5   :  { %5948 = vtanh.f32 %v7033_v13 }
 0xec6   :  { %v3585_v48 = vpop.permute.xlu1 %3584  ;;  %v3906_v18 = vpop.permute.xlu0 %3905 }
 0xec7   :  { %v7037_v7 = vadd.f32 %v3585_v48, %v3577_v14  ;;  %v3908_v20 = vadd.f32 %v3906_v18, %v6355_v50 }
 0xec9   :  { %5950 = vtanh.f32 %v7037_v7  ;;  %v4924_v21 = vmul.f32 -1.442695, %v3908_v20 }
 0xeca   :  { %v3493_v27 = vpop.permute.xlu1 %3492  ;;  %v3568_v2 = vpop.permute.xlu0 %3567 }
 0xecb   :  { %v3495_v12 = vadd.f32 %v7029_v19, %v3493_v27  ;;  %5952 = vpow2.f32 %v4924_v21 }
 0xecd   :  { %v3570_v9 = vadd.f32 %v3568_v2, %v3495_v12 }
 0xecf   :  { %v4917_v24 = vmul.f32 -1.442695, %v3570_v9 }
 0xed1   :  { %5954 = vpow2.f32 %v4917_v24 }
 0xed2   :  { %v5949_v38 = vpop.eup %5948 }
 0xed3   :  { %3931 = vrot.lane.b32.xlu1 %v5949_v38, %s6129_s0 }
 0xed6   :  { %v5951_v30 = vpop.eup %5950 }
 0xed7   :  { %3590 = vrot.lane.b32.xlu0 %v5951_v30, %s6129_s0 }
 0xed8   :  { %v5953_v32 = vpop.eup %5952 }
 0xed9   :  { %v3912_v31 = vadd.f32 1.0, %v5953_v32 }
 0xedb   :  { %5956 = vrcp.f32 %v3912_v31 }
 0xede   :  { %v5955_v0 = vpop.eup %5954 }
 0xedf   :  { %v3574_v51 = vadd.f32 1.0, %v5955_v0 }
 0xee1   :  { %5958 = vrcp.f32 %v3574_v51 }
 0xee8   :  { %v5957_v29 = vpop.eup %5956 }
 0xeee   :  { %v5959_v8 = vpop.eup %5958 }
 0xf45   :  { %v3932_v22 = vpop.permute.xlu1 %3931 }
 0xf46   :  { %v7044_v17 = vmul.f32 %v5957_v29, %v3932_v22 }
 0xf48   :  { %v3936_v50 = vrot.slane %v7044_v17, 6 }
 0xf49   :  { %v3591_v26 = vpop.permute.xlu0 %3590 }
 0xf4a   :  { %v7048_v10 = vmul.f32 %v5959_v8, %v3591_v26  ;;  %3937 = vrot.lane.b32.xlu1 %v3936_v50, %s6126_s1 }
 0xf4c   :  { %v4599_v34 = vrot.slane %v7048_v10, 6  ;;  %4013 = vrot.lane.b32.xlu0 %v7048_v10, %s6126_s1 }
 0xf4e   :  { %v7057_v37 = vsel %vm504_vm6, %v4611_v36, %v4599_v34  ;;  %v4603_v34 = vrot.slane %v7216_v35, 5  ;;  %v4605_v36 = vrot.slane %v6873_v15, 4 }
 0xfbc   :  { %v3938_v43 = vpop.permute.xlu1 %3937 }
 0xfbd   :  { %5731 = vmatmul.mubr.msk.f32.vlgmr.msra.gmra.mxu1 %vm534_vm2, %v3938_v43 }
 0xfbe   :  { %5745 = vmatpush3.msra.mxu1 %v6436_v39  ;;  %v4014_v16 = vpop.permute.xlu0 %4013  ;;  %5752 = vmatprep.mubr.msk.f32.mxu1 %vm6131_vm3, %v7211_v33 }
 0xfbf   :  { %5746 = vmatprep.subr.mxu1 %v7211_v33  ;;  %5742 = vmatmul.mubr.msk.f32.vlgmr.msra.gmra.mxu0 %vm534_vm2, %v4014_v16 }
 0xfc0   :  { %5747 = vmatpush3.msra.mxu1 %v6484_v52  ;;  %5756 = vmatpush3.msra.mxu0 %v6460_v49 }
 0xfc1   :  { %5748 = vmatprep.subr.mxu1 %v7211_v33  ;;  %5757 = vmatprep.subr.mxu0 %v7211_v33 }
 0xfc2   :  { %5749 = vmatpush3.msra.mxu1 %v6440_v40  ;;  %5758 = vmatpush3.msra.mxu0 %v6534_v59 }
 0xfc3   :  { %5750 = vmatprep.subr.mxu1 %v7211_v33  ;;  %5759 = vmatprep.subr.mxu0 %v7211_v33 }
 0xfc4   :  { %5751 = vmatpush3.msra.mxu1 %v6490_v53  ;;  %5760 = vmatpush3.msra.mxu0 %v6521_v57 }
 0xfc5   :  { %5753 = vmatmul.mubr.msk.f32.vlgmr.msra.gmra.mxu1 %vm534_vm2, %v3938_v43  ;;  %5761 = vmatprep.subr.mxu0 %v7211_v33 }
 0xfc6   :  { %5766 = vmatprep.subr.mxu1 %v7211_v33  ;;  %5762 = vmatpush3.msra.mxu0 %v6546_v3 }
 0xfc7   :  { %5763 = vmatprep.mubr.msk.f32.mxu0 %vm6131_vm3, %v7211_v33  ;;  %5767 = vmatpush3.msra.mxu1 %v6444_v41 }
 0xfc8   :  { %5764 = vmatmul.mubr.msk.f32.vlgmr.msra.gmra.mxu0 %vm534_vm2, %v4014_v16  ;;  %5768 = vmatprep.subr.mxu1 %v7211_v33 }
 0xfc9   :  { %5777 = vmatprep.subr.mxu0 %v7211_v33  ;;  %5769 = vmatpush3.msra.mxu1 %v6500_v54 }
 0xfca   :  { %5778 = vmatpush3.msra.mxu0 %v6538_v60  ;;  %5770 = vmatprep.subr.mxu1 %v7211_v33 }
 0xfcb   :  { %5779 = vmatprep.subr.mxu0 %v7211_v33  ;;  %5771 = vmatpush3.msra.mxu1 %v6448_v42 }
 0xfcc   :  { %5780 = vmatpush3.msra.mxu0 %v6560_v5  ;;  %5772 = vmatprep.subr.mxu1 %v7211_v33 }
 0xfcd   :  { %5781 = vmatprep.subr.mxu0 %v7211_v33  ;;  %5773 = vmatpush3.msra.mxu1 %v6506_v55 }
 0xfce   :  { %5774 = vmatprep.mubr.msk.f32.mxu1 %vm6131_vm3, %v7211_v33  ;;  %5782 = vmatpush3.msra.mxu0 %v6556_v4 }
 0xfcf   :  { %5775 = vmatmul.mubr.msk.f32.vlgmr.msra.gmra.mxu1 %vm534_vm2, %v3938_v43  ;;  %5783 = vmatprep.subr.mxu0 %v7211_v33 }
 0xfd0   :  { %5788 = vmatprep.subr.mxu1 %v7211_v33  ;;  %5784 = vmatpush3.msra.mxu0 %v6570_v6 }
 0xfd1   :  { %5785 = vmatprep.mubr.msk.f32.mxu0 %vm6131_vm3, %v7211_v33  ;;  %5789 = vmatpush3.msra.mxu1 %v6452_v44 }
 0xfd2   :  { %5786 = vmatmul.mubr.msk.f32.vlgmr.msra.gmra.mxu0 %vm534_vm2, %v4014_v16  ;;  %5790 = vmatprep.subr.mxu1 %v7211_v33 }
 0xfd3   :  { %5799 = vmatprep.subr.mxu0 %v7211_v33  ;;  %5791 = vmatpush3.msra.mxu1 %v6516_v56 }
 0xfd4   :  { %5800 = vmatpush3.msra.mxu0 %v6574_v61  ;;  %5792 = vmatprep.subr.mxu1 %v7211_v33 }
 0xfd5   :  { %5801 = vmatprep.subr.mxu0 %v7211_v33  ;;  %5793 = vmatpush3.msra.mxu1 %v6456_v28 }
 0xfd6   :  { %5802 = vmatpush3.msra.mxu0 %v6585_v62  ;;  %5794 = vmatprep.subr.mxu1 %v7211_v33 }
 0xfd7   :  { %5803 = vmatprep.subr.mxu0 %v7211_v33  ;;  %5795 = vmatpush3.msra.mxu1 %v6524_v58 }
 0xfd8   :  { %5796 = vmatprep.mubr.msk.f32.mxu1 %vm6131_vm3, %v7211_v33  ;;  %5804 = vmatpush3.msra.mxu0 %v6594_v63 }
 0xfd9   :  { %5797 = vmatmul.mubr.msk.f32.vlgmr.msra.gmra.mxu1 %vm534_vm2, %v3938_v43  ;;  %5805 = vmatprep.subr.mxu0 %v7211_v33 }
 0xfda   :  { %5806 = vmatpush3.msra.mxu0 %v6600_v1  ;;  %5807 = vmatprep.mubr.msk.f32.mxu0 %vm6131_vm3, %v7211_v33 }
 0xfdb   :  { %5808 = vmatmul.mubr.msk.f32.vlgmr.msra.gmra.mxu0 %vm534_vm2, %v4014_v16  ;;  %5810 = vmatprep.subr.mxu1 %v7211_v33  ;;  %v4607_v16 = vrot.slane %v7048_v10, 3  ;;  %v4640_v10 = vld [vmem:[#allocation5 + $0x4e0] ss:$0 sm:$0xff] }
 0xfdc   :  { %5818 = vmatprep.mubr.msk.f32.mxu1 %vm6131_vm3, %v7211_v33  ;;  %5821 = vmatprep.subr.mxu0 %v7211_v33 }
 0xfdd   :  { %5829 = vmatprep.mubr.msk.f32.mxu0 %vm6131_vm3, %v7211_v33 }
0x107d   :  { %v4007_v39 = vpop.f32.mrf.mxu1 }
0x107e   :  { %v4011_v40 = vadd.f32 %v7029_v19, %v4007_v39 }
0x107f   :  { %v5732_v41 = vpop.f32.mrf.mxu1  ;;  %v4083_v42 = vpop.f32.mrf.mxu0 }
0x1080   :  { %v4087_v44 = vadd.f32 %v4083_v42, %v4011_v40 }
0x1081   :  { %v5743_v28 = vpop.f32.mrf.mxu0 }
0x1082   :  { %v4927_v1 = vmul.f32 -1.442695, %v4087_v44 }
0x1085   :  { %v4160_v49 = vpop.f32.mrf.mxu1 }
0x1087   :  { %v5754_v52 = vpop.f32.mrf.mxu1 }
0x1088   :  { %v4235_v53 = vpop.f32.mrf.mxu0 }
0x108a   :  { %v5765_v54 = vpop.f32.mrf.mxu0 }
0x108b   :  { %v4646_v54 = vld [vmem:[#allocation5 + $0x4e1] ss:$0 sm:$0xff] }
0x108f   :  { %v4316_v55 = vpop.f32.mrf.mxu1 }
0x1090   :  { %4321 = vrot.lane.b32.xlu1 %v4316_v55, %s6129_s0  ;;  %v4655_v55 = vld [vmem:[#allocation5 + $0x480] sm:$0xff] }
0x1091   :  { %v5776_v56 = vpop.f32.mrf.mxu1  ;;  %5811 = vmatpush3.msra.mxu1 %v4655_v55 }
0x1092   :  { %v4391_v57 = vpop.f32.mrf.mxu0  ;;  %v4654_v56 = vld [vmem:[#allocation5 + $0x470] sm:$0xff]  ;;  %5812 = vmatprep.subr.mxu1 %v7211_v33 }
0x1093   :  { %4396 = vrot.lane.b32.xlu0 %v4391_v57, %s6129_s0  ;;  %v4653_v57 = vld [vmem:[#allocation5 + $0x460] sm:$0xff]  ;;  %5813 = vmatpush3.msra.mxu1 %v4654_v56 }
0x1094   :  { %v5787_v58 = vpop.f32.mrf.mxu0  ;;  %5814 = vmatprep.subr.mxu1 %v7211_v33 }
0x1095   :  { %v4652_v58 = vld [vmem:[#allocation5 + $0x450] sm:$0xff]  ;;  %5815 = vmatpush3.msra.mxu1 %v4653_v57 }
0x1096   :  { %5816 = vmatprep.subr.mxu1 %v7211_v33 }
0x1097   :  { %4165 = vrot.lane.b32.xlu0 %v4160_v49, %s6126_s1  ;;  %5817 = vmatpush3.msra.mxu1 %v4652_v58 }
0x1099   :  { %v4467_v59 = vpop.f32.mrf.mxu1 }
0x109b   :  { %v5798_v60 = vpop.f32.mrf.mxu1  ;;  %v4542_v3 = vpop.f32.mrf.mxu0 }
0x109d   :  { %v5809_v4 = vpop.f32.mrf.mxu0 }
0x1102   :  { %v4322_v5 = vpop.permute.xlu1 %4321 }
0x1103   :  { %v4324_v6 = vadd.f32 %v7029_v19, %v4322_v5 }
0x1105   :  { %v4397_v61 = vpop.permute.xlu0 %4396 }
0x1106   :  { %v4399_v62 = vadd.f32 %v4397_v61, %v4324_v6 }
0x1108   :  { %5960 = vtanh.f32 %v4399_v62 }
0x1109   :  { %5962 = vpow2.f32 %v4927_v1  ;;  %v4166_v14 = vpop.permute.xlu0 %4165  ;;  %v4736_v1 = vld [vmem:[#allocation5 + $0x4c0] sm:$0xff] }
0x110a   :  { %v4168_v38 = vadd.f32 %v7029_v19, %v4166_v14  ;;  %5822 = vmatpush3.msra.mxu0 %v4736_v1  ;;  %v4735_v14 = vld [vmem:[#allocation5 + $0x4b0] sm:$0xff] }
0x110b   :  { %5823 = vmatprep.subr.mxu0 %v7211_v33 }
0x110c   :  { %5824 = vmatpush3.msra.mxu0 %v4735_v14 }
0x110d   :  { %5825 = vmatprep.subr.mxu0 %v7211_v33 }
0x1115   :  { %v5961_v63 = vpop.eup %5960 }
0x1116   :  { %4559 = vrot.lane.b32.xlu1 %v5961_v63, %s6129_s0  ;;  %v5963_v25 = vpop.eup %5962 }
0x1117   :  { %v4091_v45 = vadd.f32 1.0, %v5963_v25 }
0x1119   :  { %5964 = vrcp.f32 %v4091_v45 }
0x111a   :  { %4240 = vrot.lane.b32.xlu1 %v4235_v53, %s6126_s1 }
0x111e   :  { %4472 = vrot.lane.b32.xlu1 %v4467_v59, %s6130_s3 }
0x1126   :  { %v5965_v46 = vpop.eup %5964 }
0x1188   :  { %v4560_v47 = vpop.permute.xlu1 %4559 }
0x1189   :  { %v4562_v11 = vmul.f32 %v5965_v46, %v4560_v47 }
0x118b   :  { %4564 = vrot.lane.b32.xlu0 %v4562_v11, %s6126_s1 }
0x118c   :  { %v4241_v48 = vpop.permute.xlu1 %4240 }
0x118d   :  { %v4243_v30 = vadd.f32 %v4241_v48, %v4168_v38  ;;  %v4734_v48 = vld [vmem:[#allocation5 + $0x4a0] sm:$0xff]  ;;  %v4733_v38 = vld [vmem:[#allocation5 + $0x490] sm:$0xff] }
0x118e   :  { %5826 = vmatpush3.msra.mxu0 %v4734_v48 }
0x118f   :  { %4547 = vrot.lane.b32.xlu0 %v4542_v3, %s6130_s3  ;;  %v4930_v18 = vmul.f32 -1.442695, %v4243_v30  ;;  %5827 = vmatprep.subr.mxu0 %v7211_v33 }
0x1190   :  { %v4473_v32 = vpop.permute.xlu1 %4472  ;;  %5828 = vmatpush3.msra.mxu0 %v4733_v38 }
0x1191   :  { %5966 = vpow2.f32 %v4930_v18  ;;  %v4475_v0 = vadd.f32 %v7029_v19, %v4473_v32 }
0x119e   :  { %v5967_v27 = vpop.eup %5966 }
0x119f   :  { %v4247_v20 = vadd.f32 1.0, %v5967_v27 }
0x11a1   :  { %5968 = vrcp.f32 %v4247_v20 }
0x11ae   :  { %v5969_v12 = vpop.eup %5968 }
0x11af   :  { %v4557_v2 = vmul.f32 %v5969_v12, %v7037_v7 }
0x11fd   :  { %v4565_v21 = vpop.permute.xlu0 %4564 }
0x11fe   :  { %v4567_v9 = vadd.f32 %v4565_v21, %v4557_v2 }
0x1200   :  { %5970 = vtanh.f32 %v4567_v9 }
0x1201   :  { %v4548_v31 = vpop.permute.xlu0 %4547 }
0x1202   :  { %v4550_v51 = vadd.f32 %v4548_v31, %v4475_v0 }
0x1204   :  { %v4935_v29 = vmul.f32 -1.442695, %v4550_v51 }
0x1206   :  { %5972 = vpow2.f32 %v4935_v29 }
0x120d   :  { %v5971_v24 = vpop.eup %5970 }
0x120e   :  { %4570 = vrot.lane.b32.xlu1 %v5971_v24, %s6129_s0 }
0x1213   :  { %v5973_v22 = vpop.eup %5972 }
0x1214   :  { %v4554_v50 = vadd.f32 1.0, %v5973_v22 }
0x1216   :  { %5974 = vrcp.f32 %v4554_v50 }
0x1223   :  { %v5975_v8 = vpop.eup %5974 }
0x1280   :  { %v4571_v23 = vpop.permute.xlu1 %4570 }
0x1281   :  { %v4573_v26 = vmul.f32 %v5975_v8, %v4571_v23 }
0x1283   :  { %v4601_v7 = vrot.slane %v4573_v26, 5  ;;  %v4609_v39 = vrot.slane %v4573_v26, 2 }
0x1285   :  { %v4613_v43 = vsel %vm506_vm7, %v7057_v37, %v4601_v7 }
0x1286   :  { %v4614_v19 = vsel %vm343_vm4, %v4613_v43, %v4603_v34 }
0x1287   :  { %v4615_v40 = vsel %vm509_vm8, %v4614_v19, %v4605_v36 }
0x1288   :  { %v4616_v41 = vsel %vm511_vm9, %v4615_v40, %v4607_v16 }
0x1289   :  { %v4617_v42 = vsel %vm513_vm10, %v4616_v41, %v4609_v39 }
0x128a   :  { %4619 = vrot.lane.b32.xlu0 %v4617_v42, %s6126_s1 }
0x12fc   :  { %v4620_v44 = vpop.permute.xlu0 %4619 }
0x12fd   :  { %v4622_v35 = vsel %vm534_vm2, %v4620_v44, 0.0 }
0x12fe   :  { %4623 = vadd.xlane.f32.xlu1 %v4622_v35 }
0x130f   :  { %4642 = vrot.lane.b32.xlu1 %v4640_v10, %s6130_s3 }
0x1387   :  { %v4624_v15 = vpop.xlane.xlu1 %4623 }
0x1388   :  { %v4626_v28 = vmul.f32 0.03125, %v4624_v15 }
0x138a   :  { %v4627_v37 = vsub.f32 %v4617_v42, %v4626_v28 }
0x138b   :  { %v4643_v62 = vpop.permute.xlu1 %4642 }
0x138c   :  { %v4628_v49 = vmul.f32 %v4627_v37, %v4627_v37 }
0x138e   :  { %4630 = vrot.lane.b32.xlu0 %v4628_v49, %s6126_s1 }
0x1400   :  { %v4631_v52 = vpop.permute.xlu0 %4630 }
0x1401   :  { %v4633_v53 = vsel %vm534_vm2, %v4631_v52, 0.0 }
0x1402   :  { %4634 = vadd.xlane.f32.xlu0 %v4633_v53 }
0x1418   :  { %4648 = vrot.lane.b32.xlu0 %v4646_v54, %s6130_s3 }
0x141c   :  { %4585 = vrot.lane.b32.xlu0 %v4573_v26, %s6126_s1 }
0x1420   :  { %4592 = vrot.lane.b32.xlu0 %v4567_v9, %s6130_s3 }
0x148b   :  { %v4635_v59 = vpop.xlane.xlu0 %4634 }
0x148c   :  { %v4636_v60 = vmul.f32 0.03125, %v4635_v59 }
0x148e   :  { %v4637_v3 = vadd.f32 1e-05, %v4636_v60 }
0x148f   :  { %v4649_v4 = vpop.permute.xlu0 %4648 }
0x1490   :  { %5976 = vrsqrt.f32 %v4637_v3 }
0x1493   :  { %v4586_v5 = vpop.permute.xlu0 %4585 }
0x1494   :  { %4590 = vst.msk [vmem:[#allocation9 + $0x2] sm:$0x3] %vm4589_vm11, %v4586_v5 }
0x1497   :  { %v4593_v6 = vpop.permute.xlu0 %4592 }
0x1498   :  { %4596 = vst.msk [vmem:[#allocation11 + $0x2] sm:$0x3] %vm4589_vm11, %v4593_v6 }
0x149d   :  { %v5977_v61 = vpop.eup %5976 }
0x149e   :  { %v4639_v63 = vmul.f32 %v5977_v61, %v4627_v37 }
0x14a0   :  { %v4645_v25 = vmul.f32 %v4643_v62, %v4639_v63 }
0x14a2   :  { %v4651_v45 = vadd.f32 %v4649_v4, %v4645_v25 }
0x14a4   :  { %4658 = vrot.lane.b32.xlu1 %v4651_v45, %s6126_s1 }
0x14a8   :  { %4574 = vrot.lane.b32.xlu1 %v7044_v17, %s6126_s1  ;;  %v4656_v17 = vld [vmem:[#allocation5 + $0x4e2] ss:$0 sm:$0xff] }
0x14ac   :  { %4580 = vrot.lane.b32.xlu1 %v7033_v13, %s6130_s3 }
0x1516   :  { %v4659_v46 = vpop.permute.xlu1 %4658 }
0x1517   :  { %5819 = vmatmul.mubr.msk.f32.vlgmr.msra.gmra.mxu1 %vm534_vm2, %v4659_v46 }
0x151a   :  { %v4575_v47 = vpop.permute.xlu1 %4574 }
0x151b   :  { %4578 = vst.msk [vmem:[#allocation9 - $0x6] sm:$0xc0] %vm4577_vm12, %v4575_v47 }
0x151e   :  { %v4581_v11 = vpop.permute.xlu1 %4580 }
0x151f   :  { %4583 = vst.msk [vmem:[#allocation11 - $0x6] sm:$0xc0] %vm4577_vm12, %v4581_v11 }
0x15d7   :  { %v4728_v13 = vpop.f32.mrf.mxu1 }
0x15d8   :  { %v4729_v30 = vadd.f32 %v4728_v13, %v4656_v17 }
0x15d9   :  { %v5820_v18 = vpop.f32.mrf.mxu1 }
0x15da   :  { %v4732_v27 = vmax.f32 %v4729_v30, 0.0 }
0x15dc   :  { %5830 = vmatmul.mubr.msk.f32.vlgmr.msra.gmra.mxu0 %vm534_vm2, %v4732_v27 }
0x15dd   :  { %6064 = shalt.err (!%p6061_p5)
}
0x15de   :  { %4834 = dma.vmem_to_hbm [thread:$0]  %s4829_s19, 64, %s7196_s5, [#allocation10], %s6126_s1, %s6126_s1, %s6127_s12  }
0x15df   :  { %s6133_s23 = smov [#allocation11]  }
0x15e0   :  { %s4840_s24 = sshll.u32 %s6133_s23, 4  ;;  %s4841_s24 = int_to_ptr.vmem [resolvable:$true] %s4840_s24 }
0x15e1   :  { %s6073_s25 = scalar_lea.vmem %s4841_s24, 64  ;;  %p6078_p7 = scmp.lt.s32.totalorder %s4841_s24, %s4841_s24 }
0x15e2   :  { %p6074_p6 = scmp.ne.s32.totalorder %s4841_s24, %s6073_s25  ;;  %p6079_p8 = scmp.lt.s32.totalorder %s6073_s25, %s6073_s25 }
0x15e4   :  { %p6080_p9 = por %p6079_p8, %p6078_p7 }
0x15e6   :  { %p6081_p10 = pnand %p6080_p9, %p6074_p6 }
0x15e8   :  { %6084 = shalt.err (!%p6081_p10)
}
0x15e9   :  { %4846 = dma.vmem_to_hbm [thread:$0]  %s4841_s24, 64, %s7197_s6, [#allocation10], %s6126_s1, %s6126_s1, %s6127_s12   ;;  %v4737_v33 = vld [vmem:[#allocation5 + $0x4e3] ss:$0 sm:$0xff] }
0x15ea   :  { %s6134_s5 = smov [#allocation8]  }
0x15eb   :  { %s4819_s28 = sshll.u32 %s6134_s5, 4  ;;  %s4820_s28 = int_to_ptr.vmem [resolvable:$true] %s4819_s28 }
0x15ec   :  { %s6093_s29 = scalar_lea.vmem %s4820_s28, 128  ;;  %p6098_p12 = scmp.lt.s32.totalorder %s4820_s28, %s4820_s28 }
0x15ed   :  { %p6094_p11 = scmp.ne.s32.totalorder %s4820_s28, %s6093_s29  ;;  %p6099_p13 = scmp.lt.s32.totalorder %s6093_s29, %s6093_s29 }
0x15ef   :  { %p6100_p0 = por %p6099_p13, %p6098_p12 }
0x15f1   :  { %p6101_p1 = pnand %p6100_p0, %p6094_p11 }
0x169c   :  { %v4807_v20 = vpop.f32.mrf.mxu0 }
0x169d   :  { %v4808_v12 = vadd.f32 %v4807_v20, %v4737_v33 }
0x169e   :  { %v5831_v2 = vpop.f32.mrf.mxu0 }
0x169f   :  { %5978 = vtanh.f32 %v4808_v12 }
0x16ac   :  { %v5979_v21 = vpop.eup %5978 }
0x16ad   :  { %4812 = vst.msk [vmem:[#allocation8] sm:$0xff] %vm277_vm1, %v5979_v21 }
0x16ae   :  { %6104 = shalt.err (!%p6101_p1)
}
0x16af   :  { %4822 = dma.vmem_to_hbm [thread:$0]  %s4820_s28, 128, %s7195_s4, [#allocation4]  }
0x16b0   :  { %6117 = dma.done.wait [#allocation4], 128  }
0x16b1   :  { %6118 = vsyncadd [#allocation4], 4294967168 }
0x16b2   :  { %6119 = dma.done.wait [#allocation10], 128  }
0x16b3   :  { %6120 = vsyncadd [#allocation10], 4294967168 }
0x16b4   :  { %4856 = vsyncpa [#allocation3], 1 }
0x16b5   :  { %4857 = vsyncpa [#allocation6], 1 }
0x16b6   :  { %4858 = vsyncpa [#allocation4], 1 }
0x16b7   :  { %4859 = vsyncpa [#allocation10], 1 }

</bundles_post_ra>
